<compile_context>
chip_gen: v7x
topology: tpu7x:2x2x1
jax: 0.10.0
libtpu: 0.0.40
codegen_flags: <defaults>
</compile_context>

<pallas_src>
import jax
import jax.numpy as jnp
from jax.experimental import pallas as pl
from jax.experimental.pallas import tpu as pltpu


def _mlp_kernel(x_ref, w1_ref, b1_ref, w2_ref, b2_ref, w3_ref, b3_ref,
                w4_ref, b4_ref, o_ref):
    # Layer 1: Linear(F, 1024) + ReLU.  bf16 MXU matmul, f32 accumulation;
    # bias + ReLU applied on the f32 accumulator before any downcast.
    h = jnp.dot(x_ref[...], w1_ref[...], preferred_element_type=jnp.float32)
    h = jnp.maximum(h + b1_ref[...], 0.0)
    # Layer 2: Linear(1024, 256) + ReLU
    h = jnp.dot(h.astype(jnp.bfloat16), w2_ref[...],
                preferred_element_type=jnp.float32)
    h = jnp.maximum(h + b2_ref[...], 0.0)
    # Layer 3: Linear(256, 64) + ReLU
    h = jnp.dot(h.astype(jnp.bfloat16), w3_ref[...],
                preferred_element_type=jnp.float32)
    h = jnp.maximum(h + b3_ref[...], 0.0)
    # Layer 4: Linear(64, 1) + Sigmoid as VPU multiply + lane reduce (an
    # [M,64]x[64,1] MXU matmul would use a single column of the systolic array).
    logit = jnp.sum(h * w4_ref[...], axis=-1, keepdims=True) + b4_ref[...]
    o_ref[...] = jax.nn.sigmoid(logit)


def prompt_classifier_forward(x, params, *, block_b=128):
    """x: [B, F] f32.  params: dict of w1..w4, b1..b4 (kernel layout, f32)."""
    B, F = x.shape

    # Pad the batch up to a multiple of block_b so the grid tiles evenly;
    # padded rows are zeros and are discarded after the call.
    B_pad = ((B + block_b - 1) // block_b) * block_b
    if B_pad != B:
        x = jnp.pad(x, ((0, B_pad - B), (0, 0)))

    # bf16 inputs to the MXU; biases / accumulator / epilogue stay f32.
    x_bf = x.astype(jnp.bfloat16)
    w1 = params["w1"].astype(jnp.bfloat16)
    w2 = params["w2"].astype(jnp.bfloat16)
    w3 = params["w3"].astype(jnp.bfloat16)
    w4_row = params["w4"].reshape(1, -1).astype(jnp.float32)   # [1, 64]
    b1, b2, b3 = params["b1"], params["b2"], params["b3"]
    b4 = params["b4"].reshape(1, 1)

    grid = (B_pad // block_b,)

    # NOTE: for very large input_size (F >~ 8K) on v7x (64 MiB VMEM), w1 should
    # get a K-tiled reduction grid axis + accumulator; at typical F (<=4K) the
    # whole weight set fits comfortably in VMEM, so keep it resident.
    def resident(arr):
        # Whole-array spec, resident across the (parallel) batch grid.
        return pl.BlockSpec(arr.shape, lambda i: tuple(0 for _ in arr.shape))

    out = pl.pallas_call(
        _mlp_kernel,
        out_shape=jax.ShapeDtypeStruct((B_pad, 1), jnp.float32),
        grid_spec=pltpu.PrefetchScalarGridSpec(
            num_scalar_prefetch=0,
            grid=grid,
            in_specs=[
                pl.BlockSpec((block_b, F), lambda i: (i, 0)),   # x tile
                resident(w1), resident(b1),
                resident(w2), resident(b2),
                resident(w3), resident(b3),
                resident(w4_row), resident(b4),
            ],
            out_specs=pl.BlockSpec((block_b, 1), lambda i: (i, 0)),
        ),
        compiler_params=pltpu.CompilerParams(
            dimension_semantics=("parallel",)),
    )(x_bf, w1, b1, w2, b2, w3, b3, w4_row, b4)
    return out[:B]


def init_params(key, input_size):
    """Deterministic synthetic weights (PyTorch-Linear-like uniform init), f32."""
    sizes = [(input_size, 1024), (1024, 256), (256, 64), (64, 1)]
    params = {}
    for idx, (fan_in, fan_out) in enumerate(sizes, start=1):
        key, kw, kb = jax.random.split(key, 3)
        bound = 1.0 / (fan_in ** 0.5)
        params[f"w{idx}"] = jax.random.uniform(
            kw, (fan_in, fan_out), jnp.float32, -bound, bound)
        params[f"b{idx}"] = jax.random.uniform(
            kb, (1, fan_out), jnp.float32, -bound, bound)
    return params


def _reference_forward(x, p):
    # Pure-f32 reference of the PyTorch module in eval mode.
    h = jnp.maximum(x @ p["w1"] + p["b1"], 0.0)
    h = jnp.maximum(h @ p["w2"] + p["b2"], 0.0)
    h = jnp.maximum(h @ p["w3"] + p["b3"], 0.0)
    return jax.nn.sigmoid(h @ p["w4"] + p["b4"])


if __name__ == "__main__":
    key = jax.random.PRNGKey(0)
    kx, kp = jax.random.split(key)

    batch = 4
    input_size = 1024   # module default; hidden widths (1024/256/64/1) fixed by the module

    x = jax.random.normal(kx, (batch, input_size), jnp.float32)
    params = init_params(kp, input_size)

    out = prompt_classifier_forward(x, params)
    out = jax.block_until_ready(out)

    ref = _reference_forward(x, params)
    assert out.shape == (batch, 1)
    # bf16 matmul inputs with f32 accumulation -> loosened tolerance vs f32 ref.
    assert jnp.allclose(out, ref, atol=2e-2, rtol=2e-2), (
        f"max abs err {jnp.max(jnp.abs(out - ref))}")

    print("KERNEL_OK")
</pallas_src>

<mosaic_0001>
module attributes {stable_mosaic.version = 11 : i64} {
  func.func @_mlp_kernel(%arg0: i32, %arg1: memref<128x1024xbf16, #tpu.memory_space<vmem>>, %arg2: memref<1024x1024xbf16, #tpu.memory_space<vmem>>, %arg3: memref<1x1024xf32, #tpu.memory_space<vmem>>, %arg4: memref<1024x256xbf16, #tpu.memory_space<vmem>>, %arg5: memref<1x256xf32, #tpu.memory_space<vmem>>, %arg6: memref<256x64xbf16, #tpu.memory_space<vmem>>, %arg7: memref<1x64xf32, #tpu.memory_space<vmem>>, %arg8: memref<1x64xf32, #tpu.memory_space<vmem>>, %arg9: memref<1x1xf32, #tpu.memory_space<vmem>>, %arg10: memref<128x1xf32, #tpu.memory_space<vmem>>) attributes {dimension_semantics = [#tpu.dimension_semantics<parallel>], iteration_bounds = array<i64: 1>, scalar_prefetch = 0 : i64, scratch_operands = 0 : i64, tpu.core_type = #tpu.core_type<tc>, window_params = [{transform_indices = @transform_0, window_bounds = array<i64: 128, 1024>}, {pipeline_mode = #tpu.pipeline_mode<synchronous>, transform_indices = @transform_1, window_bounds = array<i64: 1024, 1024>}, {pipeline_mode = #tpu.pipeline_mode<synchronous>, transform_indices = @transform_2, window_bounds = array<i64: 1, 1024>}, {pipeline_mode = #tpu.pipeline_mode<synchronous>, transform_indices = @transform_3, window_bounds = array<i64: 1024, 256>}, {pipeline_mode = #tpu.pipeline_mode<synchronous>, transform_indices = @transform_4, window_bounds = array<i64: 1, 256>}, {pipeline_mode = #tpu.pipeline_mode<synchronous>, transform_indices = @transform_5, window_bounds = array<i64: 256, 64>}, {pipeline_mode = #tpu.pipeline_mode<synchronous>, transform_indices = @transform_6, window_bounds = array<i64: 1, 64>}, {pipeline_mode = #tpu.pipeline_mode<synchronous>, transform_indices = @transform_7, window_bounds = array<i64: 1, 64>}, {pipeline_mode = #tpu.pipeline_mode<synchronous>, transform_indices = @transform_8, window_bounds = array<i64: 1, 1>}, {transform_indices = @transform_9, window_bounds = array<i64: 128, 1>}]} {
    %c0 = arith.constant 0 : index
    %c0_0 = arith.constant 0 : index
    %0 = vector.load %arg1[%c0, %c0_0] : memref<128x1024xbf16, #tpu.memory_space<vmem>>, vector<128x1024xbf16>
    %c0_1 = arith.constant 0 : index
    %c0_2 = arith.constant 0 : index
    %1 = vector.load %arg2[%c0_1, %c0_2] : memref<1024x1024xbf16, #tpu.memory_space<vmem>>, vector<1024x1024xbf16>
    %cst = arith.constant dense<0.000000e+00> : vector<128x1024xf32>
    %2 = tpu.matmul %0, %1, %cst {dimension_numbers = #tpu.dot_dimension_numbers<[1], [0], [0], [1], [0, 0, 1, 1], [], []>} : vector<128x1024xbf16>, vector<1024x1024xbf16>, vector<128x1024xf32> -> vector<128x1024xf32>
    %c0_3 = arith.constant 0 : index
    %c0_4 = arith.constant 0 : index
    %3 = vector.load %arg3[%c0_3, %c0_4] : memref<1x1024xf32, #tpu.memory_space<vmem>>, vector<1x1024xf32>
    %4 = vector.broadcast %3 : vector<1x1024xf32> to vector<128x1024xf32>
    %5 = arith.addf %2, %4 : vector<128x1024xf32>
    %cst_5 = arith.constant 0.000000e+00 : f32
    %6 = vector.broadcast %cst_5 : f32 to vector<128x1024xf32>
    %7 = arith.maximumf %5, %6 : vector<128x1024xf32>
    %8 = arith.truncf %7 : vector<128x1024xf32> to vector<128x1024xbf16>
    %c0_6 = arith.constant 0 : index
    %c0_7 = arith.constant 0 : index
    %9 = vector.load %arg4[%c0_6, %c0_7] : memref<1024x256xbf16, #tpu.memory_space<vmem>>, vector<1024x256xbf16>
    %cst_8 = arith.constant dense<0.000000e+00> : vector<128x256xf32>
    %10 = tpu.matmul %8, %9, %cst_8 {dimension_numbers = #tpu.dot_dimension_numbers<[1], [0], [0], [1], [0, 0, 1, 1], [], []>} : vector<128x1024xbf16>, vector<1024x256xbf16>, vector<128x256xf32> -> vector<128x256xf32>
    %c0_9 = arith.constant 0 : index
    %c0_10 = arith.constant 0 : index
    %11 = vector.load %arg5[%c0_9, %c0_10] : memref<1x256xf32, #tpu.memory_space<vmem>>, vector<1x256xf32>
    %12 = vector.broadcast %11 : vector<1x256xf32> to vector<128x256xf32>
    %13 = arith.addf %10, %12 : vector<128x256xf32>
    %cst_11 = arith.constant 0.000000e+00 : f32
    %14 = vector.broadcast %cst_11 : f32 to vector<128x256xf32>
    %15 = arith.maximumf %13, %14 : vector<128x256xf32>
    %16 = arith.truncf %15 : vector<128x256xf32> to vector<128x256xbf16>
    %c0_12 = arith.constant 0 : index
    %c0_13 = arith.constant 0 : index
    %17 = vector.load %arg6[%c0_12, %c0_13] : memref<256x64xbf16, #tpu.memory_space<vmem>>, vector<256x64xbf16>
    %cst_14 = arith.constant dense<0.000000e+00> : vector<128x64xf32>
    %18 = tpu.matmul %16, %17, %cst_14 {dimension_numbers = #tpu.dot_dimension_numbers<[1], [0], [0], [1], [0, 0, 1, 1], [], []>} : vector<128x256xbf16>, vector<256x64xbf16>, vector<128x64xf32> -> vector<128x64xf32>
    %c0_15 = arith.constant 0 : index
    %c0_16 = arith.constant 0 : index
    %19 = vector.load %arg7[%c0_15, %c0_16] : memref<1x64xf32, #tpu.memory_space<vmem>>, vector<1x64xf32>
    %20 = vector.broadcast %19 : vector<1x64xf32> to vector<128x64xf32>
    %21 = arith.addf %18, %20 : vector<128x64xf32>
    %cst_17 = arith.constant 0.000000e+00 : f32
    %22 = vector.broadcast %cst_17 : f32 to vector<128x64xf32>
    %23 = arith.maximumf %21, %22 : vector<128x64xf32>
    %c0_18 = arith.constant 0 : index
    %c0_19 = arith.constant 0 : index
    %24 = vector.load %arg8[%c0_18, %c0_19] : memref<1x64xf32, #tpu.memory_space<vmem>>, vector<1x64xf32>
    %25 = vector.broadcast %24 : vector<1x64xf32> to vector<128x64xf32>
    %26 = arith.mulf %23, %25 : vector<128x64xf32>
    %cst_20 = arith.constant dense<0.000000e+00> : vector<128xf32>
    %27 = vector.multi_reduction <add>, %26, %cst_20 [1] : vector<128x64xf32> to vector<128xf32>
    %28 = vector.shape_cast %27 : vector<128xf32> to vector<128x1xf32>
    %c0_21 = arith.constant 0 : index
    %c0_22 = arith.constant 0 : index
    %29 = vector.load %arg9[%c0_21, %c0_22] : memref<1x1xf32, #tpu.memory_space<vmem>>, vector<1x1xf32>
    %30 = vector.broadcast %29 : vector<1x1xf32> to vector<128x1xf32>
    %31 = arith.addf %28, %30 : vector<128x1xf32>
    %32 = arith.negf %31 : vector<128x1xf32>
    %33 = math.exp %32 : vector<128x1xf32>
    %cst_23 = arith.constant 1.000000e+00 : f32
    %34 = vector.broadcast %cst_23 : f32 to vector<128x1xf32>
    %35 = arith.addf %34, %33 : vector<128x1xf32>
    %36 = arith.divf %34, %35 : vector<128x1xf32>
    %c0_24 = arith.constant 0 : index
    %c0_25 = arith.constant 0 : index
    %37 = vector.load %arg10[%c0_24, %c0_25] : memref<128x1xf32, #tpu.memory_space<vmem>>, vector<128x1xf32>
    tpu.vector_store %arg10[%c0_24, %c0_25], %36 {strides = array<i32>} : memref<128x1xf32, #tpu.memory_space<vmem>>, vector<128x1xf32>,
    return
  }
  func.func @transform_0(%arg0: i32) -> (i32, i32) {
    %c0_i32 = arith.constant 0 : i32
    %c0_i32_0 = arith.constant 0 : i32
    return %arg0, %c0_i32 : i32, i32
  }
  func.func @transform_1(%arg0: i32) -> (i32, i32) {
    %c0_i32 = arith.constant 0 : i32
    %c0_i32_0 = arith.constant 0 : i32
    %c0_i32_1 = arith.constant 0 : i32
    return %c0_i32, %c0_i32_0 : i32, i32
  }
  func.func @transform_2(%arg0: i32) -> (i32, i32) {
    %c0_i32 = arith.constant 0 : i32
    %c0_i32_0 = arith.constant 0 : i32
    %c0_i32_1 = arith.constant 0 : i32
    return %c0_i32, %c0_i32_0 : i32, i32
  }
  func.func @transform_3(%arg0: i32) -> (i32, i32) {
    %c0_i32 = arith.constant 0 : i32
    %c0_i32_0 = arith.constant 0 : i32
    %c0_i32_1 = arith.constant 0 : i32
    return %c0_i32, %c0_i32_0 : i32, i32
  }
  func.func @transform_4(%arg0: i32) -> (i32, i32) {
    %c0_i32 = arith.constant 0 : i32
    %c0_i32_0 = arith.constant 0 : i32
    %c0_i32_1 = arith.constant 0 : i32
    return %c0_i32, %c0_i32_0 : i32, i32
  }
  func.func @transform_5(%arg0: i32) -> (i32, i32) {
    %c0_i32 = arith.constant 0 : i32
    %c0_i32_0 = arith.constant 0 : i32
    %c0_i32_1 = arith.constant 0 : i32
    return %c0_i32, %c0_i32_0 : i32, i32
  }
  func.func @transform_6(%arg0: i32) -> (i32, i32) {
    %c0_i32 = arith.constant 0 : i32
    %c0_i32_0 = arith.constant 0 : i32
    %c0_i32_1 = arith.constant 0 : i32
    return %c0_i32, %c0_i32_0 : i32, i32
  }
  func.func @transform_7(%arg0: i32) -> (i32, i32) {
    %c0_i32 = arith.constant 0 : i32
    %c0_i32_0 = arith.constant 0 : i32
    %c0_i32_1 = arith.constant 0 : i32
    return %c0_i32, %c0_i32_0 : i32, i32
  }
  func.func @transform_8(%arg0: i32) -> (i32, i32) {
    %c0_i32 = arith.constant 0 : i32
    %c0_i32_0 = arith.constant 0 : i32
    %c0_i32_1 = arith.constant 0 : i32
    return %c0_i32, %c0_i32_0 : i32, i32
  }
  func.func @transform_9(%arg0: i32) -> (i32, i32) {
    %c0_i32 = arith.constant 0 : i32
    %c0_i32_0 = arith.constant 0 : i32
    return %arg0, %c0_i32 : i32, i32
  }
}

</mosaic_0001>

<bundles_post_ra>
// kernel: tpu_custom_call.1
= control target key start
LH: loop header
LB: loop body
LE: loop exit
PB: predicated region body
PF: predicated region fallthrough
CT: control target
= control target key end

     0   :  { %s10608_s0 = inlined_call_operand.hbm [shape: bf16[128,1024], index: 0, kind: input, shape index: {}]   ;;  %s10609_s1 = inlined_call_operand.hbm [shape: bf16[1024,1024], index: 1, kind: input, shape index: {}]   ;;  %s10610_s2 = inlined_call_operand.hbm [shape: f32[1,1024], index: 2, kind: input, shape index: {}]   ;;  %s10611_s3 = inlined_call_operand.hbm [shape: bf16[1024,256], index: 3, kind: input, shape index: {}]   ;;  %s10612_s4 = inlined_call_operand.hbm [shape: f32[1,256], index: 4, kind: input, shape index: {}]   ;;  %s10613_s5 = inlined_call_operand.vmem [shape: bf16[256,64], index: 5, kind: input, shape index: {}]   ;;  %s10614_s6 = inlined_call_operand.hbm [shape: f32[1,64], index: 6, kind: input, shape index: {}]   ;;  %s10615_s7 = inlined_call_operand.hbm [shape: f32[1,64], index: 7, kind: input, shape index: {}]   ;;  %s10616_s8 = inlined_call_operand.<no memory space> [shape: f32[1,1], index: 8, kind: input, shape index: {}]   ;;  %s10617_s9 = inlined_call_operand.vmem [shape: f32[128,1], index: 9, kind: output, shape index: {}]  }
   0x1   :  { %v14_v0 = vstv %s10616_s8 }
   0x2   :  { %15 = vst [vmem:[#allocation2] sm:$0x1] %v14_v0 }
   0x3   :  { %16 = vsyncpa [#allocation4], 0 }
   0x4   :  { %17 = vsyncpa [#allocation6], 0 }
   0x5   :  { %18 = vsyncpa [#allocation9], 0 }
   0x6   :  { %19 = vsyncpa [#allocation12], 0  ;;  %s9286_s11 = smov [#allocation5]   ;;  %s9287_s13 = smov [#allocation8]  }
   0x7   :  { %s37_s12 = sshll.u32 %s9286_s11, 4  ;;  %s59_s14 = sshll.u32 %s9287_s13, 4  ;;  %s38_s12 = int_to_ptr.vmem [resolvable:$true] %s37_s12  ;;  %s9350_s14 = int_to_ptr.vmem [resolvable:$true] %s59_s14 }
   0x8   :  { %s9124_s17 = scalar_lea.hbm %s10609_s1, 65536 }
   0x9   :  { %p9125_p0 = scmp.ne.s32.totalorder %s10609_s1, %s9124_s17  ;;  %p9128_p1 = scmp.lt.u32.totalorder %s9124_s17, %s10609_s1 }
   0xb   :  { %p9130_p2 = pnand %p9128_p1, %p9125_p0 }
   0xd   :  { %9133 = shalt.err (!%p9130_p2)
}
   0xe   :  { %s9134_s21 = scalar_lea.vmem %s38_s12, 65536  ;;  %p9139_p4 = scmp.lt.s32.totalorder %s38_s12, %s38_s12 }
   0xf   :  { %p9135_p3 = scmp.ne.s32.totalorder %s38_s12, %s9134_s21  ;;  %p9140_p5 = scmp.lt.s32.totalorder %s9134_s21, %s9134_s21 }
  0x11   :  { %p9141_p6 = por %p9140_p5, %p9139_p4 }
  0x13   :  { %p9142_p7 = pnand %p9141_p6, %p9135_p3 }
  0x15   :  { %9145 = shalt.err (!%p9142_p7)
}
  0x16   :  { %s9288_s22 = smov 512   ;;  %s9289_s23 = smov 32  }
  0x17   :  { %43 = dma.hbm_to_vmem [thread:$0]  %s10609_s1, 65536, %s38_s12, [#allocation6], %s9288_s22, %s9288_s22, %s9289_s23  }
  0x18   :  { %s9146_s28 = scalar_lea.hbm %s10611_s3, 16384 }
  0x19   :  { %p9147_p8 = scmp.ne.s32.totalorder %s10611_s3, %s9146_s28  ;;  %p9150_p9 = scmp.lt.u32.totalorder %s9146_s28, %s10611_s3 }
  0x1b   :  { %p9152_p10 = pnand %p9150_p9, %p9147_p8 }
  0x1d   :  { %9155 = shalt.err (!%p9152_p10)
}
  0x1e   :  { %s9156_s13 = scalar_lea.vmem %s9350_s14, 16384  ;;  %p9161_p12 = scmp.lt.s32.totalorder %s9350_s14, %s9350_s14 }
  0x1f   :  { %p9157_p11 = scmp.ne.s32.totalorder %s9350_s14, %s9156_s13  ;;  %p9162_p13 = scmp.lt.s32.totalorder %s9156_s13, %s9156_s13 }
  0x21   :  { %p9163_p0 = por %p9162_p13, %p9161_p12 }
  0x23   :  { %p9164_p1 = pnand %p9163_p0, %p9157_p11 }
  0x25   :  { %9167 = shalt.err (!%p9164_p1)
}
  0x26   :  { %s9290_s1 = smov 128   ;;  %s9291_s12 = smov 8  }
  0x27   :  { %65 = dma.hbm_to_vmem [thread:$0]  %s10611_s3, 16384, %s9350_s14, [#allocation9], %s9290_s1, %s9290_s1, %s9291_s12  }
  0x28   :  { %s9292_s17 = smov [#allocation11]   ;;  %s9293_s19 = smov [#allocation3]  }
  0x29   :  { %s84_s18 = sshll.u32 %s9292_s17, 4  ;;  %s25_s8 = sshll.u32 %s9293_s19, 4  ;;  %s85_s18 = int_to_ptr.vmem [resolvable:$true] %s84_s18  ;;  %s9384_s8 = int_to_ptr.vmem [resolvable:$true] %s25_s8 }
  0x2a   :  { %s9168_s24 = scalar_lea.hbm %s10614_s6, 16 }
  0x2b   :  { %p9169_p2 = scmp.ne.s32.totalorder %s10614_s6, %s9168_s24  ;;  %p9172_p3 = scmp.lt.u32.totalorder %s9168_s24, %s10614_s6 }
  0x2d   :  { %p9174_p4 = pnand %p9172_p3, %p9169_p2 }
  0x2f   :  { %9177 = shalt.err (!%p9174_p4)
}
  0x30   :  { %s9178_s3 = scalar_lea.vmem %s85_s18, 16  ;;  %s9182_s14 = scalar_lea.vmem %s85_s18, 32 }
  0x31   :  { %p9179_p5 = scmp.ne.s32.totalorder %s85_s18, %s9178_s3  ;;  %p9183_p6 = scmp.lt.s32.totalorder %s85_s18, %s85_s18 }
  0x32   :  { %p9184_p7 = scmp.lt.s32.totalorder %s9182_s14, %s9178_s3 }
  0x34   :  { %p9185_p8 = por %p9184_p7, %p9183_p6 }
  0x36   :  { %p9186_p9 = pnand %p9185_p8, %p9179_p5 }
  0x38   :  { %9189 = shalt.err (!%p9186_p9)
}
  0x39   :  { %87 = dma.hbm_to_vmem [thread:$0]  %s10614_s6, 16, %s85_s18, [#allocation12]  }
  0x3a   :  { %s9190_s13 = scalar_lea.hbm %s10608_s0, 8192 }
  0x3b   :  { %p9191_p10 = scmp.ne.s32.totalorder %s10608_s0, %s9190_s13  ;;  %p9194_p11 = scmp.lt.u32.totalorder %s9190_s13, %s10608_s0 }
  0x3d   :  { %p9196_p12 = pnand %p9194_p11, %p9191_p10 }
  0x3f   :  { %9199 = shalt.err (!%p9196_p12)
}
  0x40   :  { %s9200_s17 = scalar_lea.vmem %s9384_s8, 8192  ;;  %p9205_p0 = scmp.lt.s32.totalorder %s9384_s8, %s9384_s8 }
  0x41   :  { %p9201_p13 = scmp.ne.s32.totalorder %s9384_s8, %s9200_s17  ;;  %p9206_p1 = scmp.lt.s32.totalorder %s9200_s17, %s9200_s17 }
  0x43   :  { %p9207_p2 = por %p9206_p1, %p9205_p0 }
  0x45   :  { %p9208_p3 = pnand %p9207_p2, %p9201_p13 }
  0x47   :  { %9211 = shalt.err (!%p9208_p3)
}
  0x48   :  { %31 = dma.hbm_to_vmem [thread:$0]  %s10608_s0, 8192, %s9384_s8, [#allocation4], %s9288_s22, %s9288_s22, %s9289_s23  }
  0x49   :  { %s9294_s19 = smov [#allocation7]   ;;  %s9295_s21 = smov [#allocation10]  }
  0x4a   :  { %s50_s20 = sshll.u32 %s9294_s19, 4  ;;  %s72_s24 = sshll.u32 %s9295_s21, 4  ;;  %s51_s20 = int_to_ptr.vmem [resolvable:$true] %s50_s20  ;;  %s73_s24 = int_to_ptr.vmem [resolvable:$true] %s72_s24 }
  0x4b   :  { %s9212_s27 = scalar_lea.hbm %s10610_s2, 128 }
  0x4c   :  { %p9213_p4 = scmp.ne.s32.totalorder %s10610_s2, %s9212_s27  ;;  %p9216_p5 = scmp.lt.u32.totalorder %s9212_s27, %s10610_s2 }
  0x4e   :  { %p9218_p6 = pnand %p9216_p5, %p9213_p4 }
  0x50   :  { %9221 = shalt.err (!%p9218_p6)
}
  0x51   :  { %s9222_s0 = scalar_lea.vmem %s51_s20, 128  ;;  %p9227_p8 = scmp.lt.s32.totalorder %s51_s20, %s51_s20 }
  0x52   :  { %p9223_p7 = scmp.ne.s32.totalorder %s51_s20, %s9222_s0  ;;  %p9228_p9 = scmp.lt.s32.totalorder %s9222_s0, %s9222_s0 }
  0x54   :  { %p9229_p10 = por %p9228_p9, %p9227_p8 }
  0x56   :  { %p9230_p11 = pnand %p9229_p10, %p9223_p7 }
  0x58   :  { %9233 = shalt.err (!%p9230_p11)
}
  0x59   :  { %53 = dma.hbm_to_vmem [thread:$0]  %s10610_s2, 128, %s51_s20, [#allocation6]  }
  0x5a   :  { %s9234_s10 = scalar_lea.hbm %s10612_s4, 32 }
  0x5b   :  { %p9235_p12 = scmp.ne.s32.totalorder %s10612_s4, %s9234_s10  ;;  %p9238_p13 = scmp.lt.u32.totalorder %s9234_s10, %s10612_s4 }
  0x5d   :  { %p9240_p0 = pnand %p9238_p13, %p9235_p12 }
  0x5f   :  { %9243 = shalt.err (!%p9240_p0)
}
  0x60   :  { %s9244_s15 = scalar_lea.vmem %s73_s24, 32  ;;  %p9249_p2 = scmp.lt.s32.totalorder %s73_s24, %s73_s24 }
  0x61   :  { %p9245_p1 = scmp.ne.s32.totalorder %s73_s24, %s9244_s15  ;;  %p9250_p3 = scmp.lt.s32.totalorder %s9244_s15, %s9244_s15 }
  0x63   :  { %p9251_p4 = por %p9250_p3, %p9249_p2 }
  0x65   :  { %p9252_p5 = pnand %p9251_p4, %p9245_p1 }
  0x67   :  { %9255 = shalt.err (!%p9252_p5)
}
  0x68   :  { %75 = dma.hbm_to_vmem [thread:$0]  %s10612_s4, 32, %s73_s24, [#allocation9]  }
  0x69   :  { %s9296_s17 = smov [#allocation13]   ;;  %s9256_s20 = scalar_lea.hbm %s10615_s7, 16 }
  0x6a   :  { %s94_s6 = sshll.u32 %s9296_s17, 4  ;;  %p9257_p6 = scmp.ne.s32.totalorder %s10615_s7, %s9256_s20  ;;  %s95_s6 = int_to_ptr.vmem [resolvable:$true] %s94_s6 }
  0x6b   :  { %p9260_p7 = scmp.lt.u32.totalorder %s9256_s20, %s10615_s7 }
  0x6d   :  { %p9262_p8 = pnand %p9260_p7, %p9257_p6 }
  0x6f   :  { %9265 = shalt.err (!%p9262_p8)
}
  0x70   :  { %s9266_s28 = scalar_lea.vmem %s95_s6, 16  ;;  %s9270_s4 = scalar_lea.vmem %s95_s6, 32 }
  0x71   :  { %p9267_p9 = scmp.ne.s32.totalorder %s95_s6, %s9266_s28  ;;  %p9271_p10 = scmp.lt.s32.totalorder %s95_s6, %s95_s6 }
  0x72   :  { %p9272_p11 = scmp.lt.s32.totalorder %s9270_s4, %s9266_s28 }
  0x74   :  { %p9273_p12 = por %p9272_p11, %p9271_p10 }
  0x76   :  { %p9274_p13 = pnand %p9273_p12, %p9267_p9 }
  0x78   :  { %9277 = shalt.err (!%p9274_p13)
}
  0x79   :  { %97 = dma.hbm_to_vmem [thread:$0]  %s10615_s7, 16, %s95_s6, [#allocation12]  }
  0x7a   :  { %9278 = dma.done.wait [#allocation4], 8192  }
  0x7b   :  { %9279 = vsyncadd [#allocation4], 4294959104 }
  0x7c   :  { %9280 = dma.done.wait [#allocation6], 65664  }
  0x7d   :  { %9281 = vsyncadd [#allocation6], 4294901632 }
  0x7e   :  { %9282 = dma.done.wait [#allocation9], 16416  }
  0x7f   :  { %9283 = vsyncadd [#allocation9], 4294950880 }
  0x80   :  { %9284 = dma.done.wait [#allocation12], 32  }
  0x81   :  { %9285 = vsyncadd [#allocation12], 4294967264  ;;  %v186_v1 = vld [vmem:[#allocation5] sm:$0xff]  ;;  %v9462_v60 = vld [vmem:[#allocation3 + $0x8] sm:$0xff]  ;;  %vm7171_vm0 = vcmask 523264   ;;  %vm7339_vm1 = vcmask 7168  }
  0x82   :  { %v190_v2 = vld [vmem:[#allocation5 + $0x20] sm:$0xff]  ;;  %v9464_v61 = vld [vmem:[#allocation3 + $0x28] sm:$0xff] }
  0x83   :  { %v314_v3 = vld [vmem:[#allocation5 + $0x400] sm:$0xff]  ;;  %v7429_v4 = vcombine.high %v186_v1, %v190_v2  ;;  %v7428_v6 = vcombine.low %v186_v1, %v190_v2  ;;  %v9468_v0 = vcombine.high %v9462_v60, %v9464_v61 }
  0x84   :  { %v318_v5 = vld [vmem:[#allocation5 + $0x420] sm:$0xff] }
  0x85   :  { %v194_v7 = vld [vmem:[#allocation5 + $0x40] sm:$0xff]  ;;  %v7557_v9 = vcombine.high %v314_v3, %v318_v5  ;;  %v7556_v10 = vcombine.low %v314_v3, %v318_v5  ;;  %3620 = vmatprep.subr.bf16.mxu1 %v7429_v4  ;;  %10706 = vst [vmem:[#allocation18_spill] sm:$0xff] %v9468_v0  ;;  %3765 = vmatprep.mubr.bf16.mxu0 %v9468_v0 }
  0x86   :  { %v198_v8 = vld [vmem:[#allocation5 + $0x60] sm:$0xff]  ;;  %3621 = vmatpush1.bf16.msra.mxu1 %v7428_v6 }
  0x87   :  { %v7437_v11 = vcombine.high %v194_v7, %v198_v8  ;;  %v322_v12 = vld [vmem:[#allocation5 + $0x440] sm:$0xff]  ;;  %3733 = vmatprep.subr.bf16.mxu0 %v7557_v9  ;;  %v7436_v19 = vcombine.low %v194_v7, %v198_v8 }
  0x88   :  { %v326_v13 = vld [vmem:[#allocation5 + $0x460] sm:$0xff]  ;;  %3734 = vmatpush1.bf16.msra.mxu0 %v7556_v10 }
  0x89   :  { %v202_v14 = vld [vmem:[#allocation5 + $0x80] sm:$0xff]  ;;  %v7565_v15 = vcombine.high %v322_v12, %v326_v13  ;;  %3622 = vmatprep.subr.bf16.mxu1 %v7437_v11  ;;  %v7564_v20 = vcombine.low %v322_v12, %v326_v13 }
  0x8a   :  { %v206_v16 = vld [vmem:[#allocation5 + $0xa0] sm:$0xff]  ;;  %3623 = vmatpush1.bf16.msra.mxu1 %v7436_v19 }
  0x8b   :  { %v330_v17 = vld [vmem:[#allocation5 + $0x480] sm:$0xff]  ;;  %v7445_v21 = vcombine.high %v202_v14, %v206_v16  ;;  %3735 = vmatprep.subr.bf16.mxu0 %v7565_v15  ;;  %v7444_v27 = vcombine.low %v202_v14, %v206_v16 }
  0x8c   :  { %v334_v18 = vld [vmem:[#allocation5 + $0x4a0] sm:$0xff]  ;;  %3736 = vmatpush1.bf16.msra.mxu0 %v7564_v20 }
  0x8d   :  { %v7573_v22 = vcombine.high %v330_v17, %v334_v18  ;;  %v210_v23 = vld [vmem:[#allocation5 + $0xc0] sm:$0xff]  ;;  %3624 = vmatprep.subr.bf16.mxu1 %v7445_v21  ;;  %v7572_v28 = vcombine.low %v330_v17, %v334_v18 }
  0x8e   :  { %v214_v24 = vld [vmem:[#allocation5 + $0xe0] sm:$0xff]  ;;  %3625 = vmatpush1.bf16.msra.mxu1 %v7444_v27 }
  0x8f   :  { %v338_v25 = vld [vmem:[#allocation5 + $0x4c0] sm:$0xff]  ;;  %v7453_v29 = vcombine.high %v210_v23, %v214_v24  ;;  %3737 = vmatprep.subr.bf16.mxu0 %v7573_v22  ;;  %v7452_v35 = vcombine.low %v210_v23, %v214_v24 }
  0x90   :  { %v342_v26 = vld [vmem:[#allocation5 + $0x4e0] sm:$0xff]  ;;  %3738 = vmatpush1.bf16.msra.mxu0 %v7572_v28 }
  0x91   :  { %v7581_v30 = vcombine.high %v338_v25, %v342_v26  ;;  %v218_v31 = vld [vmem:[#allocation5 + $0x100] sm:$0xff]  ;;  %3626 = vmatprep.subr.bf16.mxu1 %v7453_v29  ;;  %v7580_v36 = vcombine.low %v338_v25, %v342_v26 }
  0x92   :  { %v222_v32 = vld [vmem:[#allocation5 + $0x120] sm:$0xff]  ;;  %3627 = vmatpush1.bf16.msra.mxu1 %v7452_v35 }
  0x93   :  { %v346_v33 = vld [vmem:[#allocation5 + $0x500] sm:$0xff]  ;;  %v7461_v37 = vcombine.high %v218_v31, %v222_v32  ;;  %3739 = vmatprep.subr.bf16.mxu0 %v7581_v30  ;;  %v7460_v43 = vcombine.low %v218_v31, %v222_v32 }
  0x94   :  { %v350_v34 = vld [vmem:[#allocation5 + $0x520] sm:$0xff]  ;;  %3740 = vmatpush1.bf16.msra.mxu0 %v7580_v36 }
  0x95   :  { %v7589_v38 = vcombine.high %v346_v33, %v350_v34  ;;  %v226_v39 = vld [vmem:[#allocation5 + $0x140] sm:$0xff]  ;;  %3628 = vmatprep.subr.bf16.mxu1 %v7461_v37  ;;  %v7588_v44 = vcombine.low %v346_v33, %v350_v34 }
  0x96   :  { %v230_v40 = vld [vmem:[#allocation5 + $0x160] sm:$0xff]  ;;  %3629 = vmatpush1.bf16.msra.mxu1 %v7460_v43 }
  0x97   :  { %v354_v41 = vld [vmem:[#allocation5 + $0x540] sm:$0xff]  ;;  %v7469_v45 = vcombine.high %v226_v39, %v230_v40  ;;  %3741 = vmatprep.subr.bf16.mxu0 %v7589_v38  ;;  %v7468_v51 = vcombine.low %v226_v39, %v230_v40 }
  0x98   :  { %v358_v42 = vld [vmem:[#allocation5 + $0x560] sm:$0xff]  ;;  %3742 = vmatpush1.bf16.msra.mxu0 %v7588_v44 }
  0x99   :  { %v7597_v46 = vcombine.high %v354_v41, %v358_v42  ;;  %v234_v47 = vld [vmem:[#allocation5 + $0x180] sm:$0xff]  ;;  %3630 = vmatprep.subr.bf16.mxu1 %v7469_v45  ;;  %v7596_v52 = vcombine.low %v354_v41, %v358_v42 }
  0x9a   :  { %v238_v48 = vld [vmem:[#allocation5 + $0x1a0] sm:$0xff]  ;;  %3631 = vmatpush1.bf16.msra.mxu1 %v7468_v51 }
  0x9b   :  { %v362_v49 = vld [vmem:[#allocation5 + $0x580] sm:$0xff]  ;;  %v7477_v53 = vcombine.high %v234_v47, %v238_v48  ;;  %3743 = vmatprep.subr.bf16.mxu0 %v7597_v46  ;;  %v7476_v1 = vcombine.low %v234_v47, %v238_v48 }
  0x9c   :  { %v366_v50 = vld [vmem:[#allocation5 + $0x5a0] sm:$0xff]  ;;  %3744 = vmatpush1.bf16.msra.mxu0 %v7596_v52 }
  0x9d   :  { %v242_v54 = vld [vmem:[#allocation5 + $0x1c0] sm:$0xff]  ;;  %v7605_v57 = vcombine.high %v362_v49, %v366_v50  ;;  %3632 = vmatprep.subr.bf16.mxu1 %v7477_v53  ;;  %v7604_v2 = vcombine.low %v362_v49, %v366_v50 }
  0x9e   :  { %v9454_v55 = vld [vmem:[#allocation3] sm:$0xff]  ;;  %3633 = vmatpush1.bf16.msra.mxu1 %v7476_v1 }
  0x9f   :  { %v9456_v56 = vld [vmem:[#allocation3 + $0x20] sm:$0xff]  ;;  %3745 = vmatprep.subr.bf16.mxu0 %v7605_v57 }
  0xa0   :  { %v246_v58 = vld [vmem:[#allocation5 + $0x1e0] sm:$0xff]  ;;  %v9460_v59 = vcombine.high %v9454_v55, %v9456_v56  ;;  %3746 = vmatpush1.bf16.msra.mxu0 %v7604_v2 }
  0xa1   :  { %v370_v62 = vld [vmem:[#allocation5 + $0x5c0] sm:$0xff]  ;;  %v7485_v3 = vcombine.high %v242_v54, %v246_v58  ;;  %v7484_v9 = vcombine.low %v242_v54, %v246_v58 }
  0xa2   :  { %v374_v63 = vld [vmem:[#allocation5 + $0x5e0] sm:$0xff]  ;;  %3652 = vmatprep.mubr.bf16.mxu1 %v9460_v59 }
  0xa3   :  { %v7613_v4 = vcombine.high %v370_v62, %v374_v63  ;;  %v250_v5 = vld [vmem:[#allocation5 + $0x200] sm:$0xff]  ;;  %3634 = vmatprep.subr.bf16.mxu1 %v7485_v3  ;;  %v7612_v10 = vcombine.low %v370_v62, %v374_v63 }
  0xa4   :  { %v254_v6 = vld [vmem:[#allocation5 + $0x220] sm:$0xff]  ;;  %3635 = vmatpush1.bf16.msra.mxu1 %v7484_v9 }
  0xa5   :  { %v378_v7 = vld [vmem:[#allocation5 + $0x600] sm:$0xff]  ;;  %v7493_v11 = vcombine.high %v250_v5, %v254_v6  ;;  %3747 = vmatprep.subr.bf16.mxu0 %v7613_v4  ;;  %v7492_v17 = vcombine.low %v250_v5, %v254_v6 }
  0xa6   :  { %v382_v8 = vld [vmem:[#allocation5 + $0x620] sm:$0xff]  ;;  %3748 = vmatpush1.bf16.msra.mxu0 %v7612_v10 }
  0xa7   :  { %v7621_v12 = vcombine.high %v378_v7, %v382_v8  ;;  %v258_v13 = vld [vmem:[#allocation5 + $0x240] sm:$0xff]  ;;  %3636 = vmatprep.subr.bf16.mxu1 %v7493_v11  ;;  %v7620_v18 = vcombine.low %v378_v7, %v382_v8  ;;  %v187_v11 = vld [vmem:[#allocation5 + $0x8] sm:$0xff] }
  0xa8   :  { %v262_v14 = vld [vmem:[#allocation5 + $0x260] sm:$0xff]  ;;  %3637 = vmatpush1.bf16.msra.mxu1 %v7492_v17 }
  0xa9   :  { %v386_v15 = vld [vmem:[#allocation5 + $0x640] sm:$0xff]  ;;  %v7501_v19 = vcombine.high %v258_v13, %v262_v14  ;;  %3749 = vmatprep.subr.bf16.mxu0 %v7621_v12  ;;  %v7500_v25 = vcombine.low %v258_v13, %v262_v14  ;;  %v191_v12 = vld [vmem:[#allocation5 + $0x28] sm:$0xff] }
  0xaa   :  { %v390_v16 = vld [vmem:[#allocation5 + $0x660] sm:$0xff]  ;;  %3750 = vmatpush1.bf16.msra.mxu0 %v7620_v18  ;;  %v7431_v17 = vcombine.high %v187_v11, %v191_v12 }
  0xab   :  { %v7629_v20 = vcombine.high %v386_v15, %v390_v16  ;;  %v266_v21 = vld [vmem:[#allocation5 + $0x280] sm:$0xff]  ;;  %3638 = vmatprep.subr.bf16.mxu1 %v7501_v19  ;;  %v7628_v26 = vcombine.low %v386_v15, %v390_v16 }
  0xac   :  { %v270_v22 = vld [vmem:[#allocation5 + $0x2a0] sm:$0xff]  ;;  %3639 = vmatpush1.bf16.msra.mxu1 %v7500_v25 }
  0xad   :  { %v394_v23 = vld [vmem:[#allocation5 + $0x680] sm:$0xff]  ;;  %v7509_v27 = vcombine.high %v266_v21, %v270_v22  ;;  %3751 = vmatprep.subr.bf16.mxu0 %v7629_v20  ;;  %v7508_v33 = vcombine.low %v266_v21, %v270_v22  ;;  %v195_v20 = vld [vmem:[#allocation5 + $0x48] sm:$0xff]  ;;  %v9474_v22 = vcombine.low %v9454_v55, %v9456_v56 }
  0xae   :  { %v398_v24 = vld [vmem:[#allocation5 + $0x6a0] sm:$0xff]  ;;  %3752 = vmatpush1.bf16.msra.mxu0 %v7628_v26  ;;  %v199_v21 = vld [vmem:[#allocation5 + $0x68] sm:$0xff]  ;;  %v9478_v26 = vcombine.low %v9462_v60, %v9464_v61 }
  0xaf   :  { %v7637_v28 = vcombine.high %v394_v23, %v398_v24  ;;  %v274_v29 = vld [vmem:[#allocation5 + $0x2c0] sm:$0xff]  ;;  %3640 = vmatprep.subr.bf16.mxu1 %v7509_v27  ;;  %v7636_v34 = vcombine.low %v394_v23, %v398_v24  ;;  %v7430_v27 = vcombine.low %v187_v11, %v191_v12  ;;  %v203_v55 = vld [vmem:[#allocation5 + $0x88] sm:$0xff]  ;;  %v7438_v61 = vcombine.low %v195_v20, %v199_v21 }
  0xb0   :  { %v278_v30 = vld [vmem:[#allocation5 + $0x2e0] sm:$0xff]  ;;  %3641 = vmatpush1.bf16.msra.mxu1 %v7508_v33  ;;  %10707 = vst [vmem:[#allocation19_spill] sm:$0xff] %v9478_v26  ;;  %v207_v56 = vld [vmem:[#allocation5 + $0xa8] sm:$0xff] }
  0xb1   :  { %v402_v31 = vld [vmem:[#allocation5 + $0x6c0] sm:$0xff]  ;;  %v7517_v35 = vcombine.high %v274_v29, %v278_v30  ;;  %3753 = vmatprep.subr.bf16.mxu0 %v7637_v28  ;;  %v7516_v41 = vcombine.low %v274_v29, %v278_v30  ;;  %v131_v28 = vld [vmem:[#allocation3 + $0x48] sm:$0xff] }
  0xb2   :  { %v406_v32 = vld [vmem:[#allocation5 + $0x6e0] sm:$0xff]  ;;  %3754 = vmatpush1.bf16.msra.mxu0 %v7636_v34  ;;  %v135_v29 = vld [vmem:[#allocation3 + $0x68] sm:$0xff] }
  0xb3   :  { %v7645_v36 = vcombine.high %v402_v31, %v406_v32  ;;  %v282_v37 = vld [vmem:[#allocation5 + $0x300] sm:$0xff]  ;;  %3642 = vmatprep.subr.bf16.mxu1 %v7517_v35  ;;  %v7644_v42 = vcombine.low %v402_v31, %v406_v32  ;;  %v7439_v31 = vcombine.high %v195_v20, %v199_v21  ;;  %v9483_v34 = vcombine.high %v131_v28, %v135_v29  ;;  %v235_v20 = vld [vmem:[#allocation5 + $0x188] sm:$0xff] }
  0xb4   :  { %v286_v38 = vld [vmem:[#allocation5 + $0x320] sm:$0xff]  ;;  %3643 = vmatpush1.bf16.msra.mxu1 %v7516_v41  ;;  %v215_v41 = vld [vmem:[#allocation5 + $0xe8] sm:$0xff] }
  0xb5   :  { %v410_v39 = vld [vmem:[#allocation5 + $0x700] sm:$0xff]  ;;  %v7525_v43 = vcombine.high %v282_v37, %v286_v38  ;;  %3755 = vmatprep.subr.bf16.mxu0 %v7645_v36  ;;  %v7524_v49 = vcombine.low %v282_v37, %v286_v38  ;;  %10708 = vst [vmem:[#allocation20_spill] sm:$0xff] %v9483_v34  ;;  %v7447_v37 = vcombine.high %v203_v55, %v207_v56  ;;  %v239_v21 = vld [vmem:[#allocation5 + $0x1a8] sm:$0xff] }
  0xb6   :  { %v414_v40 = vld [vmem:[#allocation5 + $0x720] sm:$0xff]  ;;  %3756 = vmatpush1.bf16.msra.mxu0 %v7644_v42 }
  0xb7   :  { %v7653_v44 = vcombine.high %v410_v39, %v414_v40  ;;  %v290_v45 = vld [vmem:[#allocation5 + $0x340] sm:$0xff]  ;;  %3644 = vmatprep.subr.bf16.mxu1 %v7525_v43  ;;  %v7652_v50 = vcombine.low %v410_v39, %v414_v40  ;;  %v211_v40 = vld [vmem:[#allocation5 + $0xc8] sm:$0xff] }
  0xb8   :  { %v294_v46 = vld [vmem:[#allocation5 + $0x360] sm:$0xff]  ;;  %3645 = vmatpush1.bf16.msra.mxu1 %v7524_v49  ;;  %v143_v49 = vld [vmem:[#allocation3 + $0xa8] sm:$0xff] }
  0xb9   :  { %v418_v47 = vld [vmem:[#allocation5 + $0x740] sm:$0xff]  ;;  %v7533_v51 = vcombine.high %v290_v45, %v294_v46  ;;  %3757 = vmatprep.subr.bf16.mxu0 %v7653_v44  ;;  %v7532_v62 = vcombine.low %v290_v45, %v294_v46  ;;  %v9490_v46 = vcombine.low %v131_v28, %v135_v29  ;;  %v7479_v29 = vcombine.high %v235_v20, %v239_v21 }
  0xba   :  { %v422_v48 = vld [vmem:[#allocation5 + $0x760] sm:$0xff]  ;;  %3758 = vmatpush1.bf16.msra.mxu0 %v7652_v50 }
  0xbb   :  { %v7661_v52 = vcombine.high %v418_v47, %v422_v48  ;;  %v298_v53 = vld [vmem:[#allocation5 + $0x380] sm:$0xff]  ;;  %3646 = vmatprep.subr.bf16.mxu1 %v7533_v51  ;;  %v7660_v63 = vcombine.low %v418_v47, %v422_v48  ;;  %10709 = vst [vmem:[#allocation21_spill] sm:$0xff] %v9490_v46  ;;  %v7446_v47 = vcombine.low %v203_v55, %v207_v56  ;;  %v139_v48 = vld [vmem:[#allocation3 + $0x88] sm:$0xff] }
  0xbc   :  { %v302_v54 = vld [vmem:[#allocation5 + $0x3a0] sm:$0xff]  ;;  %3647 = vmatpush1.bf16.msra.mxu1 %v7532_v62  ;;  %v7455_v51 = vcombine.high %v211_v40, %v215_v41  ;;  %v9502_v12 = vcombine.low %v139_v48, %v143_v49  ;;  %v247_v55 = vld [vmem:[#allocation5 + $0x1e8] sm:$0xff] }
  0xbd   :  { %v426_v57 = vld [vmem:[#allocation5 + $0x780] sm:$0xff]  ;;  %v7541_v1 = vcombine.high %v298_v53, %v302_v54  ;;  %3759 = vmatprep.subr.bf16.mxu0 %v7661_v52  ;;  %v7540_v7 = vcombine.low %v298_v53, %v302_v54  ;;  %v219_v54 = vld [vmem:[#allocation5 + $0x108] sm:$0xff] }
  0xbe   :  { %v430_v58 = vld [vmem:[#allocation5 + $0x7a0] sm:$0xff]  ;;  %3760 = vmatpush1.bf16.msra.mxu0 %v7660_v63  ;;  %10711 = vst [vmem:[#allocation23_spill] sm:$0xff] %v9502_v12 }
  0xbf   :  { %v7669_v2 = vcombine.high %v426_v57, %v430_v58  ;;  %v306_v3 = vld [vmem:[#allocation5 + $0x3c0] sm:$0xff]  ;;  %3648 = vmatprep.subr.bf16.mxu1 %v7541_v1  ;;  %v7668_v8 = vcombine.low %v426_v57, %v430_v58  ;;  %v223_v57 = vld [vmem:[#allocation5 + $0x128] sm:$0xff]  ;;  %v9495_v58 = vcombine.high %v139_v48, %v143_v49  ;;  %v7454_v1 = vcombine.low %v211_v40, %v215_v41 }
  0xc0   :  { %v310_v4 = vld [vmem:[#allocation5 + $0x3e0] sm:$0xff]  ;;  %3649 = vmatpush1.bf16.msra.mxu1 %v7540_v7  ;;  %v231_v7 = vld [vmem:[#allocation5 + $0x168] sm:$0xff] }
  0xc1   :  { %v434_v5 = vld [vmem:[#allocation5 + $0x7c0] sm:$0xff]  ;;  %v7549_v9 = vcombine.high %v306_v3, %v310_v4  ;;  %3761 = vmatprep.subr.bf16.mxu0 %v7669_v2  ;;  %v7548_v15 = vcombine.low %v306_v3, %v310_v4  ;;  %10710 = vst [vmem:[#allocation22_spill] sm:$0xff] %v9495_v58  ;;  %v7463_v3 = vcombine.high %v219_v54, %v223_v57 }
  0xc2   :  { %v438_v6 = vld [vmem:[#allocation5 + $0x7e0] sm:$0xff]  ;;  %3762 = vmatpush1.bf16.msra.mxu0 %v7668_v8 }
  0xc3   :  { %v7677_v10 = vcombine.high %v434_v5, %v438_v6  ;;  %v442_v13 = vld [vmem:[#allocation5 + $0x800] sm:$0xff]  ;;  %3650 = vmatprep.subr.bf16.mxu1 %v7549_v9  ;;  %v7676_v16 = vcombine.low %v434_v5, %v438_v6  ;;  %v227_v6 = vld [vmem:[#allocation5 + $0x148] sm:$0xff] }
  0xc4   :  { %v446_v14 = vld [vmem:[#allocation5 + $0x820] sm:$0xff]  ;;  %3651 = vmatpush1.bf16.msra.mxu1 %v7548_v15  ;;  %v151_v15 = vld [vmem:[#allocation3 + $0xe8] sm:$0xff] }
  0xc5   :  { %3763 = vmatprep.subr.bf16.mxu0 %v7677_v10  ;;  %v7685_v18 = vcombine.high %v442_v13, %v446_v14  ;;  %v450_v19 = vld [vmem:[#allocation5 + $0x840] sm:$0xff]  ;;  %v7684_v30 = vcombine.low %v442_v13, %v446_v14  ;;  %4072 = vmatprep.subr.bf16.mxu1 %v7431_v17  ;;  %v7462_v13 = vcombine.low %v219_v54, %v223_v57  ;;  %v147_v14 = vld [vmem:[#allocation3 + $0xc8] sm:$0xff] }
  0xc6   :  { %v454_v23 = vld [vmem:[#allocation5 + $0x860] sm:$0xff]  ;;  %3764 = vmatpush1.bf16.msra.mxu0 %v7676_v16  ;;  %v7471_v17 = vcombine.high %v227_v6, %v231_v7 }
  0xc7   :  { %v130_v24 = vld [vmem:[#allocation3 + $0x40] sm:$0xff]  ;;  %3846 = vmatprep.subr.bf16.mxu0 %v7685_v18  ;;  %v7693_v32 = vcombine.high %v450_v19, %v454_v23  ;;  %3653 = vmatmul.mubr.bf16.vlgmr.msra.gmra.mrb[0].mxu1 %v9474_v22  ;;  %v7692_v36 = vcombine.low %v450_v19, %v454_v23  ;;  %v9507_v23 = vcombine.high %v147_v14, %v151_v15 }
  0xc8   :  { %v134_v25 = vld [vmem:[#allocation3 + $0x60] sm:$0xff]  ;;  %4073 = vmatpush1.bf16.msra.mxu1 %v7430_v27  ;;  %v7470_v27 = vcombine.low %v227_v6, %v231_v7 }
  0xc9   :  { %v9480_v33 = vcombine.high %v130_v24, %v134_v25  ;;  %v458_v35 = vld [vmem:[#allocation5 + $0x880] sm:$0xff]  ;;  %3766 = vmatmul.mubr.bf16.vlgmr.msra.gmra.mrb[0].mxu0 %v9478_v26  ;;  %4074 = vmatprep.subr.bf16.mxu1 %v7439_v31  ;;  %v9488_v42 = vcombine.low %v130_v24, %v134_v25  ;;  %10713 = vst [vmem:[#allocation25_spill] sm:$0xff] %v9507_v23 }
  0xca   :  { %v462_v60 = vld [vmem:[#allocation5 + $0x8a0] sm:$0xff]  ;;  %3847 = vmatpush1.bf16.msra.mxu0 %v7684_v30  ;;  %3775 = vmatprep.mubr.bf16.mxu0 %v9483_v34 }
  0xcb   :  { %3848 = vmatprep.subr.bf16.mxu0 %v7693_v32  ;;  %3662 = vmatprep.mubr.bf16.mxu1 %v9480_v33  ;;  %v7701_v38 = vcombine.high %v458_v35, %v462_v60  ;;  %v466_v39 = vld [vmem:[#allocation5 + $0x8c0] sm:$0xff]  ;;  %v7700_v50 = vcombine.low %v458_v35, %v462_v60  ;;  %v243_v32 = vld [vmem:[#allocation5 + $0x1c8] sm:$0xff] }
  0xcc   :  { %v470_v43 = vld [vmem:[#allocation5 + $0x8e0] sm:$0xff]  ;;  %4075 = vmatpush1.bf16.msra.mxu1 %v7438_v61  ;;  %v7487_v41 = vcombine.high %v243_v32, %v247_v55 }
  0xcd   :  { %v138_v44 = vld [vmem:[#allocation3 + $0x80] sm:$0xff]  ;;  %4076 = vmatprep.subr.bf16.mxu1 %v7447_v37  ;;  %v7709_v52 = vcombine.high %v466_v39, %v470_v43  ;;  %v7708_v2 = vcombine.low %v466_v39, %v470_v43  ;;  %v7478_v37 = vcombine.low %v235_v20, %v239_v21  ;;  %v159_v39 = vld [vmem:[#allocation3 + $0x128] sm:$0xff] }
  0xce   :  { %v142_v45 = vld [vmem:[#allocation3 + $0xa0] sm:$0xff]  ;;  %3849 = vmatpush1.bf16.msra.mxu0 %v7692_v36  ;;  %v9514_v36 = vcombine.low %v147_v14, %v151_v15  ;;  %v271_v20 = vld [vmem:[#allocation5 + $0x2a8] sm:$0xff] }
  0xcf   :  { %3850 = vmatprep.subr.bf16.mxu0 %v7701_v38  ;;  %v9492_v53 = vcombine.high %v138_v44, %v142_v45  ;;  %3663 = vmatmul.mubr.bf16.gmra.mrb[4].mxu1 %v9488_v42  ;;  %v474_v62 = vld [vmem:[#allocation5 + $0x900] sm:$0xff]  ;;  %v9500_v8 = vcombine.low %v138_v44, %v142_v45  ;;  %v155_v38 = vld [vmem:[#allocation3 + $0x108] sm:$0xff] }
  0xd0   :  { %v478_v63 = vld [vmem:[#allocation5 + $0x920] sm:$0xff]  ;;  %4077 = vmatpush1.bf16.msra.mxu1 %v7446_v47  ;;  %10715 = vst [vmem:[#allocation27_spill] sm:$0xff] %v9514_v36  ;;  %v251_v45 = vld [vmem:[#allocation5 + $0x208] sm:$0xff]  ;;  %v9519_v48 = vcombine.high %v155_v38, %v159_v39  ;;  %v9526_v6 = vcombine.low %v155_v38, %v159_v39 }
  0xd1   :  { %3776 = vmatmul.mubr.bf16.gmra.mrb[4].mxu0 %v9490_v46  ;;  %4078 = vmatprep.subr.bf16.mxu1 %v7455_v51  ;;  %v7717_v4 = vcombine.high %v474_v62, %v478_v63  ;;  %v482_v5 = vld [vmem:[#allocation5 + $0x940] sm:$0xff]  ;;  %v7716_v16 = vcombine.low %v474_v62, %v478_v63  ;;  %v255_v47 = vld [vmem:[#allocation5 + $0x228] sm:$0xff]  ;;  %v7486_v51 = vcombine.low %v243_v32, %v247_v55 }
  0xd2   :  { %3851 = vmatpush1.bf16.msra.mxu0 %v7700_v50  ;;  %3672 = vmatprep.mubr.bf16.mxu1 %v9492_v53  ;;  %v486_v9 = vld [vmem:[#allocation5 + $0x960] sm:$0xff]  ;;  %10717 = vst [vmem:[#allocation29_spill] sm:$0xff] %v9519_v48  ;;  %v7495_v54 = vcombine.high %v251_v45, %v255_v47  ;;  %v259_v63 = vld [vmem:[#allocation5 + $0x248] sm:$0xff]  ;;  %10719 = vst [vmem:[#allocation31_spill] sm:$0xff] %v9526_v6  ;;  %v7494_v7 = vcombine.low %v251_v45, %v255_v47 }
  0xd3   :  { %3852 = vmatprep.subr.bf16.mxu0 %v7709_v52  ;;  %3785 = vmatprep.mubr.bf16.mxu0 %v9495_v58  ;;  %v146_v10 = vld [vmem:[#allocation3 + $0xc0] sm:$0xff]  ;;  %v7725_v18 = vcombine.high %v482_v5, %v486_v9  ;;  %v7724_v28 = vcombine.low %v482_v5, %v486_v9  ;;  %v163_v9 = vld [vmem:[#allocation3 + $0x148] sm:$0xff] }
  0xd4   :  { %v150_v11 = vld [vmem:[#allocation3 + $0xe0] sm:$0xff]  ;;  %4079 = vmatpush1.bf16.msra.mxu1 %v7454_v1  ;;  %v263_v1 = vld [vmem:[#allocation5 + $0x268] sm:$0xff] }
  0xd5   :  { %4080 = vmatprep.subr.bf16.mxu1 %v7463_v3  ;;  %v9504_v19 = vcombine.high %v146_v10, %v150_v11  ;;  %v490_v24 = vld [vmem:[#allocation5 + $0x980] sm:$0xff]  ;;  %v9512_v56 = vcombine.low %v146_v10, %v150_v11  ;;  %v167_v10 = vld [vmem:[#allocation3 + $0x168] sm:$0xff] }
  0xd6   :  { %3853 = vmatpush1.bf16.msra.mxu0 %v7708_v2  ;;  %v494_v25 = vld [vmem:[#allocation5 + $0x9a0] sm:$0xff]  ;;  %v9531_v21 = vcombine.high %v163_v9, %v167_v10  ;;  %v171_v38 = vld [vmem:[#allocation3 + $0x188] sm:$0xff] }
  0xd7   :  { %3854 = vmatprep.subr.bf16.mxu0 %v7717_v4  ;;  %10712 = vst [vmem:[#allocation24_spill] sm:$0xff] %v9504_v19  ;;  %3673 = vmatmul.mubr.bf16.gmra.mrb[8].mxu1 %v9500_v8  ;;  %v7733_v30 = vcombine.high %v490_v24, %v494_v25  ;;  %v498_v31 = vld [vmem:[#allocation5 + $0x9c0] sm:$0xff]  ;;  %10714 = vst [vmem:[#allocation26_spill] sm:$0xff] %v9512_v56  ;;  %v7732_v40 = vcombine.low %v490_v24, %v494_v25  ;;  %v175_v39 = vld [vmem:[#allocation3 + $0x1a8] sm:$0xff] }
  0xd8   :  { %4081 = vmatpush1.bf16.msra.mxu1 %v7462_v13  ;;  %3682 = vmatprep.mubr.bf16.mxu1 %v9504_v19  ;;  %v502_v35 = vld [vmem:[#allocation5 + $0x9e0] sm:$0xff]  ;;  %v7503_v13 = vcombine.high %v259_v63, %v263_v1  ;;  %10721 = vst [vmem:[#allocation33_spill] sm:$0xff] %v9531_v21  ;;  %v7502_v24 = vcombine.low %v259_v63, %v263_v1  ;;  %v283_v47 = vld [vmem:[#allocation5 + $0x308] sm:$0xff] }
  0xd9   :  { %3786 = vmatmul.mubr.bf16.gmra.mrb[8].mxu0 %v9502_v12  ;;  %4082 = vmatprep.subr.bf16.mxu1 %v7471_v17  ;;  %v154_v60 = vld [vmem:[#allocation3 + $0x100] sm:$0xff]  ;;  %v7741_v43 = vcombine.high %v498_v31, %v502_v35  ;;  %v7740_v52 = vcombine.low %v498_v31, %v502_v35  ;;  %v279_v31 = vld [vmem:[#allocation5 + $0x2e8] sm:$0xff] }
  0xda   :  { %3855 = vmatpush1.bf16.msra.mxu0 %v7716_v16  ;;  %3795 = vmatprep.mubr.bf16.mxu0 %v9507_v23  ;;  %v158_v61 = vld [vmem:[#allocation3 + $0x120] sm:$0xff]  ;;  %v267_v16 = vld [vmem:[#allocation5 + $0x288] sm:$0xff] }
  0xdb   :  { %3856 = vmatprep.subr.bf16.mxu0 %v7725_v18  ;;  %v9516_v44 = vcombine.high %v154_v60, %v158_v61  ;;  %v506_v49 = vld [vmem:[#allocation5 + $0xa00] sm:$0xff]  ;;  %v9524_v5 = vcombine.low %v154_v60, %v158_v61  ;;  %v9538_v61 = vcombine.low %v163_v9, %v167_v10 }
  0xdc   :  { %4083 = vmatpush1.bf16.msra.mxu1 %v7470_v27  ;;  %v510_v50 = vld [vmem:[#allocation5 + $0xa20] sm:$0xff]  ;;  %v7511_v27 = vcombine.high %v267_v16, %v271_v20 }
  0xdd   :  { %4084 = vmatprep.subr.bf16.mxu1 %v7479_v29  ;;  %10716 = vst [vmem:[#allocation28_spill] sm:$0xff] %v9516_v44  ;;  %v514_v57 = vld [vmem:[#allocation5 + $0xa40] sm:$0xff]  ;;  %v7749_v3 = vcombine.high %v506_v49, %v510_v50  ;;  %10718 = vst [vmem:[#allocation30_spill] sm:$0xff] %v9524_v5  ;;  %v7748_v11 = vcombine.low %v506_v49, %v510_v50 }
  0xde   :  { %3857 = vmatpush1.bf16.msra.mxu0 %v7724_v28  ;;  %v518_v62 = vld [vmem:[#allocation5 + $0xa60] sm:$0xff]  ;;  %10723 = vst [vmem:[#allocation35_spill] sm:$0xff] %v9538_v61 }
  0xdf   :  { %3858 = vmatprep.subr.bf16.mxu0 %v7733_v30  ;;  %3683 = vmatmul.mubr.bf16.gmra.mrb[12].mxu1 %v9512_v56  ;;  %v162_v2 = vld [vmem:[#allocation3 + $0x140] sm:$0xff]  ;;  %v7757_v17 = vcombine.high %v514_v57, %v518_v62  ;;  %v7756_v25 = vcombine.low %v514_v57, %v518_v62  ;;  %v275_v30 = vld [vmem:[#allocation5 + $0x2c8] sm:$0xff] }
  0xe0   :  { %4085 = vmatpush1.bf16.msra.mxu1 %v7478_v37  ;;  %3692 = vmatprep.mubr.bf16.mxu1 %v9516_v44  ;;  %v166_v4 = vld [vmem:[#allocation3 + $0x160] sm:$0xff]  ;;  %v7510_v37 = vcombine.low %v267_v16, %v271_v20 }
  0xe1   :  { %3796 = vmatmul.mubr.bf16.gmra.mrb[12].mxu0 %v9514_v36  ;;  %4086 = vmatprep.subr.bf16.mxu1 %v7487_v41  ;;  %v522_v14 = vld [vmem:[#allocation5 + $0xa80] sm:$0xff]  ;;  %v9528_v18 = vcombine.high %v162_v2, %v166_v4  ;;  %v9536_v60 = vcombine.low %v162_v2, %v166_v4  ;;  %v7519_v41 = vcombine.high %v275_v30, %v279_v31  ;;  %v291_v2 = vld [vmem:[#allocation5 + $0x348] sm:$0xff] }
  0xe2   :  { %3859 = vmatpush1.bf16.msra.mxu0 %v7732_v40  ;;  %3805 = vmatprep.mubr.bf16.mxu0 %v9519_v48  ;;  %v526_v15 = vld [vmem:[#allocation5 + $0xaa0] sm:$0xff] }
  0xe3   :  { %3860 = vmatprep.subr.bf16.mxu0 %v7741_v43  ;;  %10720 = vst [vmem:[#allocation32_spill] sm:$0xff] %v9528_v18  ;;  %v530_v28 = vld [vmem:[#allocation5 + $0xac0] sm:$0xff]  ;;  %v7765_v55 = vcombine.high %v522_v14, %v526_v15  ;;  %10722 = vst [vmem:[#allocation34_spill] sm:$0xff] %v9536_v60  ;;  %v7764_v40 = vcombine.low %v522_v14, %v526_v15  ;;  %v179_v14 = vld [vmem:[#allocation3 + $0x1c8] sm:$0xff] }
  0xe4   :  { %4087 = vmatpush1.bf16.msra.mxu1 %v7486_v51  ;;  %v534_v29 = vld [vmem:[#allocation5 + $0xae0] sm:$0xff]  ;;  %v287_v51 = vld [vmem:[#allocation5 + $0x328] sm:$0xff] }
  0xe5   :  { %4088 = vmatprep.subr.bf16.mxu1 %v7495_v54  ;;  %v170_v32 = vld [vmem:[#allocation3 + $0x180] sm:$0xff]  ;;  %v7773_v49 = vcombine.high %v530_v28, %v534_v29  ;;  %v7518_v54 = vcombine.low %v275_v30, %v279_v31  ;;  %v7772_v57 = vcombine.low %v530_v28, %v534_v29  ;;  %v7527_v62 = vcombine.high %v283_v47, %v287_v51  ;;  %v183_v15 = vld [vmem:[#allocation3 + $0x1e8] sm:$0xff] }
  0xe6   :  { %3861 = vmatpush1.bf16.msra.mxu0 %v7740_v52  ;;  %v174_v35 = vld [vmem:[#allocation3 + $0x1a0] sm:$0xff]  ;;  %v9543_v52 = vcombine.high %v171_v38, %v175_v39  ;;  %v303_v29 = vld [vmem:[#allocation5 + $0x3a8] sm:$0xff]  ;;  %v9555_v30 = vcombine.high %v179_v14, %v183_v15 }
  0xe7   :  { %3862 = vmatprep.subr.bf16.mxu0 %v7749_v3  ;;  %3693 = vmatmul.mubr.bf16.gmra.mrb[16].mxu1 %v9524_v5  ;;  %v538_v43 = vld [vmem:[#allocation5 + $0xb00] sm:$0xff]  ;;  %v9540_v50 = vcombine.high %v170_v32, %v174_v35  ;;  %v295_v3 = vld [vmem:[#allocation5 + $0x368] sm:$0xff]  ;;  %v9548_v10 = vcombine.low %v170_v32, %v174_v35 }
  0xe8   :  { %4089 = vmatpush1.bf16.msra.mxu1 %v7494_v7  ;;  %3702 = vmatprep.mubr.bf16.mxu1 %v9528_v18  ;;  %v542_v45 = vld [vmem:[#allocation5 + $0xb20] sm:$0xff]  ;;  %10725 = vst [vmem:[#allocation37_spill] sm:$0xff] %v9543_v52  ;;  %v7534_v31 = vcombine.low %v291_v2, %v295_v3 }
  0xe9   :  { %3806 = vmatmul.mubr.bf16.gmra.mrb[16].mxu0 %v9526_v6  ;;  %4090 = vmatprep.subr.bf16.mxu1 %v7503_v13  ;;  %10724 = vst [vmem:[#allocation36_spill] sm:$0xff] %v9540_v50  ;;  %v546_v63 = vld [vmem:[#allocation5 + $0xb40] sm:$0xff]  ;;  %v7781_v7 = vcombine.high %v538_v43, %v542_v45  ;;  %10726 = vst [vmem:[#allocation38_spill] sm:$0xff] %v9548_v10  ;;  %v7526_v13 = vcombine.low %v283_v47, %v287_v51 }
  0xea   :  { %3863 = vmatpush1.bf16.msra.mxu0 %v7748_v11  ;;  %3815 = vmatprep.mubr.bf16.mxu0 %v9531_v21  ;;  %v550_v1 = vld [vmem:[#allocation5 + $0xb60] sm:$0xff]  ;;  %v9550_v11 = vcombine.low %v171_v38, %v175_v39  ;;  %v7780_v16 = vcombine.low %v538_v43, %v542_v45  ;;  %v307_v38 = vld [vmem:[#allocation5 + $0x3c8] sm:$0xff]  ;;  %v128_v43 = vld [vmem:[#allocation3 + $0x30] sm:$0xff]  ;;  %v9562_v47 = vcombine.low %v179_v14, %v183_v15 }
  0xeb   :  { %3864 = vmatprep.subr.bf16.mxu0 %v7757_v17  ;;  %v178_v4 = vld [vmem:[#allocation3 + $0x1c0] sm:$0xff]  ;;  %v7535_v17 = vcombine.high %v291_v2, %v295_v3  ;;  %v7788_v32 = vcombine.low %v546_v63, %v550_v1  ;;  %v311_v39 = vld [vmem:[#allocation5 + $0x3e8] sm:$0xff] }
  0xec   :  { %4091 = vmatpush1.bf16.msra.mxu1 %v7502_v24  ;;  %v182_v9 = vld [vmem:[#allocation3 + $0x1e0] sm:$0xff]  ;;  %v319_v3 = vld [vmem:[#allocation5 + $0x428] sm:$0xff] }
  0xed   :  { %4092 = vmatprep.subr.bf16.mxu1 %v7511_v27  ;;  %v554_v20 = vld [vmem:[#allocation5 + $0xb80] sm:$0xff]  ;;  %v7789_v27 = vcombine.high %v546_v63, %v550_v1  ;;  %v9552_v28 = vcombine.high %v178_v4, %v182_v9  ;;  %v9560_v45 = vcombine.low %v178_v4, %v182_v9  ;;  %v315_v63 = vld [vmem:[#allocation5 + $0x408] sm:$0xff]  ;;  %v7550_v4 = vcombine.low %v307_v38, %v311_v39 }
  0xee   :  { %3865 = vmatpush1.bf16.msra.mxu0 %v7756_v25  ;;  %v558_v24 = vld [vmem:[#allocation5 + $0xba0] sm:$0xff]  ;;  %v299_v25 = vld [vmem:[#allocation5 + $0x388] sm:$0xff]  ;;  %v7559_v9 = vcombine.high %v315_v63, %v319_v3 }
  0xef   :  { %3866 = vmatprep.subr.bf16.mxu0 %v7765_v55  ;;  %3703 = vmatmul.mubr.bf16.gmra.mrb[20].mxu1 %v9536_v60  ;;  %10727 = vst [vmem:[#allocation39_spill] sm:$0xff] %v9552_v28  ;;  %v7543_v55 = vcombine.high %v299_v25, %v303_v29  ;;  %v562_v35 = vld [vmem:[#allocation5 + $0xbc0] sm:$0xff]  ;;  %10728 = vst [vmem:[#allocation40_spill] sm:$0xff] %v9560_v45  ;;  %v7796_v51 = vcombine.low %v554_v20, %v558_v24  ;;  %v323_v15 = vld [vmem:[#allocation5 + $0x448] sm:$0xff] }
  0xf0   :  { %4093 = vmatpush1.bf16.msra.mxu1 %v7510_v37  ;;  %3712 = vmatprep.mubr.bf16.mxu1 %v9540_v50  ;;  %v566_v37 = vld [vmem:[#allocation5 + $0xbe0] sm:$0xff] }
  0xf1   :  { %3816 = vmatmul.mubr.bf16.gmra.mrb[20].mxu0 %v9538_v61  ;;  %4094 = vmatprep.subr.bf16.mxu1 %v7519_v41  ;;  %v7797_v41 = vcombine.high %v554_v20, %v558_v24  ;;  %v7805_v1 = vcombine.high %v562_v35, %v566_v37  ;;  %v582_v14 = vld [vmem:[#allocation5 + $0xc60] sm:$0xff]  ;;  %v136_v24 = vld [vmem:[#allocation3 + $0x70] sm:$0xff] }
  0xf2   :  { %3867 = vmatpush1.bf16.msra.mxu0 %v7764_v40  ;;  %3825 = vmatprep.mubr.bf16.mxu0 %v9543_v52  ;;  %v124_v40 = vld [vmem:[#allocation3 + $0x10] sm:$0xff] }
  0xf3   :  { %3868 = vmatprep.subr.bf16.mxu0 %v7773_v49  ;;  %v7542_v49 = vcombine.low %v299_v25, %v303_v29  ;;  %v9564_v2 = vcombine.high %v124_v40, %v128_v43  ;;  %v9570_v25 = vcombine.low %v124_v40, %v128_v43 }
  0xf4   :  { %4095 = vmatpush1.bf16.msra.mxu1 %v7518_v54  ;;  %v7551_v54 = vcombine.high %v307_v38, %v311_v39  ;;  %v335_v39 = vld [vmem:[#allocation5 + $0x4a8] sm:$0xff] }
  0xf5   :  { %4096 = vmatprep.subr.bf16.mxu1 %v7527_v62  ;;  %v574_v62 = vld [vmem:[#allocation5 + $0xc20] sm:$0xff] }
  0xf6   :  { %3869 = vmatpush1.bf16.msra.mxu0 %v7772_v57  ;;  %v570_v57 = vld [vmem:[#allocation5 + $0xc00] sm:$0xff] }
  0xf7   :  { %3870 = vmatprep.subr.bf16.mxu0 %v7781_v7  ;;  %3713 = vmatmul.mubr.bf16.gmra.mrb[24].mxu1 %v9548_v10  ;;  %v7804_v7 = vcombine.low %v562_v35, %v566_v37  ;;  %v7813_v20 = vcombine.high %v570_v57, %v574_v62  ;;  %v7812_v29 = vcombine.low %v570_v57, %v574_v62  ;;  %v331_v35 = vld [vmem:[#allocation5 + $0x488] sm:$0xff]  ;;  %v140_v62 = vld [vmem:[#allocation3 + $0x90] sm:$0xff] }
  0xf8   :  { %4097 = vmatpush1.bf16.msra.mxu1 %v7526_v13  ;;  %3722 = vmatprep.mubr.bf16.mxu1 %v9552_v28  ;;  %v578_v13 = vld [vmem:[#allocation5 + $0xc40] sm:$0xff]  ;;  %v7575_v43 = vcombine.high %v331_v35, %v335_v39  ;;  %v343_v57 = vld [vmem:[#allocation5 + $0x4e8] sm:$0xff] }
  0xf9   :  { %3826 = vmatmul.mubr.bf16.gmra.mrb[24].mxu0 %v9550_v11  ;;  %4098 = vmatprep.subr.bf16.mxu1 %v7535_v17  ;;  %v132_v17 = vld [vmem:[#allocation3 + $0x50] sm:$0xff]  ;;  %v7821_v37 = vcombine.high %v578_v13, %v582_v14 }
  0xfa   :  { %3871 = vmatpush1.bf16.msra.mxu0 %v7780_v16  ;;  %3835 = vmatprep.mubr.bf16.mxu0 %v9555_v30  ;;  %v327_v16 = vld [vmem:[#allocation5 + $0x468] sm:$0xff]  ;;  %v9572_v38 = vcombine.high %v132_v17, %v136_v24 }
  0xfb   :  { %3872 = vmatprep.subr.bf16.mxu0 %v7789_v27  ;;  %v7558_v27 = vcombine.low %v315_v63, %v319_v3  ;;  %v7566_v40 = vcombine.low %v323_v15, %v327_v16  ;;  %v9578_v3 = vcombine.low %v132_v17, %v136_v24 }
  0xfc   :  { %4099 = vmatpush1.bf16.msra.mxu1 %v7534_v31  ;;  %v7567_v31 = vcombine.high %v323_v15, %v327_v16  ;;  %10729 = vst [vmem:[#allocation41_spill] sm:$0xff] %v9572_v38  ;;  %v347_v15 = vld [vmem:[#allocation5 + $0x508] sm:$0xff] }
  0xfd   :  { %4100 = vmatprep.subr.bf16.mxu1 %v7543_v55  ;;  %v590_v55 = vld [vmem:[#allocation5 + $0xca0] sm:$0xff]  ;;  %10730 = vst [vmem:[#allocation42_spill] sm:$0xff] %v9578_v3 }
  0xfe   :  { %3873 = vmatpush1.bf16.msra.mxu0 %v7788_v32  ;;  %v586_v32 = vld [vmem:[#allocation5 + $0xc80] sm:$0xff] }
  0xff   :  { %3874 = vmatprep.subr.bf16.mxu0 %v7797_v41  ;;  %3723 = vmatmul.mubr.bf16.gmra.mrb[28].mxu1 %v9560_v45  ;;  %v7820_v41 = vcombine.low %v578_v13, %v582_v14  ;;  %v7829_v63 = vcombine.high %v586_v32, %v590_v55  ;;  %v602_v13 = vld [vmem:[#allocation5 + $0xd00] sm:$0xff] }
 0x100   :  { %4101 = vmatpush1.bf16.msra.mxu1 %v7542_v49  ;;  %4104 = vmatprep.mubr.bf16.mxu1 %v9460_v59  ;;  %v594_v49 = vld [vmem:[#allocation5 + $0xcc0] sm:$0xff] }
 0x101   :  { %3836 = vmatmul.mubr.bf16.gmra.mrb[28].mxu0 %v9562_v47  ;;  %4102 = vmatprep.subr.bf16.mxu1 %v7551_v54  ;;  %v339_v54 = vld [vmem:[#allocation5 + $0x4c8] sm:$0xff]  ;;  %v606_v14 = vld [vmem:[#allocation5 + $0xd20] sm:$0xff] }
 0x102   :  { %3875 = vmatpush1.bf16.msra.mxu0 %v7796_v51  ;;  %3878 = vmatprep.mubr.bf16.mxu0 %v9564_v2  ;;  %v598_v51 = vld [vmem:[#allocation5 + $0xce0] sm:$0xff]  ;;  %v7582_v17 = vcombine.low %v339_v54, %v343_v57 }
 0x103   :  { %3876 = vmatprep.subr.bf16.mxu0 %v7805_v1  ;;  %v144_v1 = vld [vmem:[#allocation3 + $0xb0] sm:$0xff]  ;;  %v7837_v16 = vcombine.high %v594_v49, %v598_v51  ;;  %v7836_v24 = vcombine.low %v594_v49, %v598_v51  ;;  %v7844_v49 = vcombine.low %v602_v13, %v606_v14 }
 0x104   :  { %4103 = vmatpush1.bf16.msra.mxu1 %v7550_v4  ;;  %v7574_v4 = vcombine.low %v331_v35, %v335_v39  ;;  %v359_v35 = vld [vmem:[#allocation5 + $0x568] sm:$0xff]  ;;  %v7845_v39 = vcombine.high %v602_v13, %v606_v14  ;;  %v626_v14 = vld [vmem:[#allocation5 + $0xdc0] sm:$0xff] }
 0x105   :  { %4185 = vmatprep.subr.bf16.mxu1 %v7559_v9  ;;  %v7583_v9 = vcombine.high %v339_v54, %v343_v57  ;;  %v618_v54 = vld [vmem:[#allocation5 + $0xd80] sm:$0xff] }
 0x106   :  { %3877 = vmatpush1.bf16.msra.mxu0 %v7804_v7  ;;  %v7828_v7 = vcombine.low %v586_v32, %v590_v55  ;;  %v614_v32 = vld [vmem:[#allocation5 + $0xd60] sm:$0xff]  ;;  %v355_v55 = vld [vmem:[#allocation5 + $0x548] sm:$0xff] }
 0x107   :  { %3959 = vmatprep.subr.bf16.mxu0 %v7813_v20  ;;  %4105 = vmatmul.mubr.bf16.vlgmr.msra.gmra.mrb[32].mxu1 %v9474_v22  ;;  %v9580_v20 = vcombine.high %v140_v62, %v144_v1  ;;  %v7599_v51 = vcombine.high %v355_v55, %v359_v35  ;;  %v622_v57 = vld [vmem:[#allocation5 + $0xda0] sm:$0xff] }
 0x108   :  { %4186 = vmatpush1.bf16.msra.mxu1 %v7558_v27  ;;  %4114 = vmatprep.mubr.bf16.mxu1 %v9480_v33  ;;  %v351_v27 = vld [vmem:[#allocation5 + $0x528] sm:$0xff] }
 0x109   :  { %3879 = vmatmul.mubr.bf16.vlgmr.msra.gmra.mrb[0].mxu0 %v9570_v25  ;;  %4187 = vmatprep.subr.bf16.mxu1 %v7567_v31  ;;  %10731 = vst [vmem:[#allocation43_spill] sm:$0xff] %v9580_v20  ;;  %v610_v31 = vld [vmem:[#allocation5 + $0xd40] sm:$0xff] }
 0x10a   :  { %3960 = vmatpush1.bf16.msra.mxu0 %v7812_v29  ;;  %3888 = vmatprep.mubr.bf16.mxu0 %v9572_v38  ;;  %v7591_v29 = vcombine.high %v347_v15, %v351_v27 }
 0x10b   :  { %3961 = vmatprep.subr.bf16.mxu0 %v7821_v37  ;;  %v148_v37 = vld [vmem:[#allocation3 + $0xd0] sm:$0xff] }
 0x10c   :  { %4188 = vmatpush1.bf16.msra.mxu1 %v7566_v40  ;;  %v152_v40 = vld [vmem:[#allocation3 + $0xf0] sm:$0xff] }
 0x10d   :  { %4189 = vmatprep.subr.bf16.mxu1 %v7575_v43  ;;  %v7590_v43 = vcombine.low %v347_v15, %v351_v27  ;;  %v630_v15 = vld [vmem:[#allocation5 + $0xde0] sm:$0xff]  ;;  %v375_v27 = vld [vmem:[#allocation5 + $0x5e8] sm:$0xff] }
 0x10e   :  { %3962 = vmatpush1.bf16.msra.mxu0 %v7820_v41  ;;  %v9586_v41 = vcombine.low %v140_v62, %v144_v1  ;;  %v7598_v62 = vcombine.low %v355_v55, %v359_v35  ;;  %v7852_v1 = vcombine.low %v610_v31, %v614_v32  ;;  %v634_v35 = vld [vmem:[#allocation5 + $0xe00] sm:$0xff] }
 0x10f   :  { %3963 = vmatprep.subr.bf16.mxu0 %v7829_v63  ;;  %4115 = vmatmul.mubr.bf16.gmra.mrb[36].mxu1 %v9488_v42  ;;  %v363_v63 = vld [vmem:[#allocation5 + $0x588] sm:$0xff] }
 0x110   :  { %4190 = vmatpush1.bf16.msra.mxu1 %v7574_v4  ;;  %4124 = vmatprep.mubr.bf16.mxu1 %v9492_v53  ;;  %10732 = vst [vmem:[#allocation44_spill] sm:$0xff] %v9586_v41  ;;  %v7853_v4 = vcombine.high %v610_v31, %v614_v32  ;;  %v7860_v31 = vcombine.low %v618_v54, %v622_v57 }
 0x111   :  { %3889 = vmatmul.mubr.bf16.gmra.mrb[4].mxu0 %v9578_v3  ;;  %4191 = vmatprep.subr.bf16.mxu1 %v7583_v9  ;;  %v367_v9 = vld [vmem:[#allocation5 + $0x5a8] sm:$0xff] }
 0x112   :  { %3964 = vmatpush1.bf16.msra.mxu0 %v7828_v7  ;;  %3898 = vmatprep.mubr.bf16.mxu0 %v9580_v20  ;;  %v9588_v7 = vcombine.high %v148_v37, %v152_v40  ;;  %v7607_v13 = vcombine.high %v363_v63, %v367_v9  ;;  %v7606_v55 = vcombine.low %v363_v63, %v367_v9  ;;  %v646_v63 = vld [vmem:[#allocation5 + $0xe60] sm:$0xff]  ;;  %v387_v9 = vld [vmem:[#allocation5 + $0x648] sm:$0xff] }
 0x113   :  { %3965 = vmatprep.subr.bf16.mxu0 %v7837_v16  ;;  %v371_v16 = vld [vmem:[#allocation5 + $0x5c8] sm:$0xff] }
 0x114   :  { %4192 = vmatpush1.bf16.msra.mxu1 %v7582_v17  ;;  %10733 = vst [vmem:[#allocation45_spill] sm:$0xff] %v9588_v7  ;;  %v7861_v17 = vcombine.high %v618_v54, %v622_v57  ;;  %v7615_v32 = vcombine.high %v371_v16, %v375_v27  ;;  %v642_v57 = vld [vmem:[#allocation5 + $0xe40] sm:$0xff] }
 0x115   :  { %4193 = vmatprep.subr.bf16.mxu1 %v7591_v29  ;;  %v160_v29 = vld [vmem:[#allocation3 + $0x130] sm:$0xff] }
 0x116   :  { %3966 = vmatpush1.bf16.msra.mxu0 %v7836_v24  ;;  %v156_v24 = vld [vmem:[#allocation3 + $0x110] sm:$0xff] }
 0x117   :  { %3967 = vmatprep.subr.bf16.mxu0 %v7845_v39  ;;  %4125 = vmatmul.mubr.bf16.gmra.mrb[40].mxu1 %v9500_v8  ;;  %v9594_v39 = vcombine.low %v148_v37, %v152_v40  ;;  %v7614_v37 = vcombine.low %v371_v16, %v375_v27  ;;  %v7868_v40 = vcombine.low %v626_v14, %v630_v15  ;;  %v650_v27 = vld [vmem:[#allocation5 + $0xe80] sm:$0xff] }
 0x118   :  { %4194 = vmatpush1.bf16.msra.mxu1 %v7590_v43  ;;  %4134 = vmatprep.mubr.bf16.mxu1 %v9504_v19  ;;  %v638_v43 = vld [vmem:[#allocation5 + $0xe20] sm:$0xff] }
 0x119   :  { %3899 = vmatmul.mubr.bf16.gmra.mrb[8].mxu0 %v9586_v41  ;;  %4195 = vmatprep.subr.bf16.mxu1 %v7599_v51  ;;  %10734 = vst [vmem:[#allocation46_spill] sm:$0xff] %v9594_v39  ;;  %v7869_v51 = vcombine.high %v626_v14, %v630_v15  ;;  %v7876_v14 = vcombine.low %v634_v35, %v638_v43 }
 0x11a   :  { %3968 = vmatpush1.bf16.msra.mxu0 %v7844_v49  ;;  %3908 = vmatprep.mubr.bf16.mxu0 %v9588_v7  ;;  %v379_v49 = vld [vmem:[#allocation5 + $0x608] sm:$0xff] }
 0x11b   :  { %3969 = vmatprep.subr.bf16.mxu0 %v7853_v4  ;;  %v9596_v4 = vcombine.high %v156_v24, %v160_v29  ;;  %v383_v7 = vld [vmem:[#allocation5 + $0x628] sm:$0xff] }
 0x11c   :  { %4196 = vmatpush1.bf16.msra.mxu1 %v7598_v62  ;;  %v7623_v54 = vcombine.high %v379_v49, %v383_v7  ;;  %v391_v62 = vld [vmem:[#allocation5 + $0x668] sm:$0xff]  ;;  %v7622_v16 = vcombine.low %v379_v49, %v383_v7  ;;  %v7884_v7 = vcombine.low %v642_v57, %v646_v63 }
 0x11d   :  { %4197 = vmatprep.subr.bf16.mxu1 %v7607_v13  ;;  %10735 = vst [vmem:[#allocation47_spill] sm:$0xff] %v9596_v4  ;;  %v7877_v13 = vcombine.high %v634_v35, %v638_v43  ;;  %v7631_v15 = vcombine.high %v387_v9, %v391_v62  ;;  %v658_v35 = vld [vmem:[#allocation5 + $0xec0] sm:$0xff]  ;;  %v403_v49 = vld [vmem:[#allocation5 + $0x6c8] sm:$0xff] }
 0x11e   :  { %3970 = vmatpush1.bf16.msra.mxu0 %v7852_v1  ;;  %v164_v1 = vld [vmem:[#allocation3 + $0x150] sm:$0xff]  ;;  %v662_v43 = vld [vmem:[#allocation5 + $0xee0] sm:$0xff] }
 0x11f   :  { %3971 = vmatprep.subr.bf16.mxu0 %v7861_v17  ;;  %4135 = vmatmul.mubr.bf16.gmra.mrb[44].mxu1 %v9512_v56  ;;  %v168_v17 = vld [vmem:[#allocation3 + $0x170] sm:$0xff]  ;;  %v9602_v56 = vcombine.low %v156_v24, %v160_v29  ;;  %v7630_v24 = vcombine.low %v387_v9, %v391_v62  ;;  %v666_v62 = vld [vmem:[#allocation5 + $0xf00] sm:$0xff] }
 0x120   :  { %4198 = vmatpush1.bf16.msra.mxu1 %v7606_v55  ;;  %4144 = vmatprep.mubr.bf16.mxu1 %v9516_v44  ;;  %v654_v55 = vld [vmem:[#allocation5 + $0xea0] sm:$0xff] }
 0x121   :  { %3909 = vmatmul.mubr.bf16.gmra.mrb[12].mxu0 %v9594_v39  ;;  %4199 = vmatprep.subr.bf16.mxu1 %v7615_v32  ;;  %10736 = vst [vmem:[#allocation48_spill] sm:$0xff] %v9602_v56  ;;  %v7885_v32 = vcombine.high %v642_v57, %v646_v63  ;;  %v7892_v57 = vcombine.low %v650_v27, %v654_v55 }
 0x122   :  { %3972 = vmatpush1.bf16.msra.mxu0 %v7860_v31  ;;  %3918 = vmatprep.mubr.bf16.mxu0 %v9596_v4  ;;  %v395_v31 = vld [vmem:[#allocation5 + $0x688] sm:$0xff] }
 0x123   :  { %3973 = vmatprep.subr.bf16.mxu0 %v7869_v51  ;;  %v9604_v51 = vcombine.high %v164_v1, %v168_v17  ;;  %v399_v4 = vld [vmem:[#allocation5 + $0x6a8] sm:$0xff] }
 0x124   :  { %4200 = vmatpush1.bf16.msra.mxu1 %v7614_v37  ;;  %v7639_v29 = vcombine.high %v395_v31, %v399_v4  ;;  %v407_v37 = vld [vmem:[#allocation5 + $0x6e8] sm:$0xff]  ;;  %v7638_v9 = vcombine.low %v395_v31, %v399_v4  ;;  %v7900_v4 = vcombine.low %v658_v35, %v662_v43 }
 0x125   :  { %4201 = vmatprep.subr.bf16.mxu1 %v7623_v54  ;;  %10737 = vst [vmem:[#allocation49_spill] sm:$0xff] %v9604_v51  ;;  %v7893_v54 = vcombine.high %v650_v27, %v654_v55  ;;  %v7647_v63 = vcombine.high %v403_v49, %v407_v37  ;;  %v674_v27 = vld [vmem:[#allocation5 + $0xf40] sm:$0xff]  ;;  %v419_v31 = vld [vmem:[#allocation5 + $0x748] sm:$0xff] }
 0x126   :  { %3974 = vmatpush1.bf16.msra.mxu0 %v7868_v40  ;;  %v172_v40 = vld [vmem:[#allocation3 + $0x190] sm:$0xff]  ;;  %v678_v55 = vld [vmem:[#allocation5 + $0xf60] sm:$0xff] }
 0x127   :  { %3975 = vmatprep.subr.bf16.mxu0 %v7877_v13  ;;  %4145 = vmatmul.mubr.bf16.gmra.mrb[48].mxu1 %v9524_v5  ;;  %v176_v13 = vld [vmem:[#allocation3 + $0x1b0] sm:$0xff]  ;;  %v9610_v5 = vcombine.low %v164_v1, %v168_v17  ;;  %v7646_v1 = vcombine.low %v403_v49, %v407_v37  ;;  %v7917_v37 = vcombine.high %v674_v27, %v678_v55 }
 0x128   :  { %4202 = vmatpush1.bf16.msra.mxu1 %v7622_v16  ;;  %4154 = vmatprep.mubr.bf16.mxu1 %v9528_v18  ;;  %v670_v16 = vld [vmem:[#allocation5 + $0xf20] sm:$0xff] }
 0x129   :  { %3919 = vmatmul.mubr.bf16.gmra.mrb[16].mxu0 %v9602_v56  ;;  %4203 = vmatprep.subr.bf16.mxu1 %v7631_v15  ;;  %10738 = vst [vmem:[#allocation50_spill] sm:$0xff] %v9610_v5  ;;  %v7901_v15 = vcombine.high %v658_v35, %v662_v43  ;;  %v7908_v35 = vcombine.low %v666_v62, %v670_v16 }
 0x12a   :  { %3976 = vmatpush1.bf16.msra.mxu0 %v7876_v14  ;;  %3928 = vmatprep.mubr.bf16.mxu0 %v9604_v51  ;;  %v411_v14 = vld [vmem:[#allocation5 + $0x708] sm:$0xff] }
 0x12b   :  { %3977 = vmatprep.subr.bf16.mxu0 %v7885_v32  ;;  %v9612_v32 = vcombine.high %v172_v40, %v176_v13  ;;  %v415_v51 = vld [vmem:[#allocation5 + $0x728] sm:$0xff] }
 0x12c   :  { %4204 = vmatpush1.bf16.msra.mxu1 %v7630_v24  ;;  %v7655_v17 = vcombine.high %v411_v14, %v415_v51  ;;  %v423_v24 = vld [vmem:[#allocation5 + $0x768] sm:$0xff]  ;;  %v7654_v49 = vcombine.low %v411_v14, %v415_v51  ;;  %v7916_v51 = vcombine.low %v674_v27, %v678_v55 }
 0x12d   :  { %4205 = vmatprep.subr.bf16.mxu1 %v7639_v29  ;;  %10739 = vst [vmem:[#allocation51_spill] sm:$0xff] %v9612_v32  ;;  %v7909_v29 = vcombine.high %v666_v62, %v670_v16  ;;  %v7663_v43 = vcombine.high %v419_v31, %v423_v24  ;;  %v690_v16 = vld [vmem:[#allocation5 + $0xfc0] sm:$0xff]  ;;  %v435_v14 = vld [vmem:[#allocation5 + $0x7c8] sm:$0xff] }
 0x12e   :  { %3978 = vmatpush1.bf16.msra.mxu0 %v7884_v7  ;;  %v180_v7 = vld [vmem:[#allocation3 + $0x1d0] sm:$0xff] }
 0x12f   :  { %3979 = vmatprep.subr.bf16.mxu0 %v7893_v54  ;;  %4155 = vmatmul.mubr.bf16.gmra.mrb[52].mxu1 %v9536_v60  ;;  %v184_v54 = vld [vmem:[#allocation3 + $0x1f0] sm:$0xff]  ;;  %v9618_v60 = vcombine.low %v172_v40, %v176_v13  ;;  %v7662_v40 = vcombine.low %v419_v31, %v423_v24 }
 0x130   :  { %4206 = vmatpush1.bf16.msra.mxu1 %v7638_v9  ;;  %4164 = vmatprep.mubr.bf16.mxu1 %v9540_v50  ;;  %v9620_v9 = vcombine.high %v180_v7, %v184_v54 }
 0x131   :  { %3929 = vmatmul.mubr.bf16.gmra.mrb[20].mxu0 %v9610_v5  ;;  %4207 = vmatprep.subr.bf16.mxu1 %v7647_v63  ;;  %10740 = vst [vmem:[#allocation52_spill] sm:$0xff] %v9618_v60  ;;  %v431_v63 = vld [vmem:[#allocation5 + $0x7a8] sm:$0xff] }
 0x132   :  { %3980 = vmatpush1.bf16.msra.mxu0 %v7892_v57  ;;  %3938 = vmatprep.mubr.bf16.mxu0 %v9612_v32  ;;  %10741 = vst [vmem:[#allocation53_spill] sm:$0xff] %v9620_v9  ;;  %v427_v57 = vld [vmem:[#allocation5 + $0x788] sm:$0xff]  ;;  %v686_v32 = vld [vmem:[#allocation5 + $0xfa0] sm:$0xff] }
 0x133   :  { %3981 = vmatprep.subr.bf16.mxu0 %v7901_v15  ;;  %v682_v15 = vld [vmem:[#allocation5 + $0xf80] sm:$0xff]  ;;  %v7671_v13 = vcombine.high %v427_v57, %v431_v63  ;;  %v7670_v31 = vcombine.low %v427_v57, %v431_v63  ;;  %v451_v63 = vld [vmem:[#allocation5 + $0x848] sm:$0xff] }
 0x134   :  { %4208 = vmatpush1.bf16.msra.mxu1 %v7646_v1  ;;  %v7925_v62 = vcombine.high %v682_v15, %v686_v32  ;;  %v439_v1 = vld [vmem:[#allocation5 + $0x7e8] sm:$0xff]  ;;  %v7924_v27 = vcombine.low %v682_v15, %v686_v32 }
 0x135   :  { %4209 = vmatprep.subr.bf16.mxu1 %v7655_v17  ;;  %v125_v17 = vld [vmem:[#allocation3 + $0x18] sm:$0xff]  ;;  %v7679_v55 = vcombine.high %v435_v14, %v439_v1  ;;  %v455_v15 = vld [vmem:[#allocation5 + $0x868] sm:$0xff] }
 0x136   :  { %3982 = vmatpush1.bf16.msra.mxu0 %v7900_v4  ;;  %v694_v4 = vld [vmem:[#allocation5 + $0xfe0] sm:$0xff] }
 0x137   :  { %3983 = vmatprep.subr.bf16.mxu0 %v7909_v29  ;;  %4165 = vmatmul.mubr.bf16.gmra.mrb[56].mxu1 %v9548_v10  ;;  %v129_v29 = vld [vmem:[#allocation3 + $0x38] sm:$0xff]  ;;  %v9626_v10 = vcombine.low %v180_v7, %v184_v54  ;;  %v7933_v24 = vcombine.high %v690_v16, %v694_v4  ;;  %v7678_v7 = vcombine.low %v435_v14, %v439_v1 }
 0x138   :  { %4210 = vmatpush1.bf16.msra.mxu1 %v7654_v49  ;;  %4174 = vmatprep.mubr.bf16.mxu1 %v9552_v28  ;;  %v9628_v49 = vcombine.high %v125_v17, %v129_v29  ;;  %v192_v28 = vld [vmem:[#allocation5 + $0x30] sm:$0xff]  ;;  %v7932_v54 = vcombine.low %v690_v16, %v694_v4  ;;  %v7695_v1 = vcombine.high %v451_v63, %v455_v15 }
 0x139   :  { %3939 = vmatmul.mubr.bf16.gmra.mrb[24].mxu0 %v9618_v60  ;;  %4211 = vmatprep.subr.bf16.mxu1 %v7663_v43  ;;  %10742 = vst [vmem:[#allocation54_spill] sm:$0xff] %v9626_v10  ;;  %v447_v43 = vld [vmem:[#allocation5 + $0x828] sm:$0xff] }
 0x13a   :  { %3984 = vmatpush1.bf16.msra.mxu0 %v7908_v35  ;;  %3948 = vmatprep.mubr.bf16.mxu0 %v9620_v9  ;;  %10743 = vst [vmem:[#allocation55_spill] sm:$0xff] %v9628_v49  ;;  %v443_v35 = vld [vmem:[#allocation5 + $0x808] sm:$0xff] }
 0x13b   :  { %3985 = vmatprep.subr.bf16.mxu0 %v7917_v37  ;;  %v188_v37 = vld [vmem:[#allocation5 + $0x10] sm:$0xff]  ;;  %v7687_v32 = vcombine.high %v443_v35, %v447_v43  ;;  %v7686_v14 = vcombine.low %v443_v35, %v447_v43  ;;  %v467_v43 = vld [vmem:[#allocation5 + $0x8c8] sm:$0xff] }
 0x13c   :  { %4212 = vmatpush1.bf16.msra.mxu1 %v7662_v40  ;;  %v7433_v57 = vcombine.high %v188_v37, %v192_v28  ;;  %v196_v40 = vld [vmem:[#allocation5 + $0x50] sm:$0xff]  ;;  %v7432_v16 = vcombine.low %v188_v37, %v192_v28  ;;  %v471_v37 = vld [vmem:[#allocation5 + $0x8e8] sm:$0xff] }
 0x13d   :  { %4213 = vmatprep.subr.bf16.mxu1 %v7671_v13  ;;  %v133_v13 = vld [vmem:[#allocation3 + $0x58] sm:$0xff] }
 0x13e   :  { %3986 = vmatpush1.bf16.msra.mxu0 %v7916_v51  ;;  %v200_v51 = vld [vmem:[#allocation5 + $0x70] sm:$0xff] }
 0x13f   :  { %3987 = vmatprep.subr.bf16.mxu0 %v7925_v62  ;;  %4175 = vmatmul.mubr.bf16.gmra.mrb[60].mxu1 %v9560_v45  ;;  %v137_v62 = vld [vmem:[#allocation3 + $0x78] sm:$0xff]  ;;  %v9634_v45 = vcombine.low %v125_v17, %v129_v29  ;;  %v7441_v4 = vcombine.high %v196_v40, %v200_v51  ;;  %v7694_v17 = vcombine.low %v451_v63, %v455_v15 }
 0x140   :  { %4214 = vmatpush1.bf16.msra.mxu1 %v7670_v31  ;;  %4217 = vmatprep.mubr.bf16.mxu1 %v9468_v0  ;;  %v9636_v31 = vcombine.high %v133_v13, %v137_v62  ;;  %v208_v0 = vld [vmem:[#allocation5 + $0xb0] sm:$0xff]  ;;  %v7440_v29 = vcombine.low %v196_v40, %v200_v51  ;;  %v7711_v40 = vcombine.high %v467_v43, %v471_v37 }
 0x141   :  { %3949 = vmatmul.mubr.bf16.gmra.mrb[28].mxu0 %v9626_v10  ;;  %4215 = vmatprep.subr.bf16.mxu1 %v7679_v55  ;;  %10744 = vst [vmem:[#allocation56_spill] sm:$0xff] %v9634_v45  ;;  %v463_v55 = vld [vmem:[#allocation5 + $0x8a8] sm:$0xff] }
 0x142   :  { %3988 = vmatpush1.bf16.msra.mxu0 %v7924_v27  ;;  %3991 = vmatprep.mubr.bf16.mxu0 %v9628_v49  ;;  %10745 = vst [vmem:[#allocation57_spill] sm:$0xff] %v9636_v31  ;;  %v459_v27 = vld [vmem:[#allocation5 + $0x888] sm:$0xff] }
 0x143   :  { %3989 = vmatprep.subr.bf16.mxu0 %v7933_v24  ;;  %v204_v24 = vld [vmem:[#allocation5 + $0x90] sm:$0xff]  ;;  %v7703_v35 = vcombine.high %v459_v27, %v463_v55  ;;  %v7702_v63 = vcombine.low %v459_v27, %v463_v55  ;;  %v483_v55 = vld [vmem:[#allocation5 + $0x948] sm:$0xff] }
 0x144   :  { %4216 = vmatpush1.bf16.msra.mxu1 %v7678_v7  ;;  %v7449_v28 = vcombine.high %v204_v24, %v208_v0  ;;  %v212_v7 = vld [vmem:[#allocation5 + $0xd0] sm:$0xff]  ;;  %v7448_v15 = vcombine.low %v204_v24, %v208_v0  ;;  %v487_v24 = vld [vmem:[#allocation5 + $0x968] sm:$0xff] }
 0x145   :  { %4298 = vmatprep.subr.bf16.mxu1 %v7687_v32  ;;  %v141_v32 = vld [vmem:[#allocation3 + $0x98] sm:$0xff] }
 0x146   :  { %3990 = vmatpush1.bf16.msra.mxu0 %v7932_v54  ;;  %v216_v54 = vld [vmem:[#allocation5 + $0xf0] sm:$0xff] }
 0x147   :  { %4524 = vmatprep.subr.bf16.mxu0 %v7433_v57  ;;  %4218 = vmatmul.mubr.bf16.vlgmr.msra.gmra.mrb[32].mxu1 %v9478_v26  ;;  %v145_v57 = vld [vmem:[#allocation3 + $0xb8] sm:$0xff]  ;;  %v9642_v26 = vcombine.low %v133_v13, %v137_v62  ;;  %v7457_v51 = vcombine.high %v212_v7, %v216_v54  ;;  %v7710_v13 = vcombine.low %v467_v43, %v471_v37 }
 0x148   :  { %4299 = vmatpush1.bf16.msra.mxu1 %v7686_v14  ;;  %4227 = vmatprep.mubr.bf16.mxu1 %v9483_v34  ;;  %v9644_v14 = vcombine.high %v141_v32, %v145_v57  ;;  %v224_v34 = vld [vmem:[#allocation5 + $0x130] sm:$0xff]  ;;  %v7456_v62 = vcombine.low %v212_v7, %v216_v54  ;;  %v7727_v7 = vcombine.high %v483_v55, %v487_v24 }
 0x149   :  { %3992 = vmatmul.mubr.bf16.vlgmr.msra.gmra.mrb[0].mxu0 %v9634_v45  ;;  %4300 = vmatprep.subr.bf16.mxu1 %v7695_v1  ;;  %10746 = vst [vmem:[#allocation58_spill] sm:$0xff] %v9642_v26  ;;  %v479_v1 = vld [vmem:[#allocation5 + $0x928] sm:$0xff] }
 0x14a   :  { %4525 = vmatpush1.bf16.msra.mxu0 %v7432_v16  ;;  %4001 = vmatprep.mubr.bf16.mxu0 %v9636_v31  ;;  %10747 = vst [vmem:[#allocation59_spill] sm:$0xff] %v9644_v14  ;;  %v475_v16 = vld [vmem:[#allocation5 + $0x908] sm:$0xff] }
 0x14b   :  { %4526 = vmatprep.subr.bf16.mxu0 %v7441_v4  ;;  %v220_v4 = vld [vmem:[#allocation5 + $0x110] sm:$0xff]  ;;  %v7719_v27 = vcombine.high %v475_v16, %v479_v1  ;;  %v7718_v43 = vcombine.low %v475_v16, %v479_v1  ;;  %v499_v1 = vld [vmem:[#allocation5 + $0x9c8] sm:$0xff] }
 0x14c   :  { %4301 = vmatpush1.bf16.msra.mxu1 %v7694_v17  ;;  %v7465_v0 = vcombine.high %v220_v4, %v224_v34  ;;  %v228_v17 = vld [vmem:[#allocation5 + $0x150] sm:$0xff]  ;;  %v7464_v37 = vcombine.low %v220_v4, %v224_v34  ;;  %v503_v4 = vld [vmem:[#allocation5 + $0x9e8] sm:$0xff] }
 0x14d   :  { %4302 = vmatprep.subr.bf16.mxu1 %v7703_v35  ;;  %v149_v35 = vld [vmem:[#allocation3 + $0xd8] sm:$0xff] }
 0x14e   :  { %4527 = vmatpush1.bf16.msra.mxu0 %v7440_v29  ;;  %v232_v29 = vld [vmem:[#allocation5 + $0x170] sm:$0xff] }
 0x14f   :  { %4528 = vmatprep.subr.bf16.mxu0 %v7449_v28  ;;  %4228 = vmatmul.mubr.bf16.gmra.mrb[36].mxu1 %v9490_v46  ;;  %v153_v28 = vld [vmem:[#allocation3 + $0xf8] sm:$0xff]  ;;  %v9650_v46 = vcombine.low %v141_v32, %v145_v57  ;;  %v7473_v54 = vcombine.high %v228_v17, %v232_v29  ;;  %v7726_v32 = vcombine.low %v483_v55, %v487_v24 }
 0x150   :  { %4303 = vmatpush1.bf16.msra.mxu1 %v7702_v63  ;;  %4237 = vmatprep.mubr.bf16.mxu1 %v9495_v58  ;;  %v9652_v63 = vcombine.high %v149_v35, %v153_v28  ;;  %v240_v58 = vld [vmem:[#allocation5 + $0x1b0] sm:$0xff]  ;;  %v7472_v57 = vcombine.low %v228_v17, %v232_v29  ;;  %v7743_v17 = vcombine.high %v499_v1, %v503_v4 }
 0x151   :  { %4002 = vmatmul.mubr.bf16.gmra.mrb[4].mxu0 %v9642_v26  ;;  %4304 = vmatprep.subr.bf16.mxu1 %v7711_v40  ;;  %10748 = vst [vmem:[#allocation60_spill] sm:$0xff] %v9650_v46  ;;  %v495_v40 = vld [vmem:[#allocation5 + $0x9a8] sm:$0xff] }
 0x152   :  { %4529 = vmatpush1.bf16.msra.mxu0 %v7448_v15  ;;  %4011 = vmatprep.mubr.bf16.mxu0 %v9644_v14  ;;  %v491_v15 = vld [vmem:[#allocation5 + $0x988] sm:$0xff] }
 0x153   :  { %4530 = vmatprep.subr.bf16.mxu0 %v7457_v51  ;;  %v236_v51 = vld [vmem:[#allocation5 + $0x190] sm:$0xff]  ;;  %v7735_v16 = vcombine.high %v491_v15, %v495_v40  ;;  %v7734_v55 = vcombine.low %v491_v15, %v495_v40  ;;  %v515_v40 = vld [vmem:[#allocation5 + $0xa48] sm:$0xff] }
 0x154   :  { %4305 = vmatpush1.bf16.msra.mxu1 %v7710_v13  ;;  %v7481_v34 = vcombine.high %v236_v51, %v240_v58  ;;  %v244_v13 = vld [vmem:[#allocation5 + $0x1d0] sm:$0xff]  ;;  %v7480_v24 = vcombine.low %v236_v51, %v240_v58  ;;  %v519_v51 = vld [vmem:[#allocation5 + $0xa68] sm:$0xff] }
 0x155   :  { %4306 = vmatprep.subr.bf16.mxu1 %v7719_v27  ;;  %v157_v27 = vld [vmem:[#allocation3 + $0x118] sm:$0xff] }
 0x156   :  { %4531 = vmatpush1.bf16.msra.mxu0 %v7456_v62  ;;  %v248_v62 = vld [vmem:[#allocation5 + $0x1f0] sm:$0xff] }
 0x157   :  { %4532 = vmatprep.subr.bf16.mxu0 %v7465_v0  ;;  %4238 = vmatmul.mubr.bf16.gmra.mrb[40].mxu1 %v9502_v12  ;;  %v161_v0 = vld [vmem:[#allocation3 + $0x138] sm:$0xff]  ;;  %v9658_v12 = vcombine.low %v149_v35, %v153_v28  ;;  %v7489_v29 = vcombine.high %v244_v13, %v248_v62  ;;  %v7742_v35 = vcombine.low %v499_v1, %v503_v4 }
 0x158   :  { %4307 = vmatpush1.bf16.msra.mxu1 %v7718_v43  ;;  %4247 = vmatprep.mubr.bf16.mxu1 %v9507_v23  ;;  %v9660_v43 = vcombine.high %v157_v27, %v161_v0  ;;  %v256_v23 = vld [vmem:[#allocation5 + $0x230] sm:$0xff]  ;;  %v7488_v28 = vcombine.low %v244_v13, %v248_v62  ;;  %v7759_v13 = vcombine.high %v515_v40, %v519_v51 }
 0x159   :  { %4012 = vmatmul.mubr.bf16.gmra.mrb[8].mxu0 %v9650_v46  ;;  %4308 = vmatprep.subr.bf16.mxu1 %v7727_v7  ;;  %10749 = vst [vmem:[#allocation61_spill] sm:$0xff] %v9658_v12  ;;  %v511_v7 = vld [vmem:[#allocation5 + $0xa28] sm:$0xff] }
 0x15a   :  { %4533 = vmatpush1.bf16.msra.mxu0 %v7464_v37  ;;  %4021 = vmatprep.mubr.bf16.mxu0 %v9652_v63  ;;  %v507_v37 = vld [vmem:[#allocation5 + $0xa08] sm:$0xff] }
 0x15b   :  { %4534 = vmatprep.subr.bf16.mxu0 %v7473_v54  ;;  %v252_v54 = vld [vmem:[#allocation5 + $0x210] sm:$0xff]  ;;  %v7751_v15 = vcombine.high %v507_v37, %v511_v7  ;;  %v7750_v1 = vcombine.low %v507_v37, %v511_v7  ;;  %v531_v7 = vld [vmem:[#allocation5 + $0xac8] sm:$0xff] }
 0x15c   :  { %4309 = vmatpush1.bf16.msra.mxu1 %v7726_v32  ;;  %v7497_v58 = vcombine.high %v252_v54, %v256_v23  ;;  %v260_v32 = vld [vmem:[#allocation5 + $0x250] sm:$0xff]  ;;  %v7496_v4 = vcombine.low %v252_v54, %v256_v23  ;;  %v535_v54 = vld [vmem:[#allocation5 + $0xae8] sm:$0xff] }
 0x15d   :  { %4310 = vmatprep.subr.bf16.mxu1 %v7735_v16  ;;  %v165_v16 = vld [vmem:[#allocation3 + $0x158] sm:$0xff] }
 0x15e   :  { %4535 = vmatpush1.bf16.msra.mxu0 %v7472_v57  ;;  %v264_v57 = vld [vmem:[#allocation5 + $0x270] sm:$0xff] }
 0x15f   :  { %4536 = vmatprep.subr.bf16.mxu0 %v7481_v34  ;;  %4248 = vmatmul.mubr.bf16.gmra.mrb[44].mxu1 %v9514_v36  ;;  %v169_v34 = vld [vmem:[#allocation3 + $0x178] sm:$0xff]  ;;  %v9666_v36 = vcombine.low %v157_v27, %v161_v0  ;;  %v7505_v62 = vcombine.high %v260_v32, %v264_v57  ;;  %v7758_v27 = vcombine.low %v515_v40, %v519_v51 }
 0x160   :  { %4311 = vmatpush1.bf16.msra.mxu1 %v7734_v55  ;;  %4257 = vmatprep.mubr.bf16.mxu1 %v9519_v48  ;;  %v9668_v55 = vcombine.high %v165_v16, %v169_v34  ;;  %v272_v48 = vld [vmem:[#allocation5 + $0x2b0] sm:$0xff]  ;;  %v7504_v0 = vcombine.low %v260_v32, %v264_v57  ;;  %v7775_v32 = vcombine.high %v531_v7, %v535_v54 }
 0x161   :  { %4022 = vmatmul.mubr.bf16.gmra.mrb[12].mxu0 %v9658_v12  ;;  %4312 = vmatprep.subr.bf16.mxu1 %v7743_v17  ;;  %10750 = vst [vmem:[#allocation62_spill] sm:$0xff] %v9666_v36  ;;  %v527_v17 = vld [vmem:[#allocation5 + $0xaa8] sm:$0xff] }
 0x162   :  { %4537 = vmatpush1.bf16.msra.mxu0 %v7480_v24  ;;  %4031 = vmatprep.mubr.bf16.mxu0 %v9660_v43  ;;  %v523_v24 = vld [vmem:[#allocation5 + $0xa88] sm:$0xff] }
 0x163   :  { %4538 = vmatprep.subr.bf16.mxu0 %v7489_v29  ;;  %v268_v29 = vld [vmem:[#allocation5 + $0x290] sm:$0xff]  ;;  %v7767_v37 = vcombine.high %v523_v24, %v527_v17  ;;  %v7766_v40 = vcombine.low %v523_v24, %v527_v17  ;;  %v547_v17 = vld [vmem:[#allocation5 + $0xb48] sm:$0xff] }
 0x164   :  { %4313 = vmatpush1.bf16.msra.mxu1 %v7742_v35  ;;  %v7513_v23 = vcombine.high %v268_v29, %v272_v48  ;;  %v276_v35 = vld [vmem:[#allocation5 + $0x2d0] sm:$0xff]  ;;  %v7512_v51 = vcombine.low %v268_v29, %v272_v48  ;;  %v551_v29 = vld [vmem:[#allocation5 + $0xb68] sm:$0xff] }
 0x165   :  { %4314 = vmatprep.subr.bf16.mxu1 %v7751_v15  ;;  %v173_v15 = vld [vmem:[#allocation3 + $0x198] sm:$0xff] }
 0x166   :  { %4539 = vmatpush1.bf16.msra.mxu0 %v7488_v28  ;;  %v280_v28 = vld [vmem:[#allocation5 + $0x2f0] sm:$0xff] }
 0x167   :  { %4540 = vmatprep.subr.bf16.mxu0 %v7497_v58  ;;  %4258 = vmatmul.mubr.bf16.gmra.mrb[48].mxu1 %v9526_v6  ;;  %v177_v58 = vld [vmem:[#allocation3 + $0x1b8] sm:$0xff]  ;;  %v9674_v6 = vcombine.low %v165_v16, %v169_v34  ;;  %v7521_v57 = vcombine.high %v276_v35, %v280_v28  ;;  %v7774_v16 = vcombine.low %v531_v7, %v535_v54 }
 0x168   :  { %4315 = vmatpush1.bf16.msra.mxu1 %v7750_v1  ;;  %4267 = vmatprep.mubr.bf16.mxu1 %v9531_v21  ;;  %v9676_v1 = vcombine.high %v173_v15, %v177_v58  ;;  %v288_v21 = vld [vmem:[#allocation5 + $0x330] sm:$0xff]  ;;  %v7520_v34 = vcombine.low %v276_v35, %v280_v28  ;;  %v7791_v35 = vcombine.high %v547_v17, %v551_v29 }
 0x169   :  { %4032 = vmatmul.mubr.bf16.gmra.mrb[16].mxu0 %v9666_v36  ;;  %4316 = vmatprep.subr.bf16.mxu1 %v7759_v13  ;;  %10751 = vst [vmem:[#allocation63_spill] sm:$0xff] %v9674_v6  ;;  %v543_v13 = vld [vmem:[#allocation5 + $0xb28] sm:$0xff] }
 0x16a   :  { %4541 = vmatpush1.bf16.msra.mxu0 %v7496_v4  ;;  %4041 = vmatprep.mubr.bf16.mxu0 %v9668_v55  ;;  %v539_v4 = vld [vmem:[#allocation5 + $0xb08] sm:$0xff] }
 0x16b   :  { %4542 = vmatprep.subr.bf16.mxu0 %v7505_v62  ;;  %v284_v62 = vld [vmem:[#allocation5 + $0x310] sm:$0xff]  ;;  %v7783_v24 = vcombine.high %v539_v4, %v543_v13  ;;  %v7782_v7 = vcombine.low %v539_v4, %v543_v13  ;;  %v563_v13 = vld [vmem:[#allocation5 + $0xbc8] sm:$0xff] }
 0x16c   :  { %4317 = vmatpush1.bf16.msra.mxu1 %v7758_v27  ;;  %v7529_v48 = vcombine.high %v284_v62, %v288_v21  ;;  %v292_v27 = vld [vmem:[#allocation5 + $0x350] sm:$0xff]  ;;  %v7528_v54 = vcombine.low %v284_v62, %v288_v21  ;;  %v567_v62 = vld [vmem:[#allocation5 + $0xbe8] sm:$0xff] }
 0x16d   :  { %4318 = vmatprep.subr.bf16.mxu1 %v7767_v37  ;;  %v181_v37 = vld [vmem:[#allocation3 + $0x1d8] sm:$0xff] }
 0x16e   :  { %4543 = vmatpush1.bf16.msra.mxu0 %v7504_v0  ;;  %v296_v0 = vld [vmem:[#allocation5 + $0x370] sm:$0xff] }
 0x16f   :  { %4544 = vmatprep.subr.bf16.mxu0 %v7513_v23  ;;  %4268 = vmatmul.mubr.bf16.gmra.mrb[52].mxu1 %v9538_v61  ;;  %v185_v23 = vld [vmem:[#allocation3 + $0x1f8] sm:$0xff]  ;;  %v9682_v61 = vcombine.low %v173_v15, %v177_v58  ;;  %v7537_v28 = vcombine.high %v292_v27, %v296_v0  ;;  %v7790_v15 = vcombine.low %v547_v17, %v551_v29 }
 0x170   :  { %4319 = vmatpush1.bf16.msra.mxu1 %v7766_v40  ;;  %4277 = vmatprep.mubr.bf16.mxu1 %v9543_v52  ;;  %v9684_v40 = vcombine.high %v181_v37, %v185_v23  ;;  %v304_v52 = vld [vmem:[#allocation5 + $0x3b0] sm:$0xff]  ;;  %v7536_v58 = vcombine.low %v292_v27, %v296_v0  ;;  %v7807_v29 = vcombine.high %v563_v13, %v567_v62  ;;  %v571_v0 = vld [vmem:[#allocation5 + $0xc08] sm:$0xff] }
 0x171   :  { %4042 = vmatmul.mubr.bf16.gmra.mrb[20].mxu0 %v9674_v6  ;;  %4320 = vmatprep.subr.bf16.mxu1 %v7775_v32  ;;  %v559_v32 = vld [vmem:[#allocation5 + $0xba8] sm:$0xff] }
 0x172   :  { %4545 = vmatpush1.bf16.msra.mxu0 %v7512_v51  ;;  %4051 = vmatprep.mubr.bf16.mxu0 %v9676_v1  ;;  %v555_v51 = vld [vmem:[#allocation5 + $0xb88] sm:$0xff] }
 0x173   :  { %4546 = vmatprep.subr.bf16.mxu0 %v7521_v57  ;;  %v300_v57 = vld [vmem:[#allocation5 + $0x390] sm:$0xff]  ;;  %v7799_v4 = vcombine.high %v555_v51, %v559_v32 }
 0x174   :  { %4321 = vmatpush1.bf16.msra.mxu1 %v7774_v16  ;;  %v7545_v21 = vcombine.high %v300_v57, %v304_v52  ;;  %v308_v16 = vld [vmem:[#allocation5 + $0x3d0] sm:$0xff]  ;;  %v7544_v17 = vcombine.low %v300_v57, %v304_v52 }
 0x175   :  { %4322 = vmatprep.subr.bf16.mxu1 %v7783_v24  ;;  %v9690_v24 = vcombine.low %v181_v37, %v185_v23  ;;  %v324_v57 = vld [vmem:[#allocation5 + $0x450] sm:$0xff] }
 0x176   :  { %4547 = vmatpush1.bf16.msra.mxu0 %v7520_v34  ;;  %v312_v34 = vld [vmem:[#allocation5 + $0x3f0] sm:$0xff] }
 0x177   :  { %4548 = vmatprep.subr.bf16.mxu0 %v7529_v48  ;;  %4278 = vmatmul.mubr.bf16.gmra.mrb[56].mxu1 %v9550_v11  ;;  %v7798_v48 = vcombine.low %v555_v51, %v559_v32  ;;  %v7553_v27 = vcombine.high %v308_v16, %v312_v34  ;;  %v7552_v37 = vcombine.low %v308_v16, %v312_v34  ;;  %v579_v51 = vld [vmem:[#allocation5 + $0xc48] sm:$0xff]  ;;  %v332_v34 = vld [vmem:[#allocation5 + $0x490] sm:$0xff] }
 0x178   :  { %4323 = vmatpush1.bf16.msra.mxu1 %v7782_v7  ;;  %4287 = vmatprep.mubr.bf16.mxu1 %v9555_v30  ;;  %v575_v7 = vld [vmem:[#allocation5 + $0xc28] sm:$0xff] }
 0x179   :  { %4052 = vmatmul.mubr.bf16.gmra.mrb[24].mxu0 %v9682_v61  ;;  %4324 = vmatprep.subr.bf16.mxu1 %v7791_v35  ;;  %v320_v35 = vld [vmem:[#allocation5 + $0x430] sm:$0xff]  ;;  %v7815_v23 = vcombine.high %v571_v0, %v575_v7  ;;  %v583_v32 = vld [vmem:[#allocation5 + $0xc68] sm:$0xff] }
 0x17a   :  { %4549 = vmatpush1.bf16.msra.mxu0 %v7528_v54  ;;  %4061 = vmatprep.mubr.bf16.mxu0 %v9684_v40  ;;  %v316_v54 = vld [vmem:[#allocation5 + $0x410] sm:$0xff]  ;;  %v591_v16 = vld [vmem:[#allocation5 + $0xca8] sm:$0xff] }
 0x17b   :  { %4550 = vmatprep.subr.bf16.mxu0 %v7537_v28  ;;  %v7806_v28 = vcombine.low %v563_v13, %v567_v62  ;;  %v7561_v52 = vcombine.high %v316_v54, %v320_v35  ;;  %v587_v62 = vld [vmem:[#allocation5 + $0xc88] sm:$0xff] }
 0x17c   :  { %4325 = vmatpush1.bf16.msra.mxu1 %v7790_v15  ;;  %v328_v15 = vld [vmem:[#allocation5 + $0x470] sm:$0xff] }
 0x17d   :  { %4326 = vmatprep.subr.bf16.mxu1 %v7799_v4  ;;  %v7560_v4 = vcombine.low %v316_v54, %v320_v35  ;;  %v7569_v13 = vcombine.high %v324_v57, %v328_v15  ;;  %v599_v54 = vld [vmem:[#allocation5 + $0xce8] sm:$0xff]  ;;  %v340_v35 = vld [vmem:[#allocation5 + $0x4d0] sm:$0xff] }
 0x17e   :  { %4551 = vmatpush1.bf16.msra.mxu0 %v7536_v58  ;;  %v7814_v58 = vcombine.low %v571_v0, %v575_v7  ;;  %v595_v7 = vld [vmem:[#allocation5 + $0xcc8] sm:$0xff] }
 0x17f   :  { %4552 = vmatprep.subr.bf16.mxu0 %v7545_v21  ;;  %4288 = vmatmul.mubr.bf16.gmra.mrb[60].mxu1 %v9562_v47  ;;  %v7823_v21 = vcombine.high %v579_v51, %v583_v32 }
 0x180   :  { %4327 = vmatpush1.bf16.msra.mxu1 %v7798_v48  ;;  %4330 = vmatprep.mubr.bf16.mxu1 %v9564_v2  ;;  %v336_v48 = vld [vmem:[#allocation5 + $0x4b0] sm:$0xff] }
 0x181   :  { %4062 = vmatmul.mubr.bf16.gmra.mrb[28].mxu0 %v9690_v24  ;;  %4328 = vmatprep.subr.bf16.mxu1 %v7807_v29  ;;  %v7568_v29 = vcombine.low %v324_v57, %v328_v15  ;;  %v7577_v0 = vcombine.high %v332_v34, %v336_v48  ;;  %v607_v57 = vld [vmem:[#allocation5 + $0xd28] sm:$0xff]  ;;  %v348_v15 = vld [vmem:[#allocation5 + $0x510] sm:$0xff] }
 0x182   :  { %4553 = vmatpush1.bf16.msra.mxu0 %v7544_v17  ;;  %4556 = vmatprep.mubr.bf16.mxu0 %v9460_v59  ;;  %v7822_v17 = vcombine.low %v579_v51, %v583_v32  ;;  %v603_v32 = vld [vmem:[#allocation5 + $0xd08] sm:$0xff] }
 0x183   :  { %4554 = vmatprep.subr.bf16.mxu0 %v7553_v27  ;;  %v7831_v27 = vcombine.high %v587_v62, %v591_v16 }
 0x184   :  { %4329 = vmatpush1.bf16.msra.mxu1 %v7806_v28  ;;  %v344_v28 = vld [vmem:[#allocation5 + $0x4f0] sm:$0xff] }
 0x185   :  { %4411 = vmatprep.subr.bf16.mxu1 %v7815_v23  ;;  %v7576_v23 = vcombine.low %v332_v34, %v336_v48  ;;  %v7585_v51 = vcombine.high %v340_v35, %v344_v28  ;;  %v615_v34 = vld [vmem:[#allocation5 + $0xd68] sm:$0xff]  ;;  %v356_v48 = vld [vmem:[#allocation5 + $0x550] sm:$0xff] }
 0x186   :  { %4555 = vmatpush1.bf16.msra.mxu0 %v7552_v37  ;;  %v7830_v37 = vcombine.low %v587_v62, %v591_v16  ;;  %v611_v16 = vld [vmem:[#allocation5 + $0xd48] sm:$0xff] }
 0x187   :  { %4637 = vmatprep.subr.bf16.mxu0 %v7561_v52  ;;  %4331 = vmatmul.mubr.bf16.vlgmr.msra.gmra.mrb[32].mxu1 %v9570_v25  ;;  %v7839_v52 = vcombine.high %v595_v7, %v599_v54 }
 0x188   :  { %4412 = vmatpush1.bf16.msra.mxu1 %v7814_v58  ;;  %4340 = vmatprep.mubr.bf16.mxu1 %v9572_v38  ;;  %v352_v58 = vld [vmem:[#allocation5 + $0x530] sm:$0xff] }
 0x189   :  { %4557 = vmatmul.mubr.bf16.vlgmr.msra.gmra.mrb[32].mxu0 %v9474_v22  ;;  %4413 = vmatprep.subr.bf16.mxu1 %v7823_v21  ;;  %v7584_v21 = vcombine.low %v340_v35, %v344_v28  ;;  %v7593_v62 = vcombine.high %v348_v15, %v352_v58  ;;  %v623_v35 = vld [vmem:[#allocation5 + $0xda8] sm:$0xff]  ;;  %v364_v28 = vld [vmem:[#allocation5 + $0x590] sm:$0xff] }
 0x18a   :  { %4638 = vmatpush1.bf16.msra.mxu0 %v7560_v4  ;;  %4566 = vmatprep.mubr.bf16.mxu0 %v9480_v33  ;;  %v7838_v4 = vcombine.low %v595_v7, %v599_v54  ;;  %v619_v54 = vld [vmem:[#allocation5 + $0xd88] sm:$0xff] }
 0x18b   :  { %4639 = vmatprep.subr.bf16.mxu0 %v7569_v13  ;;  %v7847_v13 = vcombine.high %v603_v32, %v607_v57 }
 0x18c   :  { %4414 = vmatpush1.bf16.msra.mxu1 %v7822_v17  ;;  %v360_v17 = vld [vmem:[#allocation5 + $0x570] sm:$0xff] }
 0x18d   :  { %4415 = vmatprep.subr.bf16.mxu1 %v7831_v27  ;;  %v7592_v27 = vcombine.low %v348_v15, %v352_v58  ;;  %v7601_v7 = vcombine.high %v356_v48, %v360_v17  ;;  %v627_v58 = vld [vmem:[#allocation5 + $0xdc8] sm:$0xff] }
 0x18e   :  { %4640 = vmatpush1.bf16.msra.mxu0 %v7568_v29  ;;  %v7846_v29 = vcombine.low %v603_v32, %v607_v57  ;;  %v10752_v57 = vld [vmem:[#allocation45_spill] sm:$0xff] }
 0x18f   :  { %4641 = vmatprep.subr.bf16.mxu0 %v7577_v0  ;;  %4341 = vmatmul.mubr.bf16.gmra.mrb[36].mxu1 %v9578_v3  ;;  %v7855_v0 = vcombine.high %v611_v16, %v615_v34 }
 0x190   :  { %4416 = vmatpush1.bf16.msra.mxu1 %v7830_v37  ;;  %4350 = vmatprep.mubr.bf16.mxu1 %v9580_v20  ;;  %v368_v37 = vld [vmem:[#allocation5 + $0x5b0] sm:$0xff] }
 0x191   :  { %4567 = vmatmul.mubr.bf16.gmra.mrb[36].mxu0 %v9488_v42  ;;  %4417 = vmatprep.subr.bf16.mxu1 %v7839_v52  ;;  %v7600_v52 = vcombine.low %v356_v48, %v360_v17  ;;  %v7609_v15 = vcombine.high %v364_v28, %v368_v37  ;;  %v7608_v48 = vcombine.low %v364_v28, %v368_v37  ;;  %v10756_v28 = vld [vmem:[#allocation47_spill] sm:$0xff] }
 0x192   :  { %4642 = vmatpush1.bf16.msra.mxu0 %v7576_v23  ;;  %4576 = vmatprep.mubr.bf16.mxu0 %v9492_v53  ;;  %v7854_v23 = vcombine.low %v611_v16, %v615_v34  ;;  %v7862_v16 = vcombine.low %v619_v54, %v623_v35 }
 0x193   :  { %4643 = vmatprep.subr.bf16.mxu0 %v7585_v51  ;;  %v7863_v51 = vcombine.high %v619_v54, %v623_v35 }
 0x194   :  { %4418 = vmatpush1.bf16.msra.mxu1 %v7838_v4  ;;  %v631_v4 = vld [vmem:[#allocation5 + $0xde8] sm:$0xff] }
 0x195   :  { %4419 = vmatprep.subr.bf16.mxu1 %v7847_v13  ;;  %v372_v13 = vld [vmem:[#allocation5 + $0x5d0] sm:$0xff]  ;;  %v7871_v17 = vcombine.high %v627_v58, %v631_v4 }
 0x196   :  { %4644 = vmatpush1.bf16.msra.mxu0 %v7584_v21 }
 0x197   :  { %4645 = vmatprep.subr.bf16.mxu0 %v7593_v62  ;;  %4351 = vmatmul.mubr.bf16.gmra.mrb[40].mxu1 %v9586_v41  ;;  %v376_v62 = vld [vmem:[#allocation5 + $0x5f0] sm:$0xff] }
 0x198   :  { %4420 = vmatpush1.bf16.msra.mxu1 %v7846_v29  ;;  %4360 = vmatprep.mubr.bf16.mxu1 %v10752_v57  ;;  %v10755_v57 = vld [vmem:[#allocation26_spill] sm:$0xff]  ;;  %v7616_v54 = vcombine.low %v372_v13, %v376_v62 }
 0x199   :  { %4577 = vmatmul.mubr.bf16.gmra.mrb[40].mxu0 %v9500_v8  ;;  %4421 = vmatprep.subr.bf16.mxu1 %v7855_v0  ;;  %v635_v0 = vld [vmem:[#allocation5 + $0xe08] sm:$0xff] }
 0x19a   :  { %4646 = vmatpush1.bf16.msra.mxu0 %v7592_v27  ;;  %v9706_v32 = vpop.f32.mrb[0].mxu1  ;;  %4586 = vmatprep.mubr.bf16.mxu0 %v9504_v19  ;;  %v7617_v27 = vcombine.high %v372_v13, %v376_v62  ;;  %v384_v19 = vld [vmem:[#allocation5 + $0x630] sm:$0xff] }
 0x19b   :  { %4647 = vmatprep.subr.bf16.mxu0 %v7601_v7  ;;  %v9709_v21 = vpop.f32.mrb[1].mxu1  ;;  %v639_v7 = vld [vmem:[#allocation5 + $0xe28] sm:$0xff] }
 0x19c   :  { %10753 = vst [vmem:[#allocation64_spill] sm:$0xff] %v9709_v21  ;;  %v9712_v29 = vpop.f32.mrb[2].mxu1  ;;  %4422 = vmatpush1.bf16.msra.mxu1 %v7854_v23  ;;  %v380_v21 = vld [vmem:[#allocation5 + $0x610] sm:$0xff]  ;;  %v7879_v35 = vcombine.high %v635_v0, %v639_v7 }
 0x19d   :  { %10754 = vst [vmem:[#allocation65_spill] sm:$0xff] %v9712_v29  ;;  %v9714_v34 = vpop.f32.mrb[3].mxu1  ;;  %4423 = vmatprep.subr.bf16.mxu1 %v7863_v51  ;;  %v7870_v29 = vcombine.low %v627_v58, %v631_v4  ;;  %v7625_v37 = vcombine.high %v380_v21, %v384_v19  ;;  %v647_v51 = vld [vmem:[#allocation5 + $0xe68] sm:$0xff]  ;;  %v7878_v58 = vcombine.low %v635_v0, %v639_v7 }
 0x19e   :  { %4648 = vmatpush1.bf16.msra.mxu0 %v7600_v52  ;;  %v643_v52 = vld [vmem:[#allocation5 + $0xe48] sm:$0xff]  ;;  %v7624_v13 = vcombine.low %v380_v21, %v384_v19 }
 0x19f   :  { %4649 = vmatprep.subr.bf16.mxu0 %v7609_v15  ;;  %4361 = vmatmul.mubr.bf16.gmra.mrb[44].mxu1 %v9594_v39  ;;  %v388_v39 = vld [vmem:[#allocation5 + $0x650] sm:$0xff]  ;;  %v7887_v62 = vcombine.high %v643_v52, %v647_v51  ;;  %v10760_v19 = vld [vmem:[#allocation49_spill] sm:$0xff] }
 0x1a0   :  { %4424 = vmatpush1.bf16.msra.mxu1 %v7862_v16  ;;  %4370 = vmatprep.mubr.bf16.mxu1 %v10756_v28  ;;  %v10759_v28 = vld [vmem:[#allocation30_spill] sm:$0xff] }
 0x1a1   :  { %4587 = vmatmul.mubr.bf16.gmra.mrb[44].mxu0 %v10755_v57  ;;  %4425 = vmatprep.subr.bf16.mxu1 %v7871_v17  ;;  %v392_v57 = vld [vmem:[#allocation5 + $0x670] sm:$0xff]  ;;  %v651_v17 = vld [vmem:[#allocation5 + $0xe88] sm:$0xff] }
 0x1a2   :  { %4650 = vmatpush1.bf16.msra.mxu0 %v7608_v48  ;;  %v9718_v23 = vpop.f32.mrb[4].mxu1  ;;  %4596 = vmatprep.mubr.bf16.mxu0 %v9516_v44  ;;  %v7633_v48 = vcombine.high %v388_v39, %v392_v57  ;;  %v400_v44 = vld [vmem:[#allocation5 + $0x6b0] sm:$0xff] }
 0x1a3   :  { %4651 = vmatprep.subr.bf16.mxu0 %v7617_v27  ;;  %v9721_v15 = vpop.f32.mrb[5].mxu1  ;;  %v655_v27 = vld [vmem:[#allocation5 + $0xea8] sm:$0xff] }
 0x1a4   :  { %10757 = vst [vmem:[#allocation66_spill] sm:$0xff] %v9721_v15  ;;  %v9724_v16 = vpop.f32.mrb[6].mxu1  ;;  %4426 = vmatpush1.bf16.msra.mxu1 %v7870_v29  ;;  %v396_v15 = vld [vmem:[#allocation5 + $0x690] sm:$0xff]  ;;  %v7632_v29 = vcombine.low %v388_v39, %v392_v57  ;;  %v7895_v0 = vcombine.high %v651_v17, %v655_v27 }
 0x1a5   :  { %10758 = vst [vmem:[#allocation67_spill] sm:$0xff] %v9724_v16  ;;  %v9726_v4 = vpop.f32.mrb[7].mxu1  ;;  %4427 = vmatprep.subr.bf16.mxu1 %v7879_v35  ;;  %v7886_v16 = vcombine.low %v643_v52, %v647_v51  ;;  %v7641_v21 = vcombine.high %v396_v15, %v400_v44  ;;  %v663_v35 = vld [vmem:[#allocation5 + $0xee8] sm:$0xff]  ;;  %v7894_v52 = vcombine.low %v651_v17, %v655_v27 }
 0x1a6   :  { %4652 = vmatpush1.bf16.msra.mxu0 %v7616_v54  ;;  %v659_v54 = vld [vmem:[#allocation5 + $0xec8] sm:$0xff]  ;;  %v7640_v57 = vcombine.low %v396_v15, %v400_v44  ;;  %v10764_v44 = vld [vmem:[#allocation51_spill] sm:$0xff] }
 0x1a7   :  { %4653 = vmatprep.subr.bf16.mxu0 %v7625_v37  ;;  %4371 = vmatmul.mubr.bf16.gmra.mrb[48].mxu1 %v9602_v56  ;;  %v404_v56 = vld [vmem:[#allocation5 + $0x6d0] sm:$0xff]  ;;  %v7903_v51 = vcombine.high %v659_v54, %v663_v35 }
 0x1a8   :  { %4428 = vmatpush1.bf16.msra.mxu1 %v7878_v58  ;;  %4380 = vmatprep.mubr.bf16.mxu1 %v10760_v19  ;;  %v10763_v19 = vld [vmem:[#allocation34_spill] sm:$0xff] }
 0x1a9   :  { %4597 = vmatmul.mubr.bf16.gmra.mrb[48].mxu0 %v10759_v28  ;;  %4429 = vmatprep.subr.bf16.mxu1 %v7887_v62  ;;  %v408_v28 = vld [vmem:[#allocation5 + $0x6f0] sm:$0xff]  ;;  %v667_v62 = vld [vmem:[#allocation5 + $0xf08] sm:$0xff] }
 0x1aa   :  { %4654 = vmatpush1.bf16.msra.mxu0 %v7624_v13  ;;  %v9730_v7 = vpop.f32.mrb[8].mxu1  ;;  %4606 = vmatprep.mubr.bf16.mxu0 %v9528_v18  ;;  %v7649_v13 = vcombine.high %v404_v56, %v408_v28  ;;  %v416_v18 = vld [vmem:[#allocation5 + $0x730] sm:$0xff] }
 0x1ab   :  { %4655 = vmatprep.subr.bf16.mxu0 %v7633_v48  ;;  %v9733_v37 = vpop.f32.mrb[9].mxu1  ;;  %v671_v48 = vld [vmem:[#allocation5 + $0xf28] sm:$0xff] }
 0x1ac   :  { %10761 = vst [vmem:[#allocation68_spill] sm:$0xff] %v9733_v37  ;;  %v9736_v58 = vpop.f32.mrb[10].mxu1  ;;  %4430 = vmatpush1.bf16.msra.mxu1 %v7886_v16  ;;  %v412_v37 = vld [vmem:[#allocation5 + $0x710] sm:$0xff]  ;;  %v7648_v16 = vcombine.low %v404_v56, %v408_v28  ;;  %v7911_v17 = vcombine.high %v667_v62, %v671_v48 }
 0x1ad   :  { %10762 = vst [vmem:[#allocation69_spill] sm:$0xff] %v9736_v58  ;;  %v9738_v39 = vpop.f32.mrb[11].mxu1  ;;  %4431 = vmatprep.subr.bf16.mxu1 %v7895_v0  ;;  %v7902_v58 = vcombine.low %v659_v54, %v663_v35  ;;  %v7657_v15 = vcombine.high %v412_v37, %v416_v18  ;;  %v679_v0 = vld [vmem:[#allocation5 + $0xf68] sm:$0xff]  ;;  %v7910_v54 = vcombine.low %v667_v62, %v671_v48 }
 0x1ae   :  { %4656 = vmatpush1.bf16.msra.mxu0 %v7632_v29  ;;  %v675_v29 = vld [vmem:[#allocation5 + $0xf48] sm:$0xff]  ;;  %v7656_v28 = vcombine.low %v412_v37, %v416_v18 }
 0x1af   :  { %4657 = vmatprep.subr.bf16.mxu0 %v7641_v21  ;;  %4381 = vmatmul.mubr.bf16.gmra.mrb[52].mxu1 %v9610_v5  ;;  %v420_v5 = vld [vmem:[#allocation5 + $0x750] sm:$0xff]  ;;  %v7919_v35 = vcombine.high %v675_v29, %v679_v0  ;;  %v691_v37 = vld [vmem:[#allocation5 + $0xfc8] sm:$0xff] }
 0x1b0   :  { %4432 = vmatpush1.bf16.msra.mxu1 %v7894_v52  ;;  %4390 = vmatprep.mubr.bf16.mxu1 %v10764_v44  ;;  %v10767_v44 = vld [vmem:[#allocation38_spill] sm:$0xff] }
 0x1b1   :  { %4607 = vmatmul.mubr.bf16.gmra.mrb[52].mxu0 %v10763_v19  ;;  %4433 = vmatprep.subr.bf16.mxu1 %v7903_v51  ;;  %v424_v19 = vld [vmem:[#allocation5 + $0x770] sm:$0xff]  ;;  %v683_v51 = vld [vmem:[#allocation5 + $0xf88] sm:$0xff] }
 0x1b2   :  { %4658 = vmatpush1.bf16.msra.mxu0 %v7640_v57  ;;  %v9742_v27 = vpop.f32.mrb[12].mxu1  ;;  %4616 = vmatprep.mubr.bf16.mxu0 %v9540_v50  ;;  %v7665_v57 = vcombine.high %v420_v5, %v424_v19  ;;  %v432_v50 = vld [vmem:[#allocation5 + $0x7b0] sm:$0xff] }
 0x1b3   :  { %4659 = vmatprep.subr.bf16.mxu0 %v7649_v13  ;;  %v9745_v21 = vpop.f32.mrb[13].mxu1  ;;  %v687_v13 = vld [vmem:[#allocation5 + $0xfa8] sm:$0xff] }
 0x1b4   :  { %10765 = vst [vmem:[#allocation70_spill] sm:$0xff] %v9745_v21  ;;  %v9748_v52 = vpop.f32.mrb[14].mxu1  ;;  %4434 = vmatpush1.bf16.msra.mxu1 %v7902_v58  ;;  %v428_v21 = vld [vmem:[#allocation5 + $0x790] sm:$0xff]  ;;  %v7664_v58 = vcombine.low %v420_v5, %v424_v19  ;;  %v7927_v62 = vcombine.high %v683_v51, %v687_v13 }
 0x1b5   :  { %10766 = vst [vmem:[#allocation71_spill] sm:$0xff] %v9748_v52  ;;  %v9750_v56 = vpop.f32.mrb[15].mxu1  ;;  %4435 = vmatprep.subr.bf16.mxu1 %v7911_v17  ;;  %v7918_v52 = vcombine.low %v675_v29, %v679_v0  ;;  %v7673_v18 = vcombine.high %v428_v21, %v432_v50  ;;  %v7926_v29 = vcombine.low %v683_v51, %v687_v13 }
 0x1b6   :  { %4660 = vmatpush1.bf16.msra.mxu0 %v7648_v16  ;;  %v695_v16 = vld [vmem:[#allocation5 + $0xfe8] sm:$0xff]  ;;  %v7672_v19 = vcombine.low %v428_v21, %v432_v50  ;;  %v197_v21 = vld [vmem:[#allocation5 + $0x58] sm:$0xff] }
 0x1b7   :  { %4661 = vmatprep.subr.bf16.mxu0 %v7657_v15  ;;  %4391 = vmatmul.mubr.bf16.gmra.mrb[56].mxu1 %v9618_v60  ;;  %v10769_v15 = vld [vmem:[#allocation39_spill] sm:$0xff]  ;;  %v7935_v0 = vcombine.high %v691_v37, %v695_v16 }
 0x1b8   :  { %4436 = vmatpush1.bf16.msra.mxu1 %v7910_v54  ;;  %4400 = vmatprep.mubr.bf16.mxu1 %v9620_v9  ;;  %v436_v60 = vld [vmem:[#allocation5 + $0x7d0] sm:$0xff]  ;;  %v10771_v9 = vld [vmem:[#allocation40_spill] sm:$0xff] }
 0x1b9   :  { %4617 = vmatmul.mubr.bf16.gmra.mrb[56].mxu0 %v10767_v44  ;;  %4437 = vmatprep.subr.bf16.mxu1 %v7919_v35  ;;  %v440_v44 = vld [vmem:[#allocation5 + $0x7f0] sm:$0xff]  ;;  %v189_v35 = vld [vmem:[#allocation5 + $0x18] sm:$0xff] }
 0x1ba   :  { %4662 = vmatpush1.bf16.msra.mxu0 %v7656_v28  ;;  %v9754_v48 = vpop.f32.mrb[16].mxu1  ;;  %4626 = vmatprep.mubr.bf16.mxu0 %v10769_v15  ;;  %v7681_v28 = vcombine.high %v436_v60, %v440_v44  ;;  %v448_v15 = vld [vmem:[#allocation5 + $0x830] sm:$0xff] }
 0x1bb   :  { %4663 = vmatprep.subr.bf16.mxu0 %v7665_v57  ;;  %v9757_v17 = vpop.f32.mrb[17].mxu1  ;;  %v193_v57 = vld [vmem:[#allocation5 + $0x38] sm:$0xff] }
 0x1bc   :  { %10768 = vst [vmem:[#allocation72_spill] sm:$0xff] %v9757_v17  ;;  %v9760_v54 = vpop.f32.mrb[18].mxu1  ;;  %4438 = vmatpush1.bf16.msra.mxu1 %v7918_v52  ;;  %v444_v17 = vld [vmem:[#allocation5 + $0x810] sm:$0xff]  ;;  %v7680_v52 = vcombine.low %v436_v60, %v440_v44  ;;  %v7435_v51 = vcombine.high %v189_v35, %v193_v57 }
 0x1bd   :  { %10770 = vst [vmem:[#allocation73_spill] sm:$0xff] %v9760_v54  ;;  %v9762_v5 = vpop.f32.mrb[19].mxu1  ;;  %4439 = vmatprep.subr.bf16.mxu1 %v7927_v62  ;;  %v7934_v54 = vcombine.low %v691_v37, %v695_v16  ;;  %v7689_v50 = vcombine.high %v444_v17, %v448_v15  ;;  %v7434_v37 = vcombine.low %v189_v35, %v193_v57 }
 0x1be   :  { %4664 = vmatpush1.bf16.msra.mxu0 %v7664_v58  ;;  %v201_v58 = vld [vmem:[#allocation5 + $0x78] sm:$0xff]  ;;  %v7688_v44 = vcombine.low %v444_v17, %v448_v15 }
 0x1bf   :  { %4665 = vmatprep.subr.bf16.mxu0 %v7673_v18  ;;  %4401 = vmatmul.mubr.bf16.gmra.mrb[60].mxu1 %v9626_v10  ;;  %v10773_v18 = vld [vmem:[#allocation18_spill] sm:$0xff]  ;;  %v7443_v16 = vcombine.high %v197_v21, %v201_v58  ;;  %v213_v15 = vld [vmem:[#allocation5 + $0xd8] sm:$0xff] }
 0x1c0   :  { %4440 = vmatpush1.bf16.msra.mxu1 %v7926_v29  ;;  %4443 = vmatprep.mubr.bf16.mxu1 %v9628_v49  ;;  %v452_v10 = vld [vmem:[#allocation5 + $0x850] sm:$0xff] }
 0x1c1   :  { %4627 = vmatmul.mubr.bf16.gmra.mrb[60].mxu0 %v10771_v9  ;;  %4441 = vmatprep.subr.bf16.mxu1 %v7935_v0  ;;  %v456_v9 = vld [vmem:[#allocation5 + $0x870] sm:$0xff]  ;;  %v205_v0 = vld [vmem:[#allocation5 + $0x98] sm:$0xff] }
 0x1c2   :  { %4666 = vmatpush1.bf16.msra.mxu0 %v7672_v19  ;;  %v9766_v13 = vpop.f32.mrb[20].mxu1  ;;  %4669 = vmatprep.mubr.bf16.mxu0 %v10773_v18  ;;  %v7697_v19 = vcombine.high %v452_v10, %v456_v9  ;;  %v464_v18 = vld [vmem:[#allocation5 + $0x8b0] sm:$0xff] }
 0x1c3   :  { %4667 = vmatprep.subr.bf16.mxu0 %v7681_v28  ;;  %v9769_v62 = vpop.f32.mrb[21].mxu1  ;;  %v209_v28 = vld [vmem:[#allocation5 + $0xb8] sm:$0xff] }
 0x1c4   :  { %10772 = vst [vmem:[#allocation74_spill] sm:$0xff] %v9769_v62  ;;  %v9772_v29 = vpop.f32.mrb[22].mxu1  ;;  %4442 = vmatpush1.bf16.msra.mxu1 %v7934_v54  ;;  %v460_v62 = vld [vmem:[#allocation5 + $0x890] sm:$0xff]  ;;  %v7696_v54 = vcombine.low %v452_v10, %v456_v9  ;;  %v7451_v35 = vcombine.high %v205_v0, %v209_v28  ;;  %v7450_v10 = vcombine.low %v205_v0, %v209_v28 }
 0x1c5   :  { %10774 = vst [vmem:[#allocation75_spill] sm:$0xff] %v9772_v29  ;;  %v9774_v60 = vpop.f32.mrb[23].mxu1  ;;  %4976 = vmatprep.subr.bf16.mxu1 %v7435_v51  ;;  %v10775_v49 = vld [vmem:[#allocation19_spill] sm:$0xff]  ;;  %v7442_v29 = vcombine.low %v197_v21, %v201_v58  ;;  %v7705_v17 = vcombine.high %v460_v62, %v464_v18  ;;  %v7704_v21 = vcombine.low %v460_v62, %v464_v18 }
 0x1c6   :  { %4668 = vmatpush1.bf16.msra.mxu0 %v7680_v52  ;;  %v217_v52 = vld [vmem:[#allocation5 + $0xf8] sm:$0xff] }
 0x1c7   :  { %4750 = vmatprep.subr.bf16.mxu0 %v7689_v50  ;;  %4444 = vmatmul.mubr.bf16.vlgmr.msra.gmra.mrb[32].mxu1 %v9634_v45  ;;  %v10777_v50 = vld [vmem:[#allocation20_spill] sm:$0xff]  ;;  %v468_v45 = vld [vmem:[#allocation5 + $0x8d0] sm:$0xff]  ;;  %v7459_v58 = vcombine.high %v213_v15, %v217_v52 }
 0x1c8   :  { %4977 = vmatpush1.bf16.msra.mxu1 %v7434_v37  ;;  %4453 = vmatprep.mubr.bf16.mxu1 %v9636_v31  ;;  %v10779_v31 = vld [vmem:[#allocation21_spill] sm:$0xff]  ;;  %v229_v18 = vld [vmem:[#allocation5 + $0x158] sm:$0xff] }
 0x1c9   :  { %4670 = vmatmul.mubr.bf16.vlgmr.msra.gmra.mrb[32].mxu0 %v10775_v49  ;;  %4978 = vmatprep.subr.bf16.mxu1 %v7443_v16  ;;  %v472_v49 = vld [vmem:[#allocation5 + $0x8f0] sm:$0xff]  ;;  %v221_v16 = vld [vmem:[#allocation5 + $0x118] sm:$0xff] }
 0x1ca   :  { %4751 = vmatpush1.bf16.msra.mxu0 %v7688_v44  ;;  %v9778_v57 = vpop.f32.mrb[24].mxu1  ;;  %4679 = vmatprep.mubr.bf16.mxu0 %v10777_v50  ;;  %v7713_v44 = vcombine.high %v468_v45, %v472_v49  ;;  %v480_v50 = vld [vmem:[#allocation5 + $0x930] sm:$0xff] }
 0x1cb   :  { %4752 = vmatprep.subr.bf16.mxu0 %v7697_v19  ;;  %v9781_v51 = vpop.f32.mrb[25].mxu1  ;;  %v225_v19 = vld [vmem:[#allocation5 + $0x138] sm:$0xff] }
 0x1cc   :  { %10776 = vst [vmem:[#allocation76_spill] sm:$0xff] %v9781_v51  ;;  %v9784_v37 = vpop.f32.mrb[26].mxu1  ;;  %4979 = vmatpush1.bf16.msra.mxu1 %v7442_v29  ;;  %v476_v51 = vld [vmem:[#allocation5 + $0x910] sm:$0xff]  ;;  %v7712_v29 = vcombine.low %v468_v45, %v472_v49  ;;  %v7467_v0 = vcombine.high %v221_v16, %v225_v19  ;;  %v7466_v45 = vcombine.low %v221_v16, %v225_v19  ;;  %v249_v19 = vld [vmem:[#allocation5 + $0x1f8] sm:$0xff] }
 0x1cd   :  { %10778 = vst [vmem:[#allocation77_spill] sm:$0xff] %v9784_v37  ;;  %v9786_v9 = vpop.f32.mrb[27].mxu1  ;;  %4980 = vmatprep.subr.bf16.mxu1 %v7451_v35  ;;  %v7458_v37 = vcombine.low %v213_v15, %v217_v52  ;;  %v7721_v62 = vcombine.high %v476_v51, %v480_v50  ;;  %v7720_v15 = vcombine.low %v476_v51, %v480_v50  ;;  %v245_v50 = vld [vmem:[#allocation5 + $0x1d8] sm:$0xff] }
 0x1ce   :  { %4753 = vmatpush1.bf16.msra.mxu0 %v7696_v54  ;;  %v233_v54 = vld [vmem:[#allocation5 + $0x178] sm:$0xff] }
 0x1cf   :  { %4754 = vmatprep.subr.bf16.mxu0 %v7705_v17  ;;  %4454 = vmatmul.mubr.bf16.gmra.mrb[36].mxu1 %v9642_v26  ;;  %v10781_v17 = vld [vmem:[#allocation22_spill] sm:$0xff]  ;;  %v7475_v52 = vcombine.high %v229_v18, %v233_v54 }
 0x1d0   :  { %4981 = vmatpush1.bf16.msra.mxu1 %v7450_v10  ;;  %4463 = vmatprep.mubr.bf16.mxu1 %v9644_v14  ;;  %v484_v26 = vld [vmem:[#allocation5 + $0x950] sm:$0xff] }
 0x1d1   :  { %4680 = vmatmul.mubr.bf16.gmra.mrb[36].mxu0 %v10779_v31  ;;  %4982 = vmatprep.subr.bf16.mxu1 %v7459_v58  ;;  %v488_v31 = vld [vmem:[#allocation5 + $0x970] sm:$0xff]  ;;  %v237_v58 = vld [vmem:[#allocation5 + $0x198] sm:$0xff] }
 0x1d2   :  { %4755 = vmatpush1.bf16.msra.mxu0 %v7704_v21  ;;  %v9790_v28 = vpop.f32.mrb[28].mxu1  ;;  %4689 = vmatprep.mubr.bf16.mxu0 %v10781_v17  ;;  %v7729_v21 = vcombine.high %v484_v26, %v488_v31  ;;  %v496_v17 = vld [vmem:[#allocation5 + $0x9b0] sm:$0xff] }
 0x1d3   :  { %4756 = vmatprep.subr.bf16.mxu0 %v7713_v44  ;;  %v9793_v35 = vpop.f32.mrb[29].mxu1  ;;  %v241_v44 = vld [vmem:[#allocation5 + $0x1b8] sm:$0xff] }
 0x1d4   :  { %10780 = vst [vmem:[#allocation78_spill] sm:$0xff] %v9793_v35  ;;  %v9796_v10 = vpop.f32.mrb[30].mxu1  ;;  %4983 = vmatpush1.bf16.msra.mxu1 %v7458_v37  ;;  %v492_v35 = vld [vmem:[#allocation5 + $0x990] sm:$0xff]  ;;  %v7728_v37 = vcombine.low %v484_v26, %v488_v31  ;;  %v7483_v16 = vcombine.high %v237_v58, %v241_v44  ;;  %v253_v31 = vld [vmem:[#allocation5 + $0x218] sm:$0xff] }
 0x1d5   :  { %10782 = vst [vmem:[#allocation79_spill] sm:$0xff] %v9796_v10  ;;  %v9798_v49 = vpop.f32.mrb[31].mxu1  ;;  %4984 = vmatprep.subr.bf16.mxu1 %v7467_v0  ;;  %v10783_v14 = vld [vmem:[#allocation23_spill] sm:$0xff]  ;;  %v7474_v10 = vcombine.low %v229_v18, %v233_v54  ;;  %v7737_v51 = vcombine.high %v492_v35, %v496_v17  ;;  %v7491_v18 = vcombine.high %v245_v50, %v249_v19 }
 0x1d6   :  { %4757 = vmatpush1.bf16.msra.mxu0 %v7712_v29  ;;  %v10784_v29 = vld [vmem:[#allocation25_spill] sm:$0xff]  ;;  %v500_v0 = vld [vmem:[#allocation5 + $0x9d0] sm:$0xff]  ;;  %v257_v54 = vld [vmem:[#allocation5 + $0x238] sm:$0xff] }
 0x1d7   :  { %4758 = vmatprep.subr.bf16.mxu0 %v7721_v62  ;;  %4464 = vmatmul.mubr.bf16.gmra.mrb[40].mxu1 %v9650_v46  ;;  %v504_v62 = vld [vmem:[#allocation5 + $0x9f0] sm:$0xff]  ;;  %v7482_v46 = vcombine.low %v237_v58, %v241_v44  ;;  %v265_v58 = vld [vmem:[#allocation5 + $0x278] sm:$0xff]  ;;  %v10786_v44 = vld [vmem:[#allocation29_spill] sm:$0xff] }
 0x1d8   :  { %4985 = vmatpush1.bf16.msra.mxu1 %v7466_v45  ;;  %4473 = vmatprep.mubr.bf16.mxu1 %v9652_v63  ;;  %v7745_v26 = vcombine.high %v500_v0, %v504_v62  ;;  %v508_v45 = vld [vmem:[#allocation5 + $0xa10] sm:$0xff] }
 0x1d9   :  { %4690 = vmatmul.mubr.bf16.gmra.mrb[40].mxu0 %v10783_v14  ;;  %4986 = vmatprep.subr.bf16.mxu1 %v7475_v52  ;;  %v7736_v14 = vcombine.low %v492_v35, %v496_v17  ;;  %v10785_v52 = vld [vmem:[#allocation27_spill] sm:$0xff] }
 0x1da   :  { %4759 = vmatpush1.bf16.msra.mxu0 %v7720_v15  ;;  %4699 = vmatprep.mubr.bf16.mxu0 %v10784_v29  ;;  %v512_v15 = vld [vmem:[#allocation5 + $0xa30] sm:$0xff]  ;;  %v7744_v29 = vcombine.low %v500_v0, %v504_v62  ;;  %v261_v17 = vld [vmem:[#allocation5 + $0x258] sm:$0xff] }
 0x1db   :  { %4760 = vmatprep.subr.bf16.mxu0 %v7729_v21  ;;  %v7490_v21 = vcombine.low %v245_v50, %v249_v19  ;;  %v7753_v35 = vcombine.high %v508_v45, %v512_v15  ;;  %v269_v50 = vld [vmem:[#allocation5 + $0x298] sm:$0xff]  ;;  %v524_v0 = vld [vmem:[#allocation5 + $0xa90] sm:$0xff] }
 0x1dc   :  { %4987 = vmatpush1.bf16.msra.mxu1 %v7474_v10  ;;  %v7499_v10 = vcombine.high %v253_v31, %v257_v54  ;;  %v273_v19 = vld [vmem:[#allocation5 + $0x2b8] sm:$0xff]  ;;  %v528_v62 = vld [vmem:[#allocation5 + $0xab0] sm:$0xff] }
 0x1dd   :  { %4988 = vmatprep.subr.bf16.mxu1 %v7483_v16  ;;  %v520_v16 = vld [vmem:[#allocation5 + $0xa70] sm:$0xff] }
 0x1de   :  { %4761 = vmatpush1.bf16.msra.mxu0 %v7728_v37  ;;  %v516_v37 = vld [vmem:[#allocation5 + $0xa50] sm:$0xff] }
 0x1df   :  { %4762 = vmatprep.subr.bf16.mxu0 %v7737_v51  ;;  %4474 = vmatmul.mubr.bf16.gmra.mrb[44].mxu1 %v9658_v12  ;;  %v7498_v51 = vcombine.low %v253_v31, %v257_v54  ;;  %v7752_v12 = vcombine.low %v508_v45, %v512_v15  ;;  %v7515_v31 = vcombine.high %v269_v50, %v273_v19  ;;  %v277_v54 = vld [vmem:[#allocation5 + $0x2d8] sm:$0xff]  ;;  %v10788_v15 = vld [vmem:[#allocation33_spill] sm:$0xff] }
 0x1e0   :  { %4989 = vmatpush1.bf16.msra.mxu1 %v7482_v46  ;;  %4483 = vmatprep.mubr.bf16.mxu1 %v9660_v43  ;;  %v7507_v46 = vcombine.high %v261_v17, %v265_v58  ;;  %v281_v45 = vld [vmem:[#allocation5 + $0x2f8] sm:$0xff] }
 0x1e1   :  { %4700 = vmatmul.mubr.bf16.gmra.mrb[44].mxu0 %v10785_v52  ;;  %4990 = vmatprep.subr.bf16.mxu1 %v7491_v18  ;;  %v10787_v18 = vld [vmem:[#allocation31_spill] sm:$0xff] }
 0x1e2   :  { %4763 = vmatpush1.bf16.msra.mxu0 %v7736_v14  ;;  %4709 = vmatprep.mubr.bf16.mxu0 %v10786_v44  ;;  %v7761_v14 = vcombine.high %v516_v37, %v520_v16  ;;  %v7760_v44 = vcombine.low %v516_v37, %v520_v16  ;;  %v289_v37 = vld [vmem:[#allocation5 + $0x338] sm:$0xff]  ;;  %v540_v16 = vld [vmem:[#allocation5 + $0xb10] sm:$0xff] }
 0x1e3   :  { %4764 = vmatprep.subr.bf16.mxu0 %v7745_v26  ;;  %v7506_v26 = vcombine.low %v261_v17, %v265_v58  ;;  %v7523_v17 = vcombine.high %v277_v54, %v281_v45  ;;  %v285_v58 = vld [vmem:[#allocation5 + $0x318] sm:$0xff] }
 0x1e4   :  { %4991 = vmatpush1.bf16.msra.mxu1 %v7490_v21  ;;  %v532_v21 = vld [vmem:[#allocation5 + $0xad0] sm:$0xff] }
 0x1e5   :  { %4992 = vmatprep.subr.bf16.mxu1 %v7499_v10  ;;  %v536_v10 = vld [vmem:[#allocation5 + $0xaf0] sm:$0xff] }
 0x1e6   :  { %4765 = vmatpush1.bf16.msra.mxu0 %v7744_v29  ;;  %v7769_v29 = vcombine.high %v524_v0, %v528_v62 }
 0x1e7   :  { %4766 = vmatprep.subr.bf16.mxu0 %v7753_v35  ;;  %4484 = vmatmul.mubr.bf16.gmra.mrb[48].mxu1 %v9666_v36  ;;  %v7514_v35 = vcombine.low %v269_v50, %v273_v19  ;;  %v7768_v36 = vcombine.low %v524_v0, %v528_v62  ;;  %v7531_v50 = vcombine.high %v285_v58, %v289_v37  ;;  %v293_v19 = vld [vmem:[#allocation5 + $0x358] sm:$0xff]  ;;  %v10790_v62 = vld [vmem:[#allocation37_spill] sm:$0xff] }
 0x1e8   :  { %4993 = vmatpush1.bf16.msra.mxu1 %v7498_v51  ;;  %4493 = vmatprep.mubr.bf16.mxu1 %v9668_v55  ;;  %v544_v51 = vld [vmem:[#allocation5 + $0xb30] sm:$0xff]  ;;  %v297_v0 = vld [vmem:[#allocation5 + $0x378] sm:$0xff] }
 0x1e9   :  { %4710 = vmatmul.mubr.bf16.gmra.mrb[48].mxu0 %v10787_v18  ;;  %4994 = vmatprep.subr.bf16.mxu1 %v7507_v46  ;;  %v10789_v46 = vld [vmem:[#allocation35_spill] sm:$0xff] }
 0x1ea   :  { %4767 = vmatpush1.bf16.msra.mxu0 %v7752_v12  ;;  %4719 = vmatprep.mubr.bf16.mxu0 %v10788_v15  ;;  %v7777_v12 = vcombine.high %v532_v21, %v536_v10  ;;  %v7776_v15 = vcombine.low %v532_v21, %v536_v10  ;;  %v305_v21 = vld [vmem:[#allocation5 + $0x3b8] sm:$0xff]  ;;  %v556_v10 = vld [vmem:[#allocation5 + $0xb90] sm:$0xff] }
 0x1eb   :  { %4768 = vmatprep.subr.bf16.mxu0 %v7761_v14  ;;  %v7522_v14 = vcombine.low %v277_v54, %v281_v45  ;;  %v7539_v54 = vcombine.high %v293_v19, %v297_v0  ;;  %v301_v45 = vld [vmem:[#allocation5 + $0x398] sm:$0xff] }
 0x1ec   :  { %4995 = vmatpush1.bf16.msra.mxu1 %v7506_v26  ;;  %v548_v26 = vld [vmem:[#allocation5 + $0xb50] sm:$0xff] }
 0x1ed   :  { %4996 = vmatprep.subr.bf16.mxu1 %v7515_v31  ;;  %v552_v31 = vld [vmem:[#allocation5 + $0xb70] sm:$0xff] }
 0x1ee   :  { %4769 = vmatpush1.bf16.msra.mxu0 %v7760_v44  ;;  %v7785_v44 = vcombine.high %v540_v16, %v544_v51 }
 0x1ef   :  { %4770 = vmatprep.subr.bf16.mxu0 %v7769_v29  ;;  %4494 = vmatmul.mubr.bf16.gmra.mrb[52].mxu1 %v9674_v6  ;;  %v7530_v29 = vcombine.low %v285_v58, %v289_v37  ;;  %v7784_v6 = vcombine.low %v540_v16, %v544_v51  ;;  %v7547_v58 = vcombine.high %v301_v45, %v305_v21  ;;  %v309_v37 = vld [vmem:[#allocation5 + $0x3d8] sm:$0xff]  ;;  %v564_v51 = vld [vmem:[#allocation5 + $0xbd0] sm:$0xff] }
 0x1f0   :  { %4997 = vmatpush1.bf16.msra.mxu1 %v7514_v35  ;;  %4503 = vmatprep.mubr.bf16.mxu1 %v9676_v1  ;;  %v560_v35 = vld [vmem:[#allocation5 + $0xbb0] sm:$0xff]  ;;  %v313_v16 = vld [vmem:[#allocation5 + $0x3f8] sm:$0xff] }
 0x1f1   :  { %4720 = vmatmul.mubr.bf16.gmra.mrb[52].mxu0 %v10789_v46  ;;  %4998 = vmatprep.subr.bf16.mxu1 %v7523_v17  ;;  %v7538_v17 = vcombine.low %v293_v19, %v297_v0  ;;  %v7555_v19 = vcombine.high %v309_v37, %v313_v16  ;;  %v317_v0 = vld [vmem:[#allocation5 + $0x418] sm:$0xff] }
 0x1f2   :  { %4771 = vmatpush1.bf16.msra.mxu0 %v7768_v36  ;;  %4729 = vmatprep.mubr.bf16.mxu0 %v10790_v62  ;;  %v7793_v36 = vcombine.high %v548_v26, %v552_v31 }
 0x1f3   :  { %4772 = vmatprep.subr.bf16.mxu0 %v7777_v12  ;;  %v7792_v12 = vcombine.low %v548_v26, %v552_v31  ;;  %v321_v26 = vld [vmem:[#allocation5 + $0x438] sm:$0xff]  ;;  %v572_v31 = vld [vmem:[#allocation5 + $0xc10] sm:$0xff] }
 0x1f4   :  { %4999 = vmatpush1.bf16.msra.mxu1 %v7522_v14  ;;  %v568_v14 = vld [vmem:[#allocation5 + $0xbf0] sm:$0xff] }
 0x1f5   :  { %5000 = vmatprep.subr.bf16.mxu1 %v7531_v50  ;;  %v7546_v50 = vcombine.low %v301_v45, %v305_v21  ;;  %v7563_v45 = vcombine.high %v317_v0, %v321_v26 }
 0x1f6   :  { %4773 = vmatpush1.bf16.msra.mxu0 %v7776_v15  ;;  %v7801_v15 = vcombine.high %v556_v10, %v560_v35 }
 0x1f7   :  { %4774 = vmatprep.subr.bf16.mxu0 %v7785_v44  ;;  %4504 = vmatmul.mubr.bf16.gmra.mrb[56].mxu1 %v9682_v61  ;;  %v7800_v44 = vcombine.low %v556_v10, %v560_v35  ;;  %v325_v10 = vld [vmem:[#allocation5 + $0x458] sm:$0xff] }
 0x1f8   :  { %5001 = vmatpush1.bf16.msra.mxu1 %v7530_v29  ;;  %4513 = vmatprep.mubr.bf16.mxu1 %v9684_v40  ;;  %v576_v29 = vld [vmem:[#allocation5 + $0xc30] sm:$0xff]  ;;  %v329_v35 = vld [vmem:[#allocation5 + $0x478] sm:$0xff] }
 0x1f9   :  { %4730 = vmatmul.mubr.bf16.gmra.mrb[56].mxu0 %v9550_v11  ;;  %5002 = vmatprep.subr.bf16.mxu1 %v7539_v54  ;;  %v7554_v54 = vcombine.low %v309_v37, %v313_v16  ;;  %v7817_v21 = vcombine.high %v572_v31, %v576_v29  ;;  %v7571_v37 = vcombine.high %v325_v10, %v329_v35 }
 0x1fa   :  { %4775 = vmatpush1.bf16.msra.mxu0 %v7784_v6  ;;  %4739 = vmatprep.mubr.bf16.mxu0 %v9555_v30  ;;  %v7809_v6 = vcombine.high %v564_v51, %v568_v14 }
 0x1fb   :  { %4776 = vmatprep.subr.bf16.mxu0 %v7793_v36  ;;  %v7808_v36 = vcombine.low %v564_v51, %v568_v14  ;;  %v333_v51 = vld [vmem:[#allocation5 + $0x498] sm:$0xff] }
 0x1fc   :  { %5003 = vmatpush1.bf16.msra.mxu1 %v7538_v17  ;;  %v580_v17 = vld [vmem:[#allocation5 + $0xc50] sm:$0xff]  ;;  %v337_v14 = vld [vmem:[#allocation5 + $0x4b8] sm:$0xff] }
 0x1fd   :  { %5004 = vmatprep.subr.bf16.mxu1 %v7547_v58  ;;  %v7562_v58 = vcombine.low %v317_v0, %v321_v26  ;;  %v700_v0 = vlaneseq }
 0x1fe   :  { %4777 = vmatpush1.bf16.msra.mxu0 %v7792_v12  ;;  %v584_v12 = vld [vmem:[#allocation5 + $0xc70] sm:$0xff] }
 0x1ff   :  { %4778 = vmatprep.subr.bf16.mxu0 %v7801_v15  ;;  %4514 = vmatmul.mubr.bf16.gmra.mrb[60].mxu1 %v9690_v24  ;;  %v7816_v15 = vcombine.low %v572_v31, %v576_v29  ;;  %v7825_v16 = vcombine.high %v580_v17, %v584_v12  ;;  %v341_v31 = vld [vmem:[#allocation5 + $0x4d8] sm:$0xff] }
 0x200   :  { %5005 = vmatpush1.bf16.msra.mxu1 %v7546_v50  ;;  %5008 = vmatprep.mubr.bf16.mxu1 %v9460_v59  ;;  %v588_v50 = vld [vmem:[#allocation5 + $0xc90] sm:$0xff]  ;;  %v7570_v59 = vcombine.low %v325_v10, %v329_v35  ;;  %v345_v29 = vld [vmem:[#allocation5 + $0x4f8] sm:$0xff]  ;;  %v9828_v10 = vshrl.u32 %v700_v0, 7 }
 0x201   :  { %4740 = vmatmul.mubr.bf16.gmra.mrb[60].mxu0 %v9562_v47  ;;  %5006 = vmatprep.subr.bf16.mxu1 %v7555_v19  ;;  %v7824_v19 = vcombine.low %v580_v17, %v584_v12  ;;  %v349_v17 = vld [vmem:[#allocation5 + $0x518] sm:$0xff] }
 0x202   :  { %4779 = vmatpush1.bf16.msra.mxu0 %v7800_v44  ;;  %4782 = vmatprep.mubr.bf16.mxu0 %v9564_v2  ;;  %v592_v44 = vld [vmem:[#allocation5 + $0xcb0] sm:$0xff]  ;;  %10791 = vst [vmem:[#allocation27_spill] sm:$0xff] %v9828_v10  ;;  %v353_v12 = vld [vmem:[#allocation5 + $0x538] sm:$0xff] }
 0x203   :  { %4780 = vmatprep.subr.bf16.mxu0 %v7809_v6  ;;  %v7579_v6 = vcombine.high %v333_v51, %v337_v14  ;;  %v7833_v26 = vcombine.high %v588_v50, %v592_v44  ;;  %v7594_v0 = vcombine.low %v349_v17, %v353_v12 }
 0x204   :  { %5007 = vmatpush1.bf16.msra.mxu1 %v7554_v54  ;;  %v600_v54 = vld [vmem:[#allocation5 + $0xcf0] sm:$0xff] }
 0x205   :  { %5089 = vmatprep.subr.bf16.mxu1 %v7563_v45  ;;  %v7832_v45 = vcombine.low %v588_v50, %v592_v44  ;;  %v357_v50 = vld [vmem:[#allocation5 + $0x558] sm:$0xff] }
 0x206   :  { %4781 = vmatpush1.bf16.msra.mxu0 %v7808_v36  ;;  %v7578_v36 = vcombine.low %v333_v51, %v337_v14  ;;  %v10699_v51 = vsub.s32 0, %v9828_v10  ;;  %v361_v44 = vld [vmem:[#allocation5 + $0x578] sm:$0xff] }
 0x207   :  { %4863 = vmatprep.subr.bf16.mxu0 %v7817_v21  ;;  %5009 = vmatmul.mubr.bf16.vlgmr.msra.gmra.mrb[64].mxu1 %v9474_v22  ;;  %v596_v22 = vld [vmem:[#allocation5 + $0xcd0] sm:$0xff]  ;;  %v7587_v21 = vcombine.high %v341_v31, %v345_v29 }
 0x208   :  { %5090 = vmatpush1.bf16.msra.mxu1 %v7562_v58  ;;  %5018 = vmatprep.mubr.bf16.mxu1 %v9480_v33  ;;  %v7841_v35 = vcombine.high %v596_v22, %v600_v54  ;;  %v604_v58 = vld [vmem:[#allocation5 + $0xd10] sm:$0xff]  ;;  %v7586_v33 = vcombine.low %v341_v31, %v345_v29  ;;  %v7603_v31 = vcombine.high %v357_v50, %v361_v44 }
 0x209   :  { %4783 = vmatmul.mubr.bf16.vlgmr.msra.gmra.mrb[32].mxu0 %v9570_v25  ;;  %5091 = vmatprep.subr.bf16.mxu1 %v7571_v37  ;;  %v7840_v37 = vcombine.low %v596_v22, %v600_v54  ;;  %v365_v54 = vld [vmem:[#allocation5 + $0x598] sm:$0xff] }
 0x20a   :  { %4864 = vmatpush1.bf16.msra.mxu0 %v7816_v15  ;;  %4792 = vmatprep.mubr.bf16.mxu0 %v9572_v38  ;;  %v608_v15 = vld [vmem:[#allocation5 + $0xd30] sm:$0xff] }
 0x20b   :  { %4865 = vmatprep.subr.bf16.mxu0 %v7825_v16  ;;  %v7595_v16 = vcombine.high %v349_v17, %v353_v12  ;;  %v7849_v14 = vcombine.high %v604_v58, %v608_v15  ;;  %v10796_v38 = vld [vmem:[#allocation26_spill] sm:$0xff] }
 0x20c   :  { %5092 = vmatpush1.bf16.msra.mxu1 %v7570_v59  ;;  %v698_v59 = vld [vmem:[#allocation7] sm:$0xff] }
 0x20d   :  { %5093 = vmatprep.subr.bf16.mxu1 %v7579_v6  ;;  %v616_v6 = vld [vmem:[#allocation5 + $0xd70] sm:$0xff]  ;;  %v9838_v29 = vrot.slane %v698_v59, %v10699_v51 }
 0x20e   :  { %4866 = vmatpush1.bf16.msra.mxu0 %v7824_v19  ;;  %v612_v19 = vld [vmem:[#allocation5 + $0xd50] sm:$0xff] }
 0x20f   :  { %4867 = vmatprep.subr.bf16.mxu0 %v7833_v26  ;;  %5019 = vmatmul.mubr.bf16.gmra.mrb[68].mxu1 %v9488_v42  ;;  %v10698_v42 = vsub.s32 1, %v9828_v10  ;;  %v7848_v26 = vcombine.low %v604_v58, %v608_v15  ;;  %v7857_v22 = vcombine.high %v612_v19, %v616_v6  ;;  %v7856_v17 = vcombine.low %v612_v19, %v616_v6  ;;  %v10792_v15 = vld [vmem:[#allocation45_spill] sm:$0xff] }
 0x210   :  { %5094 = vmatpush1.bf16.msra.mxu1 %v7578_v36  ;;  %5028 = vmatprep.mubr.bf16.mxu1 %v9492_v53  ;;  %v369_v36 = vld [vmem:[#allocation5 + $0x5b8] sm:$0xff]  ;;  %v620_v53 = vld [vmem:[#allocation5 + $0xd90] sm:$0xff]  ;;  %v3655_v58 = vadd.f32 %v9706_v32, %v9838_v29  ;;  %v10795_v19 = vld [vmem:[#allocation65_spill] sm:$0xff] }
 0x211   :  { %4793 = vmatmul.mubr.bf16.gmra.mrb[36].mxu0 %v9578_v3  ;;  %5095 = vmatprep.subr.bf16.mxu1 %v7587_v21  ;;  %v624_v21 = vld [vmem:[#allocation5 + $0xdb0] sm:$0xff]  ;;  %v7611_v12 = vcombine.high %v365_v54, %v369_v36  ;;  %v3659_v6 = vadd.f32 %v10795_v19, %v9838_v29  ;;  %v385_v3 = vld [vmem:[#allocation5 + $0x638] sm:$0xff] }
 0x212   :  { %4868 = vmatpush1.bf16.msra.mxu0 %v7832_v45  ;;  %4802 = vmatprep.mubr.bf16.mxu0 %v9580_v20  ;;  %v9842_v45 = vrot.slane %v698_v59, %v10698_v42  ;;  %v10794_v42 = vld [vmem:[#allocation24_spill] sm:$0xff] }
 0x213   :  { %4869 = vmatprep.subr.bf16.mxu0 %v7841_v35  ;;  %v7602_v35 = vcombine.low %v357_v50, %v361_v44  ;;  %v628_v50 = vld [vmem:[#allocation5 + $0xdd0] sm:$0xff]  ;;  %v381_v20 = vld [vmem:[#allocation5 + $0x618] sm:$0xff] }
 0x214   :  { %5096 = vmatpush1.bf16.msra.mxu1 %v7586_v33  ;;  %v7865_v33 = vcombine.high %v620_v53, %v624_v21  ;;  %v632_v44 = vld [vmem:[#allocation5 + $0xdf0] sm:$0xff]  ;;  %v3661_v32 = vadd.f32 %v9714_v34, %v9842_v45 }
 0x215   :  { %5097 = vmatprep.subr.bf16.mxu1 %v7595_v16  ;;  %v377_v16 = vld [vmem:[#allocation5 + $0x5f8] sm:$0xff]  ;;  %v7873_v10 = vcombine.high %v628_v50, %v632_v44  ;;  %v636_v34 = vld [vmem:[#allocation5 + $0xe10] sm:$0xff] }
 0x216   :  { %4870 = vmatpush1.bf16.msra.mxu0 %v7840_v37  ;;  %v373_v37 = vld [vmem:[#allocation5 + $0x5d8] sm:$0xff] }
 0x217   :  { %4871 = vmatprep.subr.bf16.mxu0 %v7849_v14  ;;  %5029 = vmatmul.mubr.bf16.gmra.mrb[72].mxu1 %v9500_v8  ;;  %v10793_v8 = vld [vmem:[#allocation64_spill] sm:$0xff] }
 0x218   :  { %5098 = vmatpush1.bf16.msra.mxu1 %v7594_v0  ;;  %v3657_v14 = vadd.f32 %v10793_v8, %v9842_v45  ;;  %5038 = vmatprep.mubr.bf16.mxu1 %v10794_v42  ;;  %v7619_v8 = vcombine.high %v373_v37, %v377_v16 }
 0x219   :  { %4803 = vmatmul.mubr.bf16.gmra.mrb[40].mxu0 %v9586_v41  ;;  %5099 = vmatprep.subr.bf16.mxu1 %v7603_v31  ;;  %v7610_v31 = vcombine.low %v365_v54, %v369_v36  ;;  %v10797_v54 = vld [vmem:[#allocation46_spill] sm:$0xff]  ;;  %v7618_v36 = vcombine.low %v373_v37, %v377_v16 }
 0x21a   :  { %4872 = vmatpush1.bf16.msra.mxu0 %v7848_v26  ;;  %4812 = vmatprep.mubr.bf16.mxu0 %v10792_v15  ;;  %v7864_v15 = vcombine.low %v620_v53, %v624_v21 }
 0x21b   :  { %4873 = vmatprep.subr.bf16.mxu0 %v7857_v22 }
 0x21c   :  { %v3993_v59 = vpop.f32.mrb[0].mxu0  ;;  %5100 = vmatpush1.bf16.msra.mxu1 %v7602_v35 }
 0x21d   :  { %v8200_v0 = vadd.f32 %v3993_v59, %v3655_v58  ;;  %v3995_v26 = vpop.f32.mrb[1].mxu0  ;;  %5101 = vmatprep.subr.bf16.mxu1 %v7611_v12  ;;  %v640_v58 = vld [vmem:[#allocation5 + $0xe30] sm:$0xff]  ;;  %v3665_v12 = vadd.f32 %v9718_v23, %v9838_v29 }
 0x21e   :  { %v8202_v22 = vadd.f32 %v3995_v26, %v3657_v14  ;;  %v3997_v51 = vpop.f32.mrb[2].mxu0  ;;  %4874 = vmatpush1.bf16.msra.mxu0 %v7856_v17  ;;  %v7627_v17 = vcombine.high %v381_v20, %v385_v3  ;;  %v7881_v14 = vcombine.high %v636_v34, %v640_v58  ;;  %v10801_v23 = vld [vmem:[#allocation67_spill] sm:$0xff] }
 0x21f   :  { %v8204_v41 = vadd.f32 %v3997_v51, %v3659_v6  ;;  %v3999_v42 = vpop.f32.mrb[3].mxu0  ;;  %4875 = vmatprep.subr.bf16.mxu0 %v7865_v33  ;;  %5039 = vmatmul.mubr.bf16.gmra.mrb[76].mxu1 %v10796_v38  ;;  %v5428_v59 = vmax.f32 %v8200_v0, 0.0  ;;  %v7872_v51 = vcombine.low %v628_v50, %v632_v44  ;;  %v10798_v38 = vld [vmem:[#allocation47_spill] sm:$0xff]  ;;  %v10800_v50 = vld [vmem:[#allocation28_spill] sm:$0xff]  ;;  %v3669_v26 = vadd.f32 %v10801_v23, %v9838_v29 }
 0x220   :  { %v8206_v19 = vadd.f32 %v3999_v42, %v3661_v32  ;;  %5102 = vmatpush1.bf16.msra.mxu1 %v7610_v31  ;;  %v5429_v53 = vmax.f32 %v8202_v22, 0.0  ;;  %v393_v6 = vld [vmem:[#allocation5 + $0x678] sm:$0xff]  ;;  %v10799_v32 = vld [vmem:[#allocation66_spill] sm:$0xff]  ;;  %5048 = vmatprep.mubr.bf16.mxu1 %v10800_v50 }
 0x221   :  { %v5436_v35 = vmax.f32 %v8204_v41, 0.0  ;;  %4813 = vmatmul.mubr.bf16.gmra.mrb[44].mxu0 %v10797_v54  ;;  %5103 = vmatprep.subr.bf16.mxu1 %v7619_v8  ;;  %v389_v41 = vld [vmem:[#allocation5 + $0x658] sm:$0xff]  ;;  %v3667_v37 = vadd.f32 %v10799_v32, %v9842_v45  ;;  %v644_v44 = vld [vmem:[#allocation5 + $0xe50] sm:$0xff]  ;;  %v7626_v8 = vcombine.low %v381_v20, %v385_v3 }
 0x222   :  { %v5437_v21 = vmax.f32 %v8206_v19, 0.0  ;;  %4876 = vmatpush1.bf16.msra.mxu0 %v7864_v15  ;;  %4822 = vmatprep.mubr.bf16.mxu0 %v10798_v38  ;;  %v648_v0 = vld [vmem:[#allocation5 + $0xe70] sm:$0xff]  ;;  %v397_v50 = vld [vmem:[#allocation5 + $0x698] sm:$0xff]  ;;  %v7634_v20 = vcombine.low %v389_v41, %v393_v6 }
 0x223   :  { %v9860_v33 = vpack.c.bf16 %v5436_v35, %v5428_v59  ;;  %4877 = vmatprep.subr.bf16.mxu0 %v7873_v10  ;;  %v3671_v10 = vadd.f32 %v9726_v4, %v9842_v45  ;;  %v7880_v59 = vcombine.low %v636_v34, %v640_v58  ;;  %v7635_v35 = vcombine.high %v389_v41, %v393_v6  ;;  %v401_v38 = vld [vmem:[#allocation5 + $0x6b8] sm:$0xff]  ;;  %v10802_v54 = vld [vmem:[#allocation30_spill] sm:$0xff] }
 0x224   :  { %v9865_v16 = vpack.c.bf16 %v5437_v21, %v5429_v53  ;;  %v4003_v15 = vpop.f32.mrb[4].mxu0  ;;  %5104 = vmatpush1.bf16.msra.mxu1 %v7618_v36  ;;  %v7889_v32 = vcombine.high %v644_v44, %v648_v0  ;;  %v652_v4 = vld [vmem:[#allocation5 + $0xe90] sm:$0xff]  ;;  %v10803_v3 = vld [vmem:[#allocation48_spill] sm:$0xff] }
 0x225   :  { %v8208_v31 = vadd.f32 %v4003_v15, %v3665_v12  ;;  %v4005_v22 = vpop.f32.mrb[5].mxu0  ;;  %5105 = vmatprep.subr.bf16.mxu1 %v7627_v17  ;;  %v656_v12 = vld [vmem:[#allocation5 + $0xeb0] sm:$0xff]  ;;  %v7643_v17 = vcombine.high %v397_v50, %v401_v38 }
 0x226   :  { %v8210_v42 = vadd.f32 %v4005_v22, %v3667_v37  ;;  %v4007_v19 = vpop.f32.mrb[6].mxu0  ;;  %4878 = vmatpush1.bf16.msra.mxu0 %v7872_v51  ;;  %v7888_v51 = vcombine.low %v644_v44, %v648_v0  ;;  %v10805_v22 = vld [vmem:[#allocation68_spill] sm:$0xff]  ;;  %v660_v0 = vld [vmem:[#allocation5 + $0xed0] sm:$0xff] }
 0x227   :  { %v8212_v53 = vadd.f32 %v4007_v19, %v3669_v26  ;;  %v4009_v21 = vpop.f32.mrb[7].mxu0  ;;  %4879 = vmatprep.subr.bf16.mxu0 %v7881_v14  ;;  %5049 = vmatmul.mubr.bf16.gmra.mrb[80].mxu1 %v10802_v54  ;;  %v5444_v15 = vmax.f32 %v8208_v31, 0.0  ;;  %v3675_v14 = vadd.f32 %v9730_v7, %v9838_v29  ;;  %v10804_v54 = vld [vmem:[#allocation49_spill] sm:$0xff]  ;;  %v7897_v26 = vcombine.high %v652_v4, %v656_v12  ;;  %v409_v31 = vld [vmem:[#allocation5 + $0x6f8] sm:$0xff] }
 0x228   :  { %v8214_v23 = vadd.f32 %v4009_v21, %v3671_v10  ;;  %5106 = vmatpush1.bf16.msra.mxu1 %v7626_v8  ;;  %v5445_v34 = vmax.f32 %v8210_v42, 0.0  ;;  %v405_v10 = vld [vmem:[#allocation5 + $0x6d8] sm:$0xff]  ;;  %v3677_v41 = vadd.f32 %v10805_v22, %v9842_v45  ;;  %v664_v42 = vld [vmem:[#allocation5 + $0xef0] sm:$0xff]  ;;  %v10807_v7 = vld [vmem:[#allocation69_spill] sm:$0xff]  ;;  %v7642_v21 = vcombine.low %v397_v50, %v401_v38 }
 0x229   :  { %v5452_v36 = vmax.f32 %v8212_v53, 0.0  ;;  %4823 = vmatmul.mubr.bf16.gmra.mrb[48].mxu0 %v10803_v3  ;;  %5107 = vmatprep.subr.bf16.mxu1 %v7635_v35  ;;  %v10806_v44 = vld [vmem:[#allocation32_spill] sm:$0xff]  ;;  %v3679_v19 = vadd.f32 %v10807_v7, %v9838_v29  ;;  %v7905_v22 = vcombine.high %v660_v0, %v664_v42  ;;  %v10808_v3 = vld [vmem:[#allocation34_spill] sm:$0xff]  ;;  %v7650_v50 = vcombine.low %v405_v10, %v409_v31 }
 0x22a   :  { %v5453_v58 = vmax.f32 %v8214_v23, 0.0  ;;  %4880 = vmatpush1.bf16.msra.mxu0 %v7880_v59  ;;  %4832 = vmatprep.mubr.bf16.mxu0 %v10804_v54  ;;  %v3681_v59 = vadd.f32 %v9738_v39, %v9842_v45  ;;  %v417_v54 = vld [vmem:[#allocation5 + $0x738] sm:$0xff]  ;;  %v668_v39 = vld [vmem:[#allocation5 + $0xf10] sm:$0xff] }
 0x22b   :  { %v9876_v37 = vpack.c.bf16 %v5452_v36, %v5444_v15  ;;  %4881 = vmatprep.subr.bf16.mxu0 %v7889_v32  ;;  %5058 = vmatprep.mubr.bf16.mxu1 %v10806_v44  ;;  %v7896_v15 = vcombine.low %v652_v4, %v656_v12  ;;  %v7651_v36 = vcombine.high %v405_v10, %v409_v31  ;;  %v413_v44 = vld [vmem:[#allocation5 + $0x718] sm:$0xff]  ;;  %v10809_v38 = vld [vmem:[#allocation50_spill] sm:$0xff] }
 0x22c   :  { %v9881_v6 = vpack.c.bf16 %v5453_v58, %v5445_v34  ;;  %v4013_v8 = vpop.f32.mrb[8].mxu0  ;;  %5108 = vmatpush1.bf16.msra.mxu1 %v7634_v20 }
 0x22d   :  { %v8216_v35 = vadd.f32 %v4013_v8, %v3675_v14  ;;  %v4015_v53 = vpop.f32.mrb[9].mxu0  ;;  %5109 = vmatprep.subr.bf16.mxu1 %v7643_v17  ;;  %v672_v14 = vld [vmem:[#allocation5 + $0xf30] sm:$0xff]  ;;  %v7659_v17 = vcombine.high %v413_v44, %v417_v54 }
 0x22e   :  { %v8218_v32 = vadd.f32 %v4015_v53, %v3677_v41  ;;  %v4017_v23 = vpop.f32.mrb[10].mxu0  ;;  %4882 = vmatpush1.bf16.msra.mxu0 %v7888_v51  ;;  %v7904_v51 = vcombine.low %v660_v0, %v664_v42  ;;  %v10811_v53 = vld [vmem:[#allocation70_spill] sm:$0xff]  ;;  %v10812_v0 = vld [vmem:[#allocation36_spill] sm:$0xff] }
 0x22f   :  { %v8220_v34 = vadd.f32 %v4017_v23, %v3679_v19  ;;  %v4019_v58 = vpop.f32.mrb[11].mxu0  ;;  %4883 = vmatprep.subr.bf16.mxu0 %v7897_v26  ;;  %5059 = vmatmul.mubr.bf16.gmra.mrb[84].mxu1 %v10808_v3  ;;  %v5460_v8 = vmax.f32 %v8216_v35, 0.0  ;;  %v3685_v26 = vadd.f32 %v9742_v27, %v9838_v29  ;;  %v10810_v3 = vld [vmem:[#allocation51_spill] sm:$0xff]  ;;  %v7913_v19 = vcombine.high %v668_v39, %v672_v14 }
 0x230   :  { %v8222_v7 = vadd.f32 %v4019_v58, %v3681_v59  ;;  %5110 = vmatpush1.bf16.msra.mxu1 %v7642_v21  ;;  %v5461_v4 = vmax.f32 %v8218_v32, 0.0  ;;  %v421_v59 = vld [vmem:[#allocation5 + $0x758] sm:$0xff]  ;;  %v3687_v10 = vadd.f32 %v10811_v53, %v9842_v45  ;;  %5068 = vmatprep.mubr.bf16.mxu1 %v10812_v0  ;;  %v676_v42 = vld [vmem:[#allocation5 + $0xf50] sm:$0xff]  ;;  %v7658_v58 = vcombine.low %v413_v44, %v417_v54 }
 0x231   :  { %v5468_v20 = vmax.f32 %v8220_v34, 0.0  ;;  %4833 = vmatmul.mubr.bf16.gmra.mrb[52].mxu0 %v10809_v38  ;;  %5111 = vmatprep.subr.bf16.mxu1 %v7651_v36  ;;  %v425_v35 = vld [vmem:[#allocation5 + $0x778] sm:$0xff]  ;;  %v680_v32 = vld [vmem:[#allocation5 + $0xf70] sm:$0xff] }
 0x232   :  { %v5469_v12 = vmax.f32 %v8222_v7, 0.0  ;;  %4884 = vmatpush1.bf16.msra.mxu0 %v7896_v15  ;;  %4842 = vmatprep.mubr.bf16.mxu0 %v10810_v3  ;;  %v10813_v27 = vld [vmem:[#allocation71_spill] sm:$0xff]  ;;  %v3691_v15 = vadd.f32 %v9750_v56, %v9842_v45  ;;  %v7921_v53 = vcombine.high %v676_v42, %v680_v32  ;;  %v10814_v38 = vld [vmem:[#allocation38_spill] sm:$0xff]  ;;  %v10815_v54 = vld [vmem:[#allocation52_spill] sm:$0xff]  ;;  %v7666_v44 = vcombine.low %v421_v59, %v425_v35 }
 0x233   :  { %v9892_v41 = vpack.c.bf16 %v5468_v20, %v5460_v8  ;;  %4885 = vmatprep.subr.bf16.mxu0 %v7905_v22  ;;  %v3689_v23 = vadd.f32 %v10813_v27, %v9838_v29  ;;  %v7912_v8 = vcombine.low %v668_v39, %v672_v14  ;;  %v7667_v20 = vcombine.high %v421_v59, %v425_v35  ;;  %v429_v0 = vld [vmem:[#allocation5 + $0x798] sm:$0xff]  ;;  %v684_v56 = vld [vmem:[#allocation5 + $0xf90] sm:$0xff] }
 0x234   :  { %v9897_v31 = vpack.c.bf16 %v5469_v12, %v5461_v4  ;;  %v4023_v21 = vpop.f32.mrb[12].mxu0  ;;  %5112 = vmatpush1.bf16.msra.mxu1 %v7650_v50  ;;  %v433_v3 = vld [vmem:[#allocation5 + $0x7b8] sm:$0xff] }
 0x235   :  { %v8224_v36 = vadd.f32 %v4023_v21, %v3685_v26  ;;  %v4025_v34 = vpop.f32.mrb[13].mxu0  ;;  %5113 = vmatprep.subr.bf16.mxu1 %v7659_v17  ;;  %v688_v26 = vld [vmem:[#allocation5 + $0xfb0] sm:$0xff]  ;;  %v7675_v17 = vcombine.high %v429_v0, %v433_v3 }
 0x236   :  { %v8226_v22 = vadd.f32 %v4025_v34, %v3687_v10  ;;  %v4027_v7 = vpop.f32.mrb[14].mxu0  ;;  %4886 = vmatpush1.bf16.msra.mxu0 %v7904_v51  ;;  %v7920_v51 = vcombine.low %v676_v42, %v680_v32  ;;  %v10817_v34 = vld [vmem:[#allocation72_spill] sm:$0xff]  ;;  %v10818_v42 = vld [vmem:[#allocation39_spill] sm:$0xff] }
 0x237   :  { %v8228_v4 = vadd.f32 %v4027_v7, %v3689_v23  ;;  %v4029_v12 = vpop.f32.mrb[15].mxu0  ;;  %4887 = vmatprep.subr.bf16.mxu0 %v7913_v19  ;;  %5069 = vmatmul.mubr.bf16.gmra.mrb[88].mxu1 %v10814_v38  ;;  %v5476_v21 = vmax.f32 %v8224_v36, 0.0  ;;  %v3695_v19 = vadd.f32 %v9754_v48, %v9838_v29  ;;  %v10816_v38 = vld [vmem:[#allocation53_spill] sm:$0xff]  ;;  %v7929_v23 = vcombine.high %v684_v56, %v688_v26  ;;  %v441_v36 = vld [vmem:[#allocation5 + $0x7f8] sm:$0xff]  ;;  %v692_v32 = vld [vmem:[#allocation5 + $0xfd0] sm:$0xff] }
 0x238   :  { %v8230_v27 = vadd.f32 %v4029_v12, %v3691_v15  ;;  %5114 = vmatpush1.bf16.msra.mxu1 %v7658_v58  ;;  %v5477_v39 = vmax.f32 %v8226_v22, 0.0  ;;  %v437_v15 = vld [vmem:[#allocation5 + $0x7d8] sm:$0xff]  ;;  %v3697_v59 = vadd.f32 %v10817_v34, %v9842_v45  ;;  %5078 = vmatprep.mubr.bf16.mxu1 %v10818_v42  ;;  %v696_v22 = vld [vmem:[#allocation5 + $0xff0] sm:$0xff]  ;;  %v10819_v48 = vld [vmem:[#allocation73_spill] sm:$0xff]  ;;  %v7674_v12 = vcombine.low %v429_v0, %v433_v3 }
 0x239   :  { %v5484_v50 = vmax.f32 %v8228_v4, 0.0  ;;  %4843 = vmatmul.mubr.bf16.gmra.mrb[56].mxu0 %v10815_v54  ;;  %5115 = vmatprep.subr.bf16.mxu1 %v7667_v20  ;;  %v3699_v7 = vadd.f32 %v10819_v48, %v9838_v29  ;;  %v7937_v34 = vcombine.high %v692_v32, %v696_v22  ;;  %v445_v42 = vld [vmem:[#allocation5 + $0x818] sm:$0xff]  ;;  %v7682_v3 = vcombine.low %v437_v15, %v441_v36 }
 0x23a   :  { %v5485_v14 = vmax.f32 %v8230_v27, 0.0  ;;  %4888 = vmatpush1.bf16.msra.mxu0 %v7912_v8  ;;  %4852 = vmatprep.mubr.bf16.mxu0 %v10816_v38  ;;  %v3701_v8 = vadd.f32 %v9762_v5, %v9842_v45  ;;  %v449_v38 = vld [vmem:[#allocation5 + $0x838] sm:$0xff] }
 0x23b   :  { %v9908_v10 = vpack.c.bf16 %v5484_v50, %v5476_v21  ;;  %4889 = vmatprep.subr.bf16.mxu0 %v7921_v53  ;;  %v7928_v21 = vcombine.low %v684_v56, %v688_v26  ;;  %v7683_v50 = vcombine.high %v437_v15, %v441_v36  ;;  %v10820_v54 = vld [vmem:[#allocation40_spill] sm:$0xff]  ;;  %v7936_v56 = vcombine.low %v692_v32, %v696_v22  ;;  %v10824_v32 = vld [vmem:[#allocation18_spill] sm:$0xff]  ;;  %v10825_v22 = vld [vmem:[#allocation75_spill] sm:$0xff] }
 0x23c   :  { %v9913_v35 = vpack.c.bf16 %v5485_v14, %v5477_v39  ;;  %v4033_v58 = vpop.f32.mrb[16].mxu0  ;;  %5116 = vmatpush1.bf16.msra.mxu1 %v7666_v44  ;;  %v7691_v26 = vcombine.high %v445_v42, %v449_v38 }
 0x23d   :  { %v8232_v20 = vadd.f32 %v4033_v58, %v3695_v19  ;;  %v4035_v4 = vpop.f32.mrb[17].mxu0  ;;  %5117 = vmatprep.subr.bf16.mxu1 %v7675_v17  ;;  %v10821_v58 = vld [vmem:[#allocation54_spill] sm:$0xff] }
 0x23e   :  { %v8234_v53 = vadd.f32 %v4035_v4, %v3697_v59  ;;  %v4037_v27 = vpop.f32.mrb[18].mxu0  ;;  %4890 = vmatpush1.bf16.msra.mxu0 %v7920_v51  ;;  %v3705_v51 = vadd.f32 %v9766_v13, %v9838_v29  ;;  %v453_v59 = vld [vmem:[#allocation5 + $0x858] sm:$0xff]  ;;  %v3709_v4 = vadd.f32 %v10825_v22, %v9838_v29  ;;  %v8858_v22 = vld [vmem:[#allocation8 + $0x24] ss:$8 sps:$4 sm:$0xff]  }
 0x23f   :  { %v8236_v39 = vadd.f32 %v4037_v27, %v3699_v7  ;;  %v4039_v14 = vpop.f32.mrb[19].mxu0  ;;  %4891 = vmatprep.subr.bf16.mxu0 %v7929_v23  ;;  %5079 = vmatmul.mubr.bf16.gmra.mrb[92].mxu1 %v10820_v54  ;;  %v5492_v5 = vmax.f32 %v8232_v20, 0.0  ;;  %v10822_v23 = vld [vmem:[#allocation55_spill] sm:$0xff]  ;;  %v3711_v27 = vadd.f32 %v9774_v60, %v9842_v45 }
 0x240   :  { %v8238_v48 = vadd.f32 %v4039_v14, %v3701_v8  ;;  %5118 = vmatpush1.bf16.msra.mxu1 %v7674_v12  ;;  %v5493_v0 = vmax.f32 %v8234_v53, 0.0  ;;  %v8852_v54 = vld [vmem:[#allocation8 + $0x4] ss:$8 sps:$4 sm:$0xff]   ;;  %v457_v7 = vld [vmem:[#allocation5 + $0x878] sm:$0xff]  ;;  %5121 = vmatprep.mubr.bf16.mxu1 %v10824_v32  ;;  %v7690_v53 = vcombine.low %v445_v42, %v449_v38 }
 0x241   :  { %v5500_v19 = vmax.f32 %v8236_v39, 0.0  ;;  %4853 = vmatmul.mubr.bf16.gmra.mrb[60].mxu0 %v10821_v58  ;;  %5119 = vmatprep.subr.bf16.mxu1 %v7683_v50  ;;  %v10823_v8 = vld [vmem:[#allocation74_spill] sm:$0xff]  ;;  %v7699_v14 = vcombine.high %v453_v59, %v457_v7  ;;  %v10827_v42 = vld [vmem:[#allocation56_spill] sm:$0xff]  ;;  %v7698_v60 = vcombine.low %v453_v59, %v457_v7  ;;  %v10828_v32 = vld [vmem:[#allocation57_spill] sm:$0xff] }
 0x242   :  { %v5501_v44 = vmax.f32 %v8238_v48, 0.0  ;;  %4892 = vmatpush1.bf16.msra.mxu0 %v7928_v21  ;;  %4895 = vmatprep.mubr.bf16.mxu0 %v10822_v23  ;;  %v3707_v15 = vadd.f32 %v10823_v8, %v9842_v45  ;;  %v8850_v39 = vld [vmem:[#allocation8] ss:$8 sps:$4 sm:$0xff]  }
 0x243   :  { %v9924_v17 = vpack.c.bf16 %v5500_v19, %v5492_v5  ;;  %4893 = vmatprep.subr.bf16.mxu0 %v7937_v34  ;;  %v8855_v5 = vld [vmem:[#allocation8 + $0x14] ss:$8 sps:$4 sm:$0xff]  }
 0x244   :  { %v9929_v36 = vpack.c.bf16 %v5501_v44, %v5493_v0  ;;  %v4043_v20 = vpop.f32.mrb[20].mxu0  ;;  %5120 = vmatpush1.bf16.msra.mxu1 %v7682_v3  ;;  %v461_v19 = vld [vmem:[#allocation5 + $0x898] sm:$0xff] }
 0x245   :  { %v8240_v13 = vadd.f32 %v4043_v20, %v3705_v51  ;;  %v4045_v12 = vpop.f32.mrb[21].mxu0  ;;  %5202 = vmatprep.subr.bf16.mxu1 %v7691_v26  ;;  %v465_v0 = vld [vmem:[#allocation5 + $0x8b8] sm:$0xff] }
 0x246   :  { %v8242_v21 = vadd.f32 %v4045_v12, %v3707_v15  ;;  %v4047_v50 = vpop.f32.mrb[22].mxu0  ;;  %4894 = vmatpush1.bf16.msra.mxu0 %v7936_v56  ;;  %v10826_v51 = vld [vmem:[#allocation19_spill] sm:$0xff]  ;;  %v7707_v15 = vcombine.high %v461_v19, %v465_v0  ;;  %v10829_v12 = vld [vmem:[#allocation76_spill] sm:$0xff] }
 0x247   :  { %v8244_v34 = vadd.f32 %v4047_v50, %v3709_v4  ;;  %v4049_v48 = vpop.f32.mrb[23].mxu0  ;;  %6400 = vmatprep.subr.bf16.mxu0 %v8852_v54  ;;  %5122 = vmatmul.mubr.bf16.vlgmr.msra.gmra.mrb[64].mxu1 %v10826_v51  ;;  %v5508_v3 = vmax.f32 %v8240_v13, 0.0  ;;  %v8853_v26 = vld [vmem:[#allocation8 + $0x10] ss:$8 sps:$4 sm:$0xff]   ;;  %v3715_v54 = vadd.f32 %v9778_v57, %v9838_v29  ;;  %v3717_v59 = vadd.f32 %v10829_v12, %v9842_v45 }
 0x248   :  { %v8246_v44 = vadd.f32 %v4049_v48, %v3711_v27  ;;  %5203 = vmatpush1.bf16.msra.mxu1 %v7690_v53  ;;  %v5509_v8 = vmax.f32 %v8242_v21, 0.0  ;;  %v469_v4 = vld [vmem:[#allocation5 + $0x8d8] sm:$0xff]  ;;  %v10831_v21 = vld [vmem:[#allocation77_spill] sm:$0xff] }
 0x249   :  { %v5516_v38 = vmax.f32 %v8244_v34, 0.0  ;;  %4896 = vmatmul.mubr.bf16.vlgmr.msra.gmra.mrb[32].mxu0 %v10827_v42  ;;  %5204 = vmatprep.subr.bf16.mxu1 %v7699_v14  ;;  %v473_v13 = vld [vmem:[#allocation5 + $0x8f8] sm:$0xff]  ;;  %v3719_v50 = vadd.f32 %v10831_v21, %v9838_v29  ;;  %v7706_v14 = vcombine.low %v461_v19, %v465_v0  ;;  %v3721_v34 = vadd.f32 %v9786_v9, %v9842_v45  ;;  %v10833_v0 = vld [vmem:[#allocation58_spill] sm:$0xff] }
 0x24a   :  { %v5517_v56 = vmax.f32 %v8246_v44, 0.0  ;;  %6401 = vmatpush1.bf16.msra.mxu0 %v8850_v39  ;;  %4905 = vmatprep.mubr.bf16.mxu0 %v10828_v32  ;;  %v10830_v27 = vld [vmem:[#allocation20_spill] sm:$0xff]  ;;  %v8856_v44 = vld [vmem:[#allocation8 + $0x20] ss:$8 sps:$4 sm:$0xff]   ;;  %v7715_v51 = vcombine.high %v469_v4, %v473_v13  ;;  %v7714_v9 = vcombine.low %v469_v4, %v473_v13 }
 0x24b   :  { %v9940_v20 = vpack.c.bf16 %v5516_v38, %v5508_v3  ;;  %6402 = vmatprep.subr.bf16.mxu0 %v8855_v5  ;;  %5131 = vmatprep.mubr.bf16.mxu1 %v10830_v27  ;;  %v481_v12 = vld [vmem:[#allocation5 + $0x938] sm:$0xff] }
 0x24c   :  { %v9945_v7 = vpack.c.bf16 %v5517_v56, %v5509_v8  ;;  %v4053_v53 = vpop.f32.mrb[24].mxu0  ;;  %5205 = vmatpush1.bf16.msra.mxu1 %v7698_v60  ;;  %v8861_v8 = vld [vmem:[#allocation8 + $0x34] ss:$8 sps:$4 sm:$0xff]  }
 0x24d   :  { %v8248_v57 = vadd.f32 %v4053_v53, %v3715_v54  ;;  %v4055_v39 = vpop.f32.mrb[25].mxu0  ;;  %5206 = vmatprep.subr.bf16.mxu1 %v7707_v15  ;;  %v477_v56 = vld [vmem:[#allocation5 + $0x918] sm:$0xff]  ;;  %v10832_v54 = vld [vmem:[#allocation21_spill] sm:$0xff] }
 0x24e   :  { %v8250_v48 = vadd.f32 %v4055_v39, %v3717_v59  ;;  %v4057_v5 = vpop.f32.mrb[26].mxu0  ;;  %6403 = vmatpush1.bf16.msra.mxu0 %v8853_v26  ;;  %v8859_v15 = vld [vmem:[#allocation8 + $0x30] ss:$8 sps:$4 sm:$0xff]   ;;  %v7723_v53 = vcombine.high %v477_v56, %v481_v12 }
 0x24f   :  { %v8252_v3 = vadd.f32 %v4057_v5, %v3719_v50  ;;  %v4059_v38 = vpop.f32.mrb[27].mxu0  ;;  %6404 = vmatprep.subr.bf16.mxu0 %v8858_v22  ;;  %5132 = vmatmul.mubr.bf16.gmra.mrb[68].mxu1 %v10832_v54  ;;  %v5524_v60 = vmax.f32 %v8248_v57, 0.0  ;;  %v3725_v22 = vadd.f32 %v9790_v28, %v9838_v29  ;;  %v10834_v50 = vld [vmem:[#allocation59_spill] sm:$0xff]  ;;  %v10836_v5 = vld [vmem:[#allocation22_spill] sm:$0xff] }
 0x250   :  { %v8254_v27 = vadd.f32 %v4059_v38, %v3721_v34  ;;  %5207 = vmatpush1.bf16.msra.mxu1 %v7706_v14  ;;  %v5525_v59 = vmax.f32 %v8250_v48, 0.0  ;;  %v8864_v57 = vld [vmem:[#allocation8 + $0x44] ss:$8 sps:$4 sm:$0xff]   ;;  %v485_v39 = vld [vmem:[#allocation5 + $0x958] sm:$0xff]  ;;  %5141 = vmatprep.mubr.bf16.mxu1 %v10836_v5  ;;  %v7722_v38 = vcombine.low %v477_v56, %v481_v12 }
 0x251   :  { %v5532_v19 = vmax.f32 %v8252_v3, 0.0  ;;  %4906 = vmatmul.mubr.bf16.gmra.mrb[36].mxu0 %v10833_v0  ;;  %5208 = vmatprep.subr.bf16.mxu1 %v7715_v51  ;;  %v489_v34 = vld [vmem:[#allocation5 + $0x978] sm:$0xff]  ;;  %v10835_v14 = vld [vmem:[#allocation78_spill] sm:$0xff] }
 0x252   :  { %v5533_v26 = vmax.f32 %v8254_v27, 0.0  ;;  %6405 = vmatpush1.bf16.msra.mxu0 %v8856_v44  ;;  %4915 = vmatprep.mubr.bf16.mxu0 %v10834_v50  ;;  %v3727_v4 = vadd.f32 %v10835_v14, %v9842_v45  ;;  %v10837_v44 = vld [vmem:[#allocation79_spill] sm:$0xff]  ;;  %v10839_v12 = vld [vmem:[#allocation60_spill] sm:$0xff] }
 0x253   :  { %v9956_v21 = vpack.c.bf16 %v5532_v19, %v5524_v60  ;;  %6406 = vmatprep.subr.bf16.mxu0 %v8861_v8  ;;  %v3729_v51 = vadd.f32 %v10837_v44, %v9838_v29  ;;  %v3731_v8 = vadd.f32 %v9798_v49, %v9842_v45  ;;  %v8862_v60 = vld [vmem:[#allocation8 + $0x40] ss:$8 sps:$4 sm:$0xff]   ;;  %v7731_v19 = vcombine.high %v485_v39, %v489_v34  ;;  %v8867_v14 = vld [vmem:[#allocation8 + $0x54] ss:$8 sps:$4 sm:$0xff]  }
 0x254   :  { %v9961_v13 = vpack.c.bf16 %v5533_v26, %v5525_v59  ;;  %v4063_v48 = vpop.f32.mrb[28].mxu0  ;;  %5209 = vmatpush1.bf16.msra.mxu1 %v7714_v9  ;;  %v493_v5 = vld [vmem:[#allocation5 + $0x998] sm:$0xff]  ;;  %v7730_v49 = vcombine.low %v485_v39, %v489_v34  ;;  %v8868_v34 = vld [vmem:[#allocation8 + $0x60] ss:$8 sps:$4 sm:$0xff]  }
 0x255   :  { %v8256_v28 = vadd.f32 %v4063_v48, %v3725_v22  ;;  %v4065_v3 = vpop.f32.mrb[29].mxu0  ;;  %5210 = vmatprep.subr.bf16.mxu1 %v7723_v53  ;;  %v497_v50 = vld [vmem:[#allocation5 + $0x9b8] sm:$0xff] }
 0x256   :  { %v8258_v27 = vadd.f32 %v4065_v3, %v3727_v4  ;;  %v4067_v54 = vpop.f32.mrb[30].mxu0  ;;  %6407 = vmatpush1.bf16.msra.mxu0 %v8859_v15  ;;  %v10838_v22 = vld [vmem:[#allocation23_spill] sm:$0xff]  ;;  %v7739_v4 = vcombine.high %v493_v5, %v497_v50  ;;  %v10840_v3 = vld [vmem:[#allocation25_spill] sm:$0xff]  ;;  %v7738_v39 = vcombine.low %v493_v5, %v497_v50 }
 0x257   :  { %v8260_v59 = vadd.f32 %v4067_v54, %v3729_v51  ;;  %v4069_v26 = vpop.f32.mrb[31].mxu0  ;;  %6408 = vmatprep.subr.bf16.mxu0 %v8864_v57  ;;  %5142 = vmatmul.mubr.bf16.gmra.mrb[72].mxu1 %v10838_v22  ;;  %v5540_v9 = vmax.f32 %v8256_v28, 0.0  ;;  %v8865_v53 = vld [vmem:[#allocation8 + $0x50] ss:$8 sps:$4 sm:$0xff]   ;;  %v8870_v57 = vld [vmem:[#allocation8 + $0x64] ss:$8 sps:$4 sm:$0xff]  }
 0x258   :  { %v8262_v29 = vadd.f32 %v4069_v26, %v3731_v8  ;;  %5211 = vmatpush1.bf16.msra.mxu1 %v7722_v38  ;;  %v5541_v45 = vmax.f32 %v8258_v27, 0.0  ;;  %v501_v44 = vld [vmem:[#allocation5 + $0x9d8] sm:$0xff]  ;;  %5151 = vmatprep.mubr.bf16.mxu1 %v10840_v3  ;;  %v8876_v50 = vld [vmem:[#allocation8 + $0x84] ss:$8 sps:$4 sm:$0xff]  }
 0x259   :  { %v5548_v56 = vmax.f32 %v8260_v59, 0.0  ;;  %4916 = vmatmul.mubr.bf16.gmra.mrb[40].mxu0 %v10839_v12  ;;  %5212 = vmatprep.subr.bf16.mxu1 %v7731_v19  ;;  %v505_v51 = vld [vmem:[#allocation5 + $0x9f8] sm:$0xff] }
 0x25a   :  { %v5549_v15 = vmax.f32 %v8262_v29, 0.0  ;;  %6409 = vmatpush1.bf16.msra.mxu0 %v8862_v60  ;;  %4925 = vmatprep.mubr.bf16.mxu0 %v9652_v63  ;;  %v7747_v38 = vcombine.high %v501_v44, %v505_v51  ;;  %v8873_v8 = vld [vmem:[#allocation8 + $0x74] ss:$8 sps:$4 sm:$0xff]   ;;  %v7746_v19 = vcombine.low %v501_v44, %v505_v51  ;;  %v8871_v59 = vld [vmem:[#allocation8 + $0x70] ss:$8 sps:$4 sm:$0xff]  }
 0x25b   :  { %v9970_v48 = vpack.c.bf16 %v5548_v56, %v5540_v9  ;;  %6410 = vmatprep.subr.bf16.mxu0 %v8867_v14  ;;  %v509_v27 = vld [vmem:[#allocation5 + $0xa18] sm:$0xff]  ;;  %v10841_v60 = vld [vmem:[#allocation61_spill] sm:$0xff] }
 0x25c   :  { %v9973_v28 = vpack.c.bf16 %v5549_v15, %v5541_v45  ;;  %5213 = vmatpush1.bf16.msra.mxu1 %v7730_v49  ;;  %v513_v54 = vld [vmem:[#allocation5 + $0xa38] sm:$0xff]  ;;  %v10842_v29 = vld [vmem:[#allocation29_spill] sm:$0xff]  ;;  %v10843_v15 = vld [vmem:[#allocation62_spill] sm:$0xff] }
 0x25d   :  { %5214 = vmatprep.subr.bf16.mxu1 %v7739_v4  ;;  %v7755_v26 = vcombine.high %v509_v27, %v513_v54  ;;  %v517_v14 = vld [vmem:[#allocation5 + $0xa58] sm:$0xff]  ;;  %v7754_v22 = vcombine.low %v509_v27, %v513_v54  ;;  %v8882_v44 = vld [vmem:[#allocation8 + $0xa4] ss:$8 sps:$4 sm:$0xff]  }
 0x25e   :  { %6411 = vmatpush1.bf16.msra.mxu0 %v8865_v53  ;;  %v521_v5 = vld [vmem:[#allocation5 + $0xa78] sm:$0xff] }
 0x25f   :  { %6412 = vmatprep.subr.bf16.mxu0 %v8870_v57  ;;  %5152 = vmatmul.mubr.bf16.gmra.mrb[76].mxu1 %v10785_v52  ;;  %v8874_v52 = vld [vmem:[#allocation8 + $0x80] ss:$8 sps:$4 sm:$0xff]   ;;  %v7763_v9 = vcombine.high %v517_v14, %v521_v5  ;;  %v8879_v56 = vld [vmem:[#allocation8 + $0x94] ss:$8 sps:$4 sm:$0xff]   ;;  %v7762_v53 = vcombine.low %v517_v14, %v521_v5  ;;  %v8877_v4 = vld [vmem:[#allocation8 + $0x90] ss:$8 sps:$4 sm:$0xff]  }
 0x260   :  { %5215 = vmatpush1.bf16.msra.mxu1 %v7738_v39  ;;  %5161 = vmatprep.mubr.bf16.mxu1 %v10842_v29  ;;  %v525_v49 = vld [vmem:[#allocation5 + $0xa98] sm:$0xff]  ;;  %v10844_v39 = vld [vmem:[#allocation33_spill] sm:$0xff] }
 0x261   :  { %4926 = vmatmul.mubr.bf16.gmra.mrb[44].mxu0 %v10841_v60  ;;  %5216 = vmatprep.subr.bf16.mxu1 %v7747_v38  ;;  %v529_v45 = vld [vmem:[#allocation5 + $0xab8] sm:$0xff]  ;;  %v8888_v14 = vld [vmem:[#allocation8 + $0xc4] ss:$8 sps:$4 sm:$0xff]  }
 0x262   :  { %6413 = vmatpush1.bf16.msra.mxu0 %v8868_v34  ;;  %4935 = vmatprep.mubr.bf16.mxu0 %v9660_v43  ;;  %v7771_v57 = vcombine.high %v525_v49, %v529_v45  ;;  %v533_v51 = vld [vmem:[#allocation5 + $0xad8] sm:$0xff]  ;;  %v7770_v34 = vcombine.low %v525_v49, %v529_v45 }
 0x263   :  { %6414 = vmatprep.subr.bf16.mxu0 %v8873_v8  ;;  %v537_v3 = vld [vmem:[#allocation5 + $0xaf8] sm:$0xff] }
 0x264   :  { %5217 = vmatpush1.bf16.msra.mxu1 %v7746_v19  ;;  %v7779_v38 = vcombine.high %v533_v51, %v537_v3  ;;  %v8885_v8 = vld [vmem:[#allocation8 + $0xb4] ss:$8 sps:$4 sm:$0xff]  }
 0x265   :  { %5218 = vmatprep.subr.bf16.mxu1 %v7755_v26  ;;  %v541_v27 = vld [vmem:[#allocation5 + $0xb18] sm:$0xff] }
 0x266   :  { %6415 = vmatpush1.bf16.msra.mxu0 %v8871_v59  ;;  %v545_v54 = vld [vmem:[#allocation5 + $0xb38] sm:$0xff]  ;;  %v7778_v59 = vcombine.low %v533_v51, %v537_v3 }
 0x267   :  { %6416 = vmatprep.subr.bf16.mxu0 %v8876_v50  ;;  %5162 = vmatmul.mubr.bf16.gmra.mrb[80].mxu1 %v10787_v18  ;;  %v8880_v18 = vld [vmem:[#allocation8 + $0xa0] ss:$8 sps:$4 sm:$0xff]   ;;  %v10845_v19 = vld [vmem:[#allocation63_spill] sm:$0xff]  ;;  %v7787_v50 = vcombine.high %v541_v27, %v545_v54 }
 0x268   :  { %5219 = vmatpush1.bf16.msra.mxu1 %v7754_v22  ;;  %5171 = vmatprep.mubr.bf16.mxu1 %v10844_v39  ;;  %v8883_v26 = vld [vmem:[#allocation8 + $0xb0] ss:$8 sps:$4 sm:$0xff]   ;;  %v7786_v22 = vcombine.low %v541_v27, %v545_v54  ;;  %v8897_v39 = vld [vmem:[#allocation8 + $0xf4] ss:$8 sps:$4 sm:$0xff]   ;;  %v8900_v27 = vld [vmem:[#allocation8 + $0x104] ss:$8 sps:$4 sm:$0xff]  }
 0x269   :  { %4936 = vmatmul.mubr.bf16.gmra.mrb[48].mxu0 %v10843_v15  ;;  %5220 = vmatprep.subr.bf16.mxu1 %v7763_v9  ;;  %v549_v5 = vld [vmem:[#allocation5 + $0xb58] sm:$0xff] }
 0x26a   :  { %6417 = vmatpush1.bf16.msra.mxu0 %v8874_v52  ;;  %4945 = vmatprep.mubr.bf16.mxu0 %v9668_v55  ;;  %v553_v29 = vld [vmem:[#allocation5 + $0xb78] sm:$0xff] }
 0x26b   :  { %6418 = vmatprep.subr.bf16.mxu0 %v8879_v56  ;;  %v7795_v52 = vcombine.high %v549_v5, %v553_v29  ;;  %v8891_v9 = vld [vmem:[#allocation8 + $0xd4] ss:$8 sps:$4 sm:$0xff]   ;;  %v7794_v45 = vcombine.low %v549_v5, %v553_v29 }
 0x26c   :  { %5221 = vmatpush1.bf16.msra.mxu1 %v7762_v53  ;;  %v557_v56 = vld [vmem:[#allocation5 + $0xb98] sm:$0xff] }
 0x26d   :  { %5222 = vmatprep.subr.bf16.mxu1 %v7771_v57  ;;  %v561_v49 = vld [vmem:[#allocation5 + $0xbb8] sm:$0xff] }
 0x26e   :  { %6419 = vmatpush1.bf16.msra.mxu0 %v8877_v4  ;;  %v8889_v53 = vld [vmem:[#allocation8 + $0xd0] ss:$8 sps:$4 sm:$0xff]   ;;  %v8894_v4 = vld [vmem:[#allocation8 + $0xe4] ss:$8 sps:$4 sm:$0xff]   ;;  %v7802_v51 = vcombine.low %v557_v56, %v561_v49 }
 0x26f   :  { %6420 = vmatprep.subr.bf16.mxu0 %v8882_v44  ;;  %5172 = vmatmul.mubr.bf16.gmra.mrb[84].mxu1 %v10789_v46  ;;  %v8886_v46 = vld [vmem:[#allocation8 + $0xc0] ss:$8 sps:$4 sm:$0xff]   ;;  %v565_v57 = vld [vmem:[#allocation5 + $0xbd8] sm:$0xff] }
 0x270   :  { %5223 = vmatpush1.bf16.msra.mxu1 %v7770_v34  ;;  %5181 = vmatprep.mubr.bf16.mxu1 %v10790_v62  ;;  %v7803_v62 = vcombine.high %v557_v56, %v561_v49  ;;  %v569_v44 = vld [vmem:[#allocation5 + $0xbf8] sm:$0xff] }
 0x271   :  { %4946 = vmatmul.mubr.bf16.gmra.mrb[52].mxu0 %v10845_v19  ;;  %5224 = vmatprep.subr.bf16.mxu1 %v7779_v38  ;;  %v7811_v3 = vcombine.high %v565_v57, %v569_v44  ;;  %v573_v34 = vld [vmem:[#allocation5 + $0xc18] sm:$0xff]  ;;  %v7810_v38 = vcombine.low %v565_v57, %v569_v44 }
 0x272   :  { %6421 = vmatpush1.bf16.msra.mxu0 %v8880_v18  ;;  %4955 = vmatprep.mubr.bf16.mxu0 %v9676_v1  ;;  %v577_v18 = vld [vmem:[#allocation5 + $0xc38] sm:$0xff] }
 0x273   :  { %6422 = vmatprep.subr.bf16.mxu0 %v8885_v8  ;;  %v7819_v8 = vcombine.high %v573_v34, %v577_v18  ;;  %v581_v54 = vld [vmem:[#allocation5 + $0xc58] sm:$0xff] }
 0x274   :  { %5225 = vmatpush1.bf16.msra.mxu1 %v7778_v59  ;;  %v585_v59 = vld [vmem:[#allocation5 + $0xc78] sm:$0xff] }
 0x275   :  { %5226 = vmatprep.subr.bf16.mxu1 %v7787_v50  ;;  %v7827_v50 = vcombine.high %v581_v54, %v585_v59  ;;  %v589_v5 = vld [vmem:[#allocation5 + $0xc98] sm:$0xff] }
 0x276   :  { %6423 = vmatpush1.bf16.msra.mxu0 %v8883_v26  ;;  %v7818_v26 = vcombine.low %v573_v34, %v577_v18  ;;  %v593_v29 = vld [vmem:[#allocation5 + $0xcb8] sm:$0xff] }
 0x277   :  { %6424 = vmatprep.subr.bf16.mxu0 %v8888_v14  ;;  %5182 = vmatmul.mubr.bf16.gmra.mrb[88].mxu1 %v9550_v11  ;;  %v8892_v11 = vld [vmem:[#allocation8 + $0xe0] ss:$8 sps:$4 sm:$0xff]   ;;  %v8903_v14 = vld [vmem:[#allocation8 + $0x114] ss:$8 sps:$4 sm:$0xff]   ;;  %v7834_v49 = vcombine.low %v589_v5, %v593_v29  ;;  %v8907_v57 = vld [vmem:[#allocation8 + $0x130] ss:$8 sps:$4 sm:$0xff]  }
 0x278   :  { %5227 = vmatpush1.bf16.msra.mxu1 %v7786_v22  ;;  %5191 = vmatprep.mubr.bf16.mxu1 %v9555_v30  ;;  %v8895_v30 = vld [vmem:[#allocation8 + $0xf0] ss:$8 sps:$4 sm:$0xff]   ;;  %v7835_v22 = vcombine.high %v589_v5, %v593_v29 }
 0x279   :  { %4956 = vmatmul.mubr.bf16.gmra.mrb[56].mxu0 %v9682_v61  ;;  %5228 = vmatprep.subr.bf16.mxu1 %v7795_v52  ;;  %v10846_v52 = vld [vmem:[#allocation41_spill] sm:$0xff]  ;;  %v601_v56 = vld [vmem:[#allocation5 + $0xcf8] sm:$0xff] }
 0x27a   :  { %6425 = vmatpush1.bf16.msra.mxu0 %v8886_v46  ;;  %4965 = vmatprep.mubr.bf16.mxu0 %v9684_v40  ;;  %v8906_v46 = vld [vmem:[#allocation8 + $0x124] ss:$8 sps:$4 sm:$0xff]   ;;  %v613_v34 = vld [vmem:[#allocation5 + $0xd58] sm:$0xff] }
 0x27b   :  { %6426 = vmatprep.subr.bf16.mxu0 %v8891_v9  ;;  %v597_v9 = vld [vmem:[#allocation5 + $0xcd8] sm:$0xff] }
 0x27c   :  { %5229 = vmatpush1.bf16.msra.mxu1 %v7794_v45  ;;  %v8909_v45 = vld [vmem:[#allocation8 + $0x134] ss:$8 sps:$4 sm:$0xff]   ;;  %v8913_v5 = vld [vmem:[#allocation8 + $0x150] ss:$8 sps:$4 sm:$0xff]  }
 0x27d   :  { %5230 = vmatprep.subr.bf16.mxu1 %v7803_v62  ;;  %v10847_v62 = vld [vmem:[#allocation42_spill] sm:$0xff]  ;;  %v617_v18 = vld [vmem:[#allocation5 + $0xd78] sm:$0xff] }
 0x27e   :  { %6427 = vmatpush1.bf16.msra.mxu0 %v8889_v53  ;;  %v605_v53 = vld [vmem:[#allocation5 + $0xd18] sm:$0xff] }
 0x27f   :  { %6428 = vmatprep.subr.bf16.mxu0 %v8894_v4  ;;  %5192 = vmatmul.mubr.bf16.gmra.mrb[92].mxu1 %v9562_v47  ;;  %v8898_v47 = vld [vmem:[#allocation8 + $0x100] ss:$8 sps:$4 sm:$0xff]   ;;  %v7842_v4 = vcombine.low %v597_v9, %v601_v56 }
 0x280   :  { %5231 = vmatpush1.bf16.msra.mxu1 %v7802_v51  ;;  %5234 = vmatprep.mubr.bf16.mxu1 %v9564_v2  ;;  %v8901_v2 = vld [vmem:[#allocation8 + $0x110] ss:$8 sps:$4 sm:$0xff]   ;;  %v8912_v51 = vld [vmem:[#allocation8 + $0x144] ss:$8 sps:$4 sm:$0xff]  }
 0x281   :  { %4966 = vmatmul.mubr.bf16.gmra.mrb[60].mxu0 %v9690_v24  ;;  %5232 = vmatprep.subr.bf16.mxu1 %v7811_v3  ;;  %v10849_v3 = vld [vmem:[#allocation27_spill] sm:$0xff] }
 0x282   :  { %6429 = vmatpush1.bf16.msra.mxu0 %v8892_v11  ;;  %6432 = vmatprep.mubr.bf16.mxu0 %v9865_v16  ;;  %v7826_v16 = vcombine.low %v581_v54, %v585_v59  ;;  %v10848_v11 = vld [vmem:[#allocation43_spill] sm:$0xff]  ;;  %v10850_v59 = vld [vmem:[#allocation44_spill] sm:$0xff] }
 0x283   :  { %6430 = vmatprep.subr.bf16.mxu0 %v8897_v39  ;;  %v710_v39 = vsub.s32 2, %v10849_v3  ;;  %v625_v54 = vld [vmem:[#allocation5 + $0xdb8] sm:$0xff] }
 0x284   :  { %5233 = vmatpush1.bf16.msra.mxu1 %v7810_v38 }
 0x285   :  { %5315 = vmatprep.subr.bf16.mxu1 %v7819_v8  ;;  %v8915_v8 = vld [vmem:[#allocation8 + $0x154] ss:$8 sps:$4 sm:$0xff]  }
 0x286   :  { %6431 = vmatpush1.bf16.msra.mxu0 %v8895_v30  ;;  %v8910_v30 = vld [vmem:[#allocation8 + $0x140] ss:$8 sps:$4 sm:$0xff]  }
 0x287   :  { %6513 = vmatprep.subr.bf16.mxu0 %v8900_v27  ;;  %5235 = vmatmul.mubr.bf16.vlgmr.msra.gmra.mrb[64].mxu1 %v9570_v25  ;;  %v8904_v25 = vld [vmem:[#allocation8 + $0x120] ss:$8 sps:$4 sm:$0xff]   ;;  %v621_v27 = vld [vmem:[#allocation5 + $0xd98] sm:$0xff] }
 0x288   :  { %5316 = vmatpush1.bf16.msra.mxu1 %v7818_v26  ;;  %5244 = vmatprep.mubr.bf16.mxu1 %v10846_v52  ;;  %v10007_v26 = vld [vmem:[#allocation7] sm:$0xff]  ;;  %v7867_v29 = vcombine.high %v621_v27, %v625_v54 }
 0x289   :  { %6433 = vmatmul.mubr.bf16.vlgmr.msra.gmra.mrb[64].mxu0 %v9860_v33  ;;  %5317 = vmatprep.subr.bf16.mxu1 %v7827_v50  ;;  %v7843_v33 = vcombine.high %v597_v9, %v601_v56  ;;  %v10851_v52 = vld [vmem:[#allocation45_spill] sm:$0xff]  ;;  %v633_v9 = vld [vmem:[#allocation5 + $0xdf8] sm:$0xff] }
 0x28a   :  { %6442 = vmatprep.mubr.bf16.mxu0 %v9881_v6  ;;  %6514 = vmatpush1.bf16.msra.mxu0 %v8898_v47  ;;  %v609_v6 = vld [vmem:[#allocation5 + $0xd38] sm:$0xff]  ;;  %v10010_v47 = vrot.slane %v10007_v26, %v710_v39 }
 0x28b   :  { %6515 = vmatprep.subr.bf16.mxu0 %v8903_v14  ;;  %v7851_v44 = vcombine.high %v605_v53, %v609_v6  ;;  %v7850_v38 = vcombine.low %v605_v53, %v609_v6  ;;  %v7858_v14 = vcombine.low %v613_v34, %v617_v18 }
 0x28c   :  { %5318 = vmatpush1.bf16.msra.mxu1 %v7826_v16 }
 0x28d   :  { %5319 = vmatprep.subr.bf16.mxu1 %v7835_v22 }
 0x28e   :  { %6516 = vmatpush1.bf16.msra.mxu0 %v8901_v2  ;;  %v8918_v2 = vld [vmem:[#allocation8 + $0x164] ss:$8 sps:$4 sm:$0xff]  }
 0x28f   :  { %6517 = vmatprep.subr.bf16.mxu0 %v8906_v46  ;;  %5245 = vmatmul.mubr.bf16.gmra.mrb[68].mxu1 %v10847_v62  ;;  %v8921_v62 = vld [vmem:[#allocation8 + $0x174] ss:$8 sps:$4 sm:$0xff]  }
 0x290   :  { %5320 = vmatpush1.bf16.msra.mxu1 %v7834_v49  ;;  %5254 = vmatprep.mubr.bf16.mxu1 %v10848_v11  ;;  %v10852_v11 = vld [vmem:[#allocation46_spill] sm:$0xff] }
 0x291   :  { %6443 = vmatmul.mubr.bf16.gmra.mrb[68].mxu0 %v9876_v37  ;;  %5321 = vmatprep.subr.bf16.mxu1 %v7843_v33  ;;  %v714_v37 = vsub.s32 3, %v10849_v3 }
 0x292   :  { %6452 = vmatprep.mubr.bf16.mxu0 %v9897_v31  ;;  %6518 = vmatpush1.bf16.msra.mxu0 %v8904_v25  ;;  %v7859_v31 = vcombine.high %v613_v34, %v617_v18  ;;  %v7866_v25 = vcombine.low %v621_v27, %v625_v54  ;;  %v8924_v27 = vld [vmem:[#allocation8 + $0x184] ss:$8 sps:$4 sm:$0xff]  }
 0x293   :  { %6519 = vmatprep.subr.bf16.mxu0 %v8909_v45  ;;  %v10014_v50 = vrot.slane %v10007_v26, %v714_v37  ;;  %v8916_v45 = vld [vmem:[#allocation8 + $0x160] ss:$8 sps:$4 sm:$0xff]   ;;  %v8919_v37 = vld [vmem:[#allocation8 + $0x170] ss:$8 sps:$4 sm:$0xff]  }
 0x294   :  { %5322 = vmatpush1.bf16.msra.mxu1 %v7842_v4  ;;  %v637_v4 = vld [vmem:[#allocation5 + $0xe18] sm:$0xff] }
 0x295   :  { %5323 = vmatprep.subr.bf16.mxu1 %v7851_v44 }
 0x296   :  { %6520 = vmatpush1.bf16.msra.mxu0 %v8907_v57  ;;  %v641_v57 = vld [vmem:[#allocation5 + $0xe38] sm:$0xff] }
 0x297   :  { %6521 = vmatprep.subr.bf16.mxu0 %v8912_v51  ;;  %5255 = vmatmul.mubr.bf16.gmra.mrb[72].mxu1 %v10850_v59 }
 0x298   :  { %5324 = vmatpush1.bf16.msra.mxu1 %v7850_v38  ;;  %5264 = vmatprep.mubr.bf16.mxu1 %v10851_v52 }
 0x299   :  { %6453 = vmatmul.mubr.bf16.gmra.mrb[72].mxu0 %v9892_v41  ;;  %5325 = vmatprep.subr.bf16.mxu1 %v7859_v31  ;;  %v629_v41 = vld [vmem:[#allocation5 + $0xdd8] sm:$0xff] }
 0x29a   :  { %6462 = vmatprep.mubr.bf16.mxu0 %v9913_v35  ;;  %6522 = vmatpush1.bf16.msra.mxu0 %v8910_v30  ;;  %v4445_v16 = vpop.f32.mrb[32].mxu1  ;;  %v7875_v6 = vcombine.high %v629_v41, %v633_v9  ;;  %v7874_v18 = vcombine.low %v629_v41, %v633_v9  ;;  %v7883_v30 = vcombine.high %v637_v4, %v641_v57  ;;  %v8927_v9 = vld [vmem:[#allocation8 + $0x194] ss:$8 sps:$4 sm:$0xff]  }
 0x29b   :  { %6523 = vmatprep.subr.bf16.mxu0 %v8915_v8  ;;  %v8263_v22 = vadd.f32 %v4445_v16, %v10010_v47  ;;  %v4447_v46 = vpop.f32.mrb[33].mxu1 }
 0x29c   :  { %v8264_v56 = vadd.f32 %v4447_v46, %v10014_v50  ;;  %v4449_v49 = vpop.f32.mrb[34].mxu1  ;;  %5326 = vmatpush1.bf16.msra.mxu1 %v7858_v14  ;;  %v10853_v14 = vld [vmem:[#allocation47_spill] sm:$0xff]  ;;  %v8922_v46 = vld [vmem:[#allocation8 + $0x180] ss:$8 sps:$4 sm:$0xff]  }
 0x29d   :  { %v8265_v35 = vadd.f32 %v4449_v49, %v10010_v47  ;;  %v4451_v33 = vpop.f32.mrb[35].mxu1  ;;  %5327 = vmatprep.subr.bf16.mxu1 %v7867_v29  ;;  %v5430_v44 = vmax.f32 %v8263_v22, 0.0  ;;  %v657_v49 = vld [vmem:[#allocation5 + $0xeb8] sm:$0xff] }
 0x29e   :  { %6524 = vmatpush1.bf16.msra.mxu0 %v8913_v5  ;;  %v8266_v53 = vadd.f32 %v4451_v33, %v10014_v50  ;;  %v5431_v39 = vmax.f32 %v8264_v56, 0.0  ;;  %v649_v5 = vld [vmem:[#allocation5 + $0xe78] sm:$0xff] }
 0x29f   :  { %6525 = vmatprep.subr.bf16.mxu0 %v8918_v2  ;;  %v5438_v51 = vmax.f32 %v8265_v35, 0.0  ;;  %5265 = vmatmul.mubr.bf16.gmra.mrb[76].mxu1 %v10852_v11  ;;  %v653_v56 = vld [vmem:[#allocation5 + $0xe98] sm:$0xff]  ;;  %v8930_v11 = vld [vmem:[#allocation8 + $0x1a4] ss:$8 sps:$4 sm:$0xff]  }
 0x2a0   :  { %v5439_v34 = vmax.f32 %v8266_v53, 0.0  ;;  %5328 = vmatpush1.bf16.msra.mxu1 %v7866_v25  ;;  %5274 = vmatprep.mubr.bf16.mxu1 %v10853_v14  ;;  %v10854_v33 = vld [vmem:[#allocation48_spill] sm:$0xff] }
 0x2a1   :  { %6463 = vmatmul.mubr.bf16.gmra.mrb[76].mxu0 %v9908_v10  ;;  %v10024_v38 = vpack.c.bf16 %v5438_v51, %v5430_v44  ;;  %5329 = vmatprep.subr.bf16.mxu1 %v7875_v6  ;;  %v645_v10 = vld [vmem:[#allocation5 + $0xe58] sm:$0xff] }
 0x2a2   :  { %6472 = vmatprep.mubr.bf16.mxu0 %v9929_v36  ;;  %6526 = vmatpush1.bf16.msra.mxu0 %v8916_v45  ;;  %v10027_v31 = vpack.c.bf16 %v5439_v34, %v5431_v39  ;;  %v4455_v8 = vpop.f32.mrb[36].mxu1  ;;  %v7882_v36 = vcombine.low %v637_v4, %v641_v57  ;;  %v7891_v41 = vcombine.high %v645_v10, %v649_v5  ;;  %v8925_v4 = vld [vmem:[#allocation8 + $0x190] ss:$8 sps:$4 sm:$0xff]  }
 0x2a3   :  { %6527 = vmatprep.subr.bf16.mxu0 %v8921_v62  ;;  %v8267_v54 = vadd.f32 %v4455_v8, %v10010_v47  ;;  %v4457_v59 = vpop.f32.mrb[37].mxu1  ;;  %v7890_v6 = vcombine.low %v645_v10, %v649_v5  ;;  %v7899_v57 = vcombine.high %v653_v56, %v657_v49  ;;  %v8933_v5 = vld [vmem:[#allocation8 + $0x1b4] ss:$8 sps:$4 sm:$0xff]  }
 0x2a4   :  { %v8268_v29 = vadd.f32 %v4457_v59, %v10014_v50  ;;  %v4459_v16 = vpop.f32.mrb[38].mxu1  ;;  %5330 = vmatpush1.bf16.msra.mxu1 %v7874_v18  ;;  %v10855_v18 = vld [vmem:[#allocation49_spill] sm:$0xff] }
 0x2a5   :  { %v8269_v2 = vadd.f32 %v4459_v16, %v10010_v47  ;;  %v4461_v22 = vpop.f32.mrb[39].mxu1  ;;  %5331 = vmatprep.subr.bf16.mxu1 %v7883_v30  ;;  %v5446_v25 = vmax.f32 %v8267_v54, 0.0  ;;  %v8928_v59 = vld [vmem:[#allocation8 + $0x1a0] ss:$8 sps:$4 sm:$0xff]   ;;  %v673_v16 = vld [vmem:[#allocation5 + $0xf38] sm:$0xff] }
 0x2a6   :  { %6528 = vmatpush1.bf16.msra.mxu0 %v8919_v37  ;;  %v8270_v52 = vadd.f32 %v4461_v22, %v10014_v50  ;;  %v5447_v45 = vmax.f32 %v8268_v29, 0.0  ;;  %v665_v37 = vld [vmem:[#allocation5 + $0xef8] sm:$0xff]  ;;  %v10856_v22 = vld [vmem:[#allocation50_spill] sm:$0xff] }
 0x2a7   :  { %6529 = vmatprep.subr.bf16.mxu0 %v8924_v27  ;;  %v5454_v35 = vmax.f32 %v8269_v2, 0.0  ;;  %5275 = vmatmul.mubr.bf16.gmra.mrb[80].mxu1 %v10854_v33  ;;  %v669_v29 = vld [vmem:[#allocation5 + $0xf18] sm:$0xff]  ;;  %v8936_v33 = vld [vmem:[#allocation8 + $0x1c4] ss:$8 sps:$4 sm:$0xff]  }
 0x2a8   :  { %v5455_v53 = vmax.f32 %v8270_v52, 0.0  ;;  %5332 = vmatpush1.bf16.msra.mxu1 %v7882_v36  ;;  %5284 = vmatprep.mubr.bf16.mxu1 %v10855_v18 }
 0x2a9   :  { %6473 = vmatmul.mubr.bf16.gmra.mrb[80].mxu0 %v9924_v17  ;;  %v10036_v62 = vpack.c.bf16 %v5454_v35, %v5446_v25  ;;  %5333 = vmatprep.subr.bf16.mxu1 %v7891_v41  ;;  %v661_v17 = vld [vmem:[#allocation5 + $0xed8] sm:$0xff] }
 0x2aa   :  { %6482 = vmatprep.mubr.bf16.mxu0 %v9945_v7  ;;  %6530 = vmatpush1.bf16.msra.mxu0 %v8922_v46  ;;  %v10039_v44 = vpack.c.bf16 %v5455_v53, %v5447_v45  ;;  %v4465_v51 = vpop.f32.mrb[40].mxu1  ;;  %v7898_v7 = vcombine.low %v653_v56, %v657_v49  ;;  %v7907_v10 = vcombine.high %v661_v17, %v665_v37  ;;  %v8931_v56 = vld [vmem:[#allocation8 + $0x1b0] ss:$8 sps:$4 sm:$0xff]  }
 0x2ab   :  { %6531 = vmatprep.subr.bf16.mxu0 %v8927_v9  ;;  %v8271_v39 = vadd.f32 %v4465_v51, %v10010_v47  ;;  %v4467_v34 = vpop.f32.mrb[41].mxu1  ;;  %v7906_v41 = vcombine.low %v661_v17, %v665_v37  ;;  %v7915_v49 = vcombine.high %v669_v29, %v673_v16  ;;  %v8939_v37 = vld [vmem:[#allocation8 + $0x1d4] ss:$8 sps:$4 sm:$0xff]  }
 0x2ac   :  { %v8272_v30 = vadd.f32 %v4467_v34, %v10014_v50  ;;  %v4469_v8 = vpop.f32.mrb[42].mxu1  ;;  %5334 = vmatpush1.bf16.msra.mxu1 %v7890_v6  ;;  %v10857_v6 = vld [vmem:[#allocation51_spill] sm:$0xff]  ;;  %v8934_v34 = vld [vmem:[#allocation8 + $0x1c0] ss:$8 sps:$4 sm:$0xff]  }
 0x2ad   :  { %v8273_v27 = vadd.f32 %v4469_v8, %v10010_v47  ;;  %v4471_v54 = vpop.f32.mrb[43].mxu1  ;;  %5335 = vmatprep.subr.bf16.mxu1 %v7899_v57  ;;  %v5462_v36 = vmax.f32 %v8271_v39, 0.0  ;;  %v689_v8 = vld [vmem:[#allocation5 + $0xfb8] sm:$0xff] }
 0x2ae   :  { %6532 = vmatpush1.bf16.msra.mxu0 %v8925_v4  ;;  %v8274_v14 = vadd.f32 %v4471_v54, %v10014_v50  ;;  %v5463_v46 = vmax.f32 %v8272_v30, 0.0  ;;  %v681_v4 = vld [vmem:[#allocation5 + $0xf78] sm:$0xff] }
 0x2af   :  { %6533 = vmatprep.subr.bf16.mxu0 %v8930_v11  ;;  %v5470_v2 = vmax.f32 %v8273_v27, 0.0  ;;  %5285 = vmatmul.mubr.bf16.gmra.mrb[84].mxu1 %v10856_v22  ;;  %v685_v30 = vld [vmem:[#allocation5 + $0xf98] sm:$0xff]  ;;  %v8942_v22 = vld [vmem:[#allocation8 + $0x1e4] ss:$8 sps:$4 sm:$0xff]  }
 0x2b0   :  { %v5471_v52 = vmax.f32 %v8274_v14, 0.0  ;;  %5336 = vmatpush1.bf16.msra.mxu1 %v7898_v7  ;;  %5294 = vmatprep.mubr.bf16.mxu1 %v10857_v6  ;;  %v10858_v54 = vld [vmem:[#allocation52_spill] sm:$0xff] }
 0x2b1   :  { %6483 = vmatmul.mubr.bf16.gmra.mrb[84].mxu0 %v9940_v20  ;;  %v10048_v9 = vpack.c.bf16 %v5470_v2, %v5462_v36  ;;  %5337 = vmatprep.subr.bf16.mxu1 %v7907_v10  ;;  %v677_v20 = vld [vmem:[#allocation5 + $0xf58] sm:$0xff] }
 0x2b2   :  { %6492 = vmatprep.mubr.bf16.mxu0 %v9961_v13  ;;  %6534 = vmatpush1.bf16.msra.mxu0 %v8928_v59  ;;  %v10051_v25 = vpack.c.bf16 %v5471_v52, %v5463_v46  ;;  %v4475_v35 = vpop.f32.mrb[44].mxu1  ;;  %v7914_v13 = vcombine.low %v669_v29, %v673_v16  ;;  %v7923_v17 = vcombine.high %v677_v20, %v681_v4  ;;  %v8937_v29 = vld [vmem:[#allocation8 + $0x1d0] ss:$8 sps:$4 sm:$0xff]  }
 0x2b3   :  { %6535 = vmatprep.subr.bf16.mxu0 %v8933_v5  ;;  %v8275_v45 = vadd.f32 %v4475_v35, %v10010_v47  ;;  %v4477_v53 = vpop.f32.mrb[45].mxu1  ;;  %v7922_v10 = vcombine.low %v677_v20, %v681_v4  ;;  %v7931_v16 = vcombine.high %v685_v30, %v689_v8  ;;  %v8945_v4 = vld [vmem:[#allocation8 + $0x1f4] ss:$8 sps:$4 sm:$0xff]  }
 0x2b4   :  { %v8276_v57 = vadd.f32 %v4477_v53, %v10014_v50  ;;  %v4479_v51 = vpop.f32.mrb[46].mxu1  ;;  %5338 = vmatpush1.bf16.msra.mxu1 %v7906_v41  ;;  %v10859_v41 = vld [vmem:[#allocation53_spill] sm:$0xff] }
 0x2b5   :  { %v8277_v11 = vadd.f32 %v4479_v51, %v10010_v47  ;;  %v4481_v39 = vpop.f32.mrb[47].mxu1  ;;  %5339 = vmatprep.subr.bf16.mxu1 %v7915_v49  ;;  %v5478_v7 = vmax.f32 %v8275_v45, 0.0  ;;  %v8940_v53 = vld [vmem:[#allocation8 + $0x1e0] ss:$8 sps:$4 sm:$0xff]  }
 0x2b6   :  { %6536 = vmatpush1.bf16.msra.mxu0 %v8931_v56  ;;  %v8278_v18 = vadd.f32 %v4481_v39, %v10014_v50  ;;  %v5479_v59 = vmax.f32 %v8276_v57, 0.0  ;;  %v697_v56 = vld [vmem:[#allocation5 + $0xff8] sm:$0xff] }
 0x2b7   :  { %6537 = vmatprep.subr.bf16.mxu0 %v8936_v33  ;;  %v5486_v27 = vmax.f32 %v8277_v11, 0.0  ;;  %5295 = vmatmul.mubr.bf16.gmra.mrb[88].mxu1 %v10858_v54  ;;  %v8946_v54 = vld [vmem:[#allocation8 + $0x200] ss:$8 sps:$4 sm:$0xff]  }
 0x2b8   :  { %v5487_v14 = vmax.f32 %v8278_v18, 0.0  ;;  %5340 = vmatpush1.bf16.msra.mxu1 %v7914_v13  ;;  %5304 = vmatprep.mubr.bf16.mxu1 %v10859_v41  ;;  %v8943_v18 = vld [vmem:[#allocation8 + $0x1f0] ss:$8 sps:$4 sm:$0xff]   ;;  %v8954_v41 = vld [vmem:[#allocation8 + $0x224] ss:$8 sps:$4 sm:$0xff]  }
 0x2b9   :  { %6493 = vmatmul.mubr.bf16.gmra.mrb[88].mxu0 %v9956_v21  ;;  %v10060_v5 = vpack.c.bf16 %v5486_v27, %v5478_v7  ;;  %5341 = vmatprep.subr.bf16.mxu1 %v7923_v17  ;;  %v693_v21 = vld [vmem:[#allocation5 + $0xfd8] sm:$0xff] }
 0x2ba   :  { %6502 = vmatprep.mubr.bf16.mxu0 %v9973_v28  ;;  %6538 = vmatpush1.bf16.msra.mxu0 %v8934_v34  ;;  %v10063_v36 = vpack.c.bf16 %v5487_v14, %v5479_v59  ;;  %v4485_v2 = vpop.f32.mrb[48].mxu1  ;;  %v7930_v28 = vcombine.low %v685_v30, %v689_v8  ;;  %v7939_v20 = vcombine.high %v693_v21, %v697_v56  ;;  %v8948_v30 = vld [vmem:[#allocation8 + $0x204] ss:$8 sps:$4 sm:$0xff]   ;;  %v8951_v14 = vld [vmem:[#allocation8 + $0x214] ss:$8 sps:$4 sm:$0xff]  }
 0x2bb   :  { %6539 = vmatprep.subr.bf16.mxu0 %v8939_v37  ;;  %v8279_v46 = vadd.f32 %v4485_v2, %v10010_v47  ;;  %v4487_v52 = vpop.f32.mrb[49].mxu1  ;;  %v7938_v39 = vcombine.low %v693_v21, %v697_v56 }
 0x2bc   :  { %v8280_v49 = vadd.f32 %v4487_v52, %v10014_v50  ;;  %v4489_v35 = vpop.f32.mrb[50].mxu1  ;;  %5342 = vmatpush1.bf16.msra.mxu1 %v7922_v10 }
 0x2bd   :  { %v8281_v33 = vadd.f32 %v4489_v35, %v10010_v47  ;;  %v4491_v45 = vpop.f32.mrb[51].mxu1  ;;  %5343 = vmatprep.subr.bf16.mxu1 %v7931_v16  ;;  %v5494_v57 = vmax.f32 %v8279_v46, 0.0  ;;  %v8952_v35 = vld [vmem:[#allocation8 + $0x220] ss:$8 sps:$4 sm:$0xff]  }
 0x2be   :  { %6540 = vmatpush1.bf16.msra.mxu0 %v8937_v29  ;;  %v8282_v6 = vadd.f32 %v4491_v45, %v10014_v50  ;;  %v5495_v13 = vmax.f32 %v8280_v49, 0.0 }
 0x2bf   :  { %6541 = vmatprep.subr.bf16.mxu0 %v8942_v22  ;;  %v5502_v51 = vmax.f32 %v8281_v33, 0.0  ;;  %5305 = vmatmul.mubr.bf16.gmra.mrb[92].mxu1 %v10821_v58  ;;  %v8949_v22 = vld [vmem:[#allocation8 + $0x210] ss:$8 sps:$4 sm:$0xff]  }
 0x2c0   :  { %v5503_v11 = vmax.f32 %v8282_v6, 0.0  ;;  %5344 = vmatpush1.bf16.msra.mxu1 %v7930_v28  ;;  %5347 = vmatprep.mubr.bf16.mxu1 %v10822_v23  ;;  %v8957_v28 = vld [vmem:[#allocation8 + $0x234] ss:$8 sps:$4 sm:$0xff]  }
 0x2c1   :  { %6503 = vmatmul.mubr.bf16.gmra.mrb[92].mxu0 %v9970_v48  ;;  %v10072_v34 = vpack.c.bf16 %v5502_v51, %v5494_v57  ;;  %5345 = vmatprep.subr.bf16.mxu1 %v7939_v20  ;;  %v10860_v20 = vld [vmem:[#allocation59_spill] sm:$0xff] }
 0x2c2   :  { %6542 = vmatpush1.bf16.msra.mxu0 %v8940_v53  ;;  %6545 = vmatprep.mubr.bf16.mxu0 %v10027_v31  ;;  %v10075_v17 = vpack.c.bf16 %v5503_v11, %v5495_v13  ;;  %v4495_v37 = vpop.f32.mrb[52].mxu1  ;;  %v8955_v57 = vld [vmem:[#allocation8 + $0x230] ss:$8 sps:$4 sm:$0xff]   ;;  %v8960_v11 = vld [vmem:[#allocation8 + $0x244] ss:$8 sps:$4 sm:$0xff]  }
 0x2c3   :  { %6543 = vmatprep.subr.bf16.mxu0 %v8945_v4  ;;  %v8283_v58 = vadd.f32 %v4495_v37, %v10010_v47  ;;  %v4497_v8 = vpop.f32.mrb[53].mxu1 }
 0x2c4   :  { %v8284_v48 = vadd.f32 %v4497_v8, %v10014_v50  ;;  %v4499_v7 = vpop.f32.mrb[54].mxu1  ;;  %5346 = vmatpush1.bf16.msra.mxu1 %v7938_v39  ;;  %v8963_v8 = vld [vmem:[#allocation8 + $0x254] ss:$8 sps:$4 sm:$0xff]  }
 0x2c5   :  { %v8285_v27 = vadd.f32 %v4499_v7, %v10010_v47  ;;  %v4501_v31 = vpop.f32.mrb[55].mxu1  ;;  %v5510_v10 = vmax.f32 %v8283_v58, 0.0  ;;  %v8958_v58 = vld [vmem:[#allocation8 + $0x240] ss:$8 sps:$4 sm:$0xff]  }
 0x2c6   :  { %6544 = vmatpush1.bf16.msra.mxu0 %v8943_v18  ;;  %v8286_v59 = vadd.f32 %v4501_v31, %v10014_v50  ;;  %v5511_v16 = vmax.f32 %v8284_v48, 0.0 }
 0x2c7   :  { %6626 = vmatprep.subr.bf16.mxu0 %v8948_v30  ;;  %v5518_v29 = vmax.f32 %v8285_v27, 0.0  ;;  %5348 = vmatmul.mubr.bf16.vlgmr.msra.gmra.mrb[64].mxu1 %v10827_v42 }
 0x2c8   :  { %v5519_v2 = vmax.f32 %v8286_v59, 0.0  ;;  %5357 = vmatprep.mubr.bf16.mxu1 %v10828_v32 }
 0x2c9   :  { %6546 = vmatmul.mubr.bf16.vlgmr.msra.gmra.mrb[64].mxu0 %v10024_v38  ;;  %v10085_v23 = vpack.c.bf16 %v5518_v29, %v5510_v10  ;;  %v8972_v10 = vld [vmem:[#allocation8 + $0x284] ss:$8 sps:$4 sm:$0xff]   ;;  %v10122_v29 = vld [vmem:[#allocation8 + $0x314] ss:$8 sps:$4 sm:$0xff]  }
 0x2ca   :  { %6555 = vmatprep.mubr.bf16.mxu0 %v10039_v44  ;;  %6627 = vmatpush1.bf16.msra.mxu0 %v8946_v54  ;;  %v10088_v46 = vpack.c.bf16 %v5519_v2, %v5511_v16  ;;  %v4505_v52 = vpop.f32.mrb[56].mxu1  ;;  %v10133_v16 = vld [vmem:[#allocation8 + $0x324] ss:$8 sps:$4 sm:$0xff]  }
 0x2cb   :  { %6628 = vmatprep.subr.bf16.mxu0 %v8951_v14  ;;  %v8287_v21 = vadd.f32 %v4505_v52, %v10010_v47  ;;  %v4507_v42 = vpop.f32.mrb[57].mxu1  ;;  %v8964_v14 = vld [vmem:[#allocation8 + $0x260] ss:$8 sps:$4 sm:$0xff]   ;;  %v8978_v2 = vld [vmem:[#allocation8 + $0x2a4] ss:$8 sps:$4 sm:$0xff]  }
 0x2cc   :  { %v8288_v56 = vadd.f32 %v4507_v42, %v10014_v50  ;;  %v4509_v49 = vpop.f32.mrb[58].mxu1  ;;  %v8979_v52 = vld [vmem:[#allocation8 + $0x2b0] ss:$8 sps:$4 sm:$0xff]   ;;  %v10155_v42 = vld [vmem:[#allocation8 + $0x354] ss:$8 sps:$4 sm:$0xff]  }
 0x2cd   :  { %v8289_v38 = vadd.f32 %v4509_v49, %v10010_v47  ;;  %v4511_v32 = vpop.f32.mrb[59].mxu1  ;;  %v5526_v33 = vmax.f32 %v8287_v21, 0.0  ;;  %v8984_v21 = vld [vmem:[#allocation8 + $0x2c4] ss:$8 sps:$4 sm:$0xff]   ;;  %v8985_v49 = vld [vmem:[#allocation8 + $0x2d0] ss:$8 sps:$4 sm:$0xff]  }
 0x2ce   :  { %6629 = vmatpush1.bf16.msra.mxu0 %v8949_v22  ;;  %v8290_v44 = vadd.f32 %v4511_v32, %v10014_v50  ;;  %v5527_v53 = vmax.f32 %v8288_v56, 0.0  ;;  %v10137_v22 = vld [vmem:[#allocation8 + $0x320] ss:$8 sps:$4 sm:$0xff]   ;;  %v10162_v56 = vld [vmem:[#allocation8 + $0x350] ss:$8 sps:$4 sm:$0xff]  }
 0x2cf   :  { %6630 = vmatprep.subr.bf16.mxu0 %v8954_v41  ;;  %v5534_v45 = vmax.f32 %v8289_v38, 0.0  ;;  %5358 = vmatmul.mubr.bf16.gmra.mrb[68].mxu1 %v10833_v0  ;;  %v10149_v41 = vld [vmem:[#allocation8 + $0x344] ss:$8 sps:$4 sm:$0xff]  }
 0x2d0   :  { %v5535_v6 = vmax.f32 %v8290_v44, 0.0  ;;  %5367 = vmatprep.mubr.bf16.mxu1 %v10860_v20  ;;  %v10165_v38 = vld [vmem:[#allocation8 + $0x364] ss:$8 sps:$4 sm:$0xff]   ;;  %v10171_v44 = vld [vmem:[#allocation8 + $0x374] ss:$8 sps:$4 sm:$0xff]  }
 0x2d1   :  { %6556 = vmatmul.mubr.bf16.gmra.mrb[68].mxu0 %v10036_v62  ;;  %v10097_v4 = vpack.c.bf16 %v5534_v45, %v5526_v33  ;;  %v8990_v32 = vld [vmem:[#allocation8 + $0x2e4] ss:$8 sps:$4 sm:$0xff]   ;;  %v8991_v33 = vld [vmem:[#allocation8 + $0x2f0] ss:$8 sps:$4 sm:$0xff]  }
 0x2d2   :  { %6565 = vmatprep.mubr.bf16.mxu0 %v10051_v25  ;;  %6631 = vmatpush1.bf16.msra.mxu0 %v8952_v35  ;;  %v10100_v51 = vpack.c.bf16 %v5535_v6, %v5527_v53  ;;  %v4515_v13 = vpop.f32.mrb[60].mxu1  ;;  %v8988_v35 = vld [vmem:[#allocation8 + $0x2e0] ss:$8 sps:$4 sm:$0xff]   ;;  %v10179_v45 = vld [vmem:[#allocation8 + $0x384] ss:$8 sps:$4 sm:$0xff]  }
 0x2d3   :  { %6632 = vmatprep.subr.bf16.mxu0 %v8957_v28  ;;  %v8291_v39 = vadd.f32 %v4515_v13, %v10010_v47  ;;  %v4517_v0 = vpop.f32.mrb[61].mxu1  ;;  %v10177_v28 = vld [vmem:[#allocation8 + $0x370] ss:$8 sps:$4 sm:$0xff]   ;;  %v10183_v53 = vld [vmem:[#allocation8 + $0x380] ss:$8 sps:$4 sm:$0xff]  }
 0x2d4   :  { %v8292_v18 = vadd.f32 %v4517_v0, %v10014_v50  ;;  %v4519_v37 = vpop.f32.mrb[62].mxu1  ;;  %v10185_v6 = vld [vmem:[#allocation8 + $0x394] ss:$8 sps:$4 sm:$0xff]   ;;  %v10192_v20 = vld [vmem:[#allocation8 + $0x3a4] ss:$8 sps:$4 sm:$0xff]   ;;  %v722_v0 = vsub.s32 5, %v10849_v3 }
 0x2d5   :  { %v8293_v62 = vadd.f32 %v4519_v37, %v10010_v47  ;;  %v4521_v30 = vpop.f32.mrb[63].mxu1  ;;  %v5542_v48 = vmax.f32 %v8291_v39, 0.0  ;;  %v8961_v47 = vld [vmem:[#allocation8 + $0x250] ss:$8 sps:$4 sm:$0xff]   ;;  %v10204_v13 = vld [vmem:[#allocation8 + $0x3c4] ss:$8 sps:$4 sm:$0xff]  }
 0x2d6   :  { %6633 = vmatpush1.bf16.msra.mxu0 %v8955_v57  ;;  %v8294_v25 = vadd.f32 %v4521_v30, %v10014_v50  ;;  %v5543_v27 = vmax.f32 %v8292_v18, 0.0  ;;  %v8966_v50 = vld [vmem:[#allocation8 + $0x264] ss:$8 sps:$4 sm:$0xff]   ;;  %v10198_v57 = vld [vmem:[#allocation8 + $0x3b4] ss:$8 sps:$4 sm:$0xff]   ;;  %v10222_v30 = vrot.slane %v10007_v26, %v722_v0 }
 0x2d7   :  { %6634 = vmatprep.subr.bf16.mxu0 %v8960_v11  ;;  %v5550_v7 = vmax.f32 %v8293_v62, 0.0  ;;  %5368 = vmatmul.mubr.bf16.gmra.mrb[72].mxu1 %v10839_v12  ;;  %v8969_v12 = vld [vmem:[#allocation8 + $0x274] ss:$8 sps:$4 sm:$0xff]   ;;  %v718_v11 = vsub.s32 4, %v10849_v3  ;;  %v10209_v39 = vld [vmem:[#allocation8 + $0x3c0] ss:$8 sps:$4 sm:$0xff]  }
 0x2d8   :  { %v5551_v31 = vmax.f32 %v8294_v25, 0.0  ;;  %5377 = vmatprep.mubr.bf16.mxu1 %v9652_v63  ;;  %v10117_v63 = vld [vmem:[#allocation8 + $0x304] ss:$8 sps:$4 sm:$0xff]   ;;  %v10212_v18 = vld [vmem:[#allocation8 + $0x3d4] ss:$8 sps:$4 sm:$0xff]  }
 0x2d9   :  { %6566 = vmatmul.mubr.bf16.gmra.mrb[72].mxu0 %v10048_v9  ;;  %v10109_v54 = vpack.c.bf16 %v5550_v7, %v5542_v48  ;;  %v8967_v9 = vld [vmem:[#allocation8 + $0x270] ss:$8 sps:$4 sm:$0xff]   ;;  %8167 = vmatprep.subr.bf16.mxu1 %v10117_v63  ;;  %v10217_v37 = vrot.slane %v10007_v26, %v718_v11  ;;  %v10226_v48 = vld [vmem:[#allocation8 + $0x3e4] ss:$8 sps:$4 sm:$0xff]  }
 0x2da   :  { %6575 = vmatprep.mubr.bf16.mxu0 %v10063_v36  ;;  %6635 = vmatpush1.bf16.msra.mxu0 %v8958_v58  ;;  %v10112_v59 = vpack.c.bf16 %v5551_v31, %v5543_v27  ;;  %v10120_v36 = vld [vmem:[#allocation8 + $0x300] ss:$8 sps:$4 sm:$0xff]   ;;  %v10219_v62 = vld [vmem:[#allocation8 + $0x3d0] ss:$8 sps:$4 sm:$0xff]  }
 0x2db   :  { %6636 = vmatprep.subr.bf16.mxu0 %v8963_v8  ;;  %8183 = vmatpush1.bf16.msra.mxu1 %v10120_v36  ;;  %v10229_v31 = vld [vmem:[#allocation8 + $0x3e0] ss:$8 sps:$4 sm:$0xff]  }
 0x2dc   :  { %8168 = vmatprep.subr.bf16.mxu1 %v10122_v29 }
 0x2de   :  { %6637 = vmatpush1.bf16.msra.mxu0 %v8961_v47 }
 0x2df   :  { %6638 = vmatprep.subr.bf16.mxu0 %v8966_v50  ;;  %5378 = vmatmul.mubr.bf16.gmra.mrb[76].mxu1 %v10841_v60  ;;  %v8975_v60 = vld [vmem:[#allocation8 + $0x294] ss:$8 sps:$4 sm:$0xff]  }
 0x2e0   :  { %5387 = vmatprep.mubr.bf16.mxu1 %v9660_v43  ;;  %v8970_v43 = vld [vmem:[#allocation8 + $0x280] ss:$8 sps:$4 sm:$0xff]  }
 0x2e1   :  { %6576 = vmatmul.mubr.bf16.gmra.mrb[76].mxu0 %v10060_v5  ;;  %v10130_v5 = vld [vmem:[#allocation8 + $0x310] ss:$8 sps:$4 sm:$0xff]  }
 0x2e2   :  { %6585 = vmatprep.mubr.bf16.mxu0 %v10075_v17  ;;  %6639 = vmatpush1.bf16.msra.mxu0 %v8964_v14  ;;  %v8973_v17 = vld [vmem:[#allocation8 + $0x290] ss:$8 sps:$4 sm:$0xff]   ;;  %v10235_v14 = vld [vmem:[#allocation8 + $0x3f4] ss:$8 sps:$4 sm:$0xff]  }
 0x2e3   :  { %6640 = vmatprep.subr.bf16.mxu0 %v8969_v12  ;;  %8184 = vmatpush1.bf16.msra.mxu1 %v10130_v5 }
 0x2e4   :  { %8169 = vmatprep.subr.bf16.mxu1 %v10133_v16 }
 0x2e6   :  { %6641 = vmatpush1.bf16.msra.mxu0 %v8967_v9  ;;  %v10237_v9 = vld [vmem:[#allocation8 + $0x3f0] ss:$8 sps:$4 sm:$0xff]  }
 0x2e7   :  { %6642 = vmatprep.subr.bf16.mxu0 %v8972_v10  ;;  %5388 = vmatmul.mubr.bf16.gmra.mrb[80].mxu1 %v10843_v15  ;;  %v8976_v15 = vld [vmem:[#allocation8 + $0x2a0] ss:$8 sps:$4 sm:$0xff]  }
 0x2e8   :  { %5397 = vmatprep.mubr.bf16.mxu1 %v9668_v55  ;;  %v8981_v55 = vld [vmem:[#allocation8 + $0x2b4] ss:$8 sps:$4 sm:$0xff]   ;;  %8185 = vmatpush1.bf16.msra.mxu1 %v10137_v22 }
 0x2e9   :  { %6586 = vmatmul.mubr.bf16.gmra.mrb[80].mxu0 %v10072_v34  ;;  %v10139_v34 = vld [vmem:[#allocation8 + $0x334] ss:$8 sps:$4 sm:$0xff]  }
 0x2ea   :  { %6595 = vmatprep.mubr.bf16.mxu0 %v10088_v46  ;;  %6643 = vmatpush1.bf16.msra.mxu0 %v8970_v43  ;;  %v10146_v46 = vld [vmem:[#allocation8 + $0x330] ss:$8 sps:$4 sm:$0xff]  }
 0x2eb   :  { %6644 = vmatprep.subr.bf16.mxu0 %v8975_v60  ;;  %8170 = vmatprep.subr.bf16.mxu1 %v10139_v34 }
 0x2ec   :  { %8186 = vmatpush1.bf16.msra.mxu1 %v10146_v46 }
 0x2ed   :  { %8171 = vmatprep.subr.bf16.mxu1 %v10149_v41 }
 0x2ee   :  { %6645 = vmatpush1.bf16.msra.mxu0 %v8973_v17 }
 0x2ef   :  { %6646 = vmatprep.subr.bf16.mxu0 %v8978_v2  ;;  %5398 = vmatmul.mubr.bf16.gmra.mrb[84].mxu1 %v10845_v19  ;;  %v10153_v19 = vld [vmem:[#allocation8 + $0x340] ss:$8 sps:$4 sm:$0xff]  }
 0x2f0   :  { %5407 = vmatprep.mubr.bf16.mxu1 %v9676_v1  ;;  %v8987_v1 = vld [vmem:[#allocation8 + $0x2d4] ss:$8 sps:$4 sm:$0xff]   ;;  %8187 = vmatpush1.bf16.msra.mxu1 %v10153_v19 }
 0x2f1   :  { %6596 = vmatmul.mubr.bf16.gmra.mrb[84].mxu0 %v10085_v23  ;;  %v8982_v23 = vld [vmem:[#allocation8 + $0x2c0] ss:$8 sps:$4 sm:$0xff]   ;;  %8172 = vmatprep.subr.bf16.mxu1 %v10155_v42 }
 0x2f2   :  { %6605 = vmatprep.mubr.bf16.mxu0 %v10100_v51  ;;  %6647 = vmatpush1.bf16.msra.mxu0 %v8976_v15  ;;  %v10202_v51 = vld [vmem:[#allocation8 + $0x3b0] ss:$8 sps:$4 sm:$0xff]  }
 0x2f3   :  { %6648 = vmatprep.subr.bf16.mxu0 %v8981_v55 }
 0x2f4   :  { %8188 = vmatpush1.bf16.msra.mxu1 %v10162_v56 }
 0x2f5   :  { %8173 = vmatprep.subr.bf16.mxu1 %v10165_v38 }
 0x2f6   :  { %6649 = vmatpush1.bf16.msra.mxu0 %v8979_v52 }
 0x2f7   :  { %6650 = vmatprep.subr.bf16.mxu0 %v8984_v21  ;;  %5408 = vmatmul.mubr.bf16.gmra.mrb[88].mxu1 %v9682_v61  ;;  %v10169_v61 = vld [vmem:[#allocation8 + $0x360] ss:$8 sps:$4 sm:$0xff]  }
 0x2f8   :  { %5417 = vmatprep.mubr.bf16.mxu1 %v9684_v40  ;;  %v8993_v40 = vld [vmem:[#allocation8 + $0x2f4] ss:$8 sps:$4 sm:$0xff]   ;;  %8189 = vmatpush1.bf16.msra.mxu1 %v10169_v61 }
 0x2f9   :  { %6606 = vmatmul.mubr.bf16.gmra.mrb[88].mxu0 %v10097_v4  ;;  %8174 = vmatprep.subr.bf16.mxu1 %v10171_v44  ;;  %v10196_v4 = vld [vmem:[#allocation8 + $0x3a0] ss:$8 sps:$4 sm:$0xff]  }
 0x2fa   :  { %6615 = vmatprep.mubr.bf16.mxu0 %v10112_v59  ;;  %6651 = vmatpush1.bf16.msra.mxu0 %v8982_v23 }
 0x2fb   :  { %6652 = vmatprep.subr.bf16.mxu0 %v8987_v1 }
 0x2fc   :  { %8190 = vmatpush1.bf16.msra.mxu1 %v10177_v28 }
 0x2fd   :  { %8175 = vmatprep.subr.bf16.mxu1 %v10179_v45 }
 0x2fe   :  { %6653 = vmatpush1.bf16.msra.mxu0 %v8985_v49 }
 0x2ff   :  { %6654 = vmatprep.subr.bf16.mxu0 %v8990_v32  ;;  %5418 = vmatmul.mubr.bf16.gmra.mrb[92].mxu1 %v9690_v24  ;;  %v10190_v24 = vld [vmem:[#allocation8 + $0x390] ss:$8 sps:$4 sm:$0xff]  }
 0x300   :  { %8191 = vmatpush1.bf16.msra.mxu1 %v10183_v53 }
 0x301   :  { %6616 = vmatmul.mubr.bf16.gmra.mrb[92].mxu0 %v10109_v54  ;;  %8176 = vmatprep.subr.bf16.mxu1 %v10185_v6 }
 0x302   :  { %6655 = vmatpush1.bf16.msra.mxu0 %v8988_v35 }
 0x303   :  { %6656 = vmatprep.subr.bf16.mxu0 %v8993_v40 }
 0x304   :  { %8192 = vmatpush1.bf16.msra.mxu1 %v10190_v24 }
 0x305   :  { %8177 = vmatprep.subr.bf16.mxu1 %v10192_v20 }
 0x306   :  { %6657 = vmatpush1.bf16.msra.mxu0 %v8991_v33 }
 0x307   :  { %6739 = vmatprep.subr.bf16.mxu0 %v10117_v63 }
 0x308   :  { %8193 = vmatpush1.bf16.msra.mxu1 %v10196_v4 }
 0x309   :  { %8178 = vmatprep.subr.bf16.mxu1 %v10198_v57 }
 0x30c   :  { %8194 = vmatpush1.bf16.msra.mxu1 %v10202_v51 }
 0x30d   :  { %8179 = vmatprep.subr.bf16.mxu1 %v10204_v13 }
 0x310   :  { %8195 = vmatpush1.bf16.msra.mxu1 %v10209_v39 }
 0x311   :  { %8180 = vmatprep.subr.bf16.mxu1 %v10212_v18 }
 0x314   :  { %8196 = vmatpush1.bf16.msra.mxu1 %v10219_v62 }
 0x315   :  { %8181 = vmatprep.subr.bf16.mxu1 %v10226_v48 }
 0x318   :  { %8197 = vmatpush1.bf16.msra.mxu1 %v10229_v31 }
 0x319   :  { %8182 = vmatprep.subr.bf16.mxu1 %v10235_v14 }
 0x31c   :  { %v4897_v58 = vpop.f32.mrb[32].mxu0  ;;  %8198 = vmatpush1.bf16.msra.mxu1 %v10237_v9 }
 0x31d   :  { %v8295_v25 = vadd.f32 %v4897_v58, %v10217_v37  ;;  %v4899_v8 = vpop.f32.mrb[33].mxu0 }
 0x31e   :  { %v8296_v7 = vadd.f32 %v4899_v8, %v10222_v30  ;;  %v4901_v27 = vpop.f32.mrb[34].mxu0 }
 0x31f   :  { %v8297_v54 = vadd.f32 %v4901_v27, %v10217_v37  ;;  %v4903_v47 = vpop.f32.mrb[35].mxu0  ;;  %v5432_v59 = vmax.f32 %v8295_v25, 0.0 }
 0x320   :  { %v8298_v26 = vadd.f32 %v4903_v47, %v10222_v30  ;;  %v5433_v12 = vmax.f32 %v8296_v7, 0.0 }
 0x321   :  { %v5440_v50 = vmax.f32 %v8297_v54, 0.0 }
 0x322   :  { %v5441_v63 = vmax.f32 %v8298_v26, 0.0 }
 0x323   :  { %v5560_v10 = vpack.c.bf16 %v5440_v50, %v5432_v59 }
 0x324   :  { %v5561_v43 = vpack.c.bf16 %v5441_v63, %v5433_v12  ;;  %v4907_v60 = vpop.f32.mrb[36].mxu0 }
 0x325   :  { %v8299_v17 = vadd.f32 %v4907_v60, %v10217_v37  ;;  %v4909_v2 = vpop.f32.mrb[37].mxu0 }
 0x326   :  { %v8300_v15 = vadd.f32 %v4909_v2, %v10222_v30  ;;  %v4911_v55 = vpop.f32.mrb[38].mxu0  ;;  %6658 = vmatprep.mubr.bf16.mxu0 %v5561_v43 }
 0x327   :  { %v8301_v52 = vadd.f32 %v4911_v55, %v10217_v37  ;;  %v4913_v21 = vpop.f32.mrb[39].mxu0  ;;  %6659 = vmatmul.mubr.bf16.vlgmr.msra.gmra.mrb[64].mxu0 %v5560_v10  ;;  %v5448_v1 = vmax.f32 %v8299_v17, 0.0 }
 0x328   :  { %v8302_v23 = vadd.f32 %v4913_v21, %v10222_v30  ;;  %6740 = vmatpush1.bf16.msra.mxu0 %v10120_v36  ;;  %v5449_v32 = vmax.f32 %v8300_v15, 0.0 }
 0x329   :  { %v5456_v49 = vmax.f32 %v8301_v52, 0.0  ;;  %6741 = vmatprep.subr.bf16.mxu0 %v10122_v29 }
 0x32a   :  { %v5457_v35 = vmax.f32 %v8302_v23, 0.0 }
 0x32b   :  { %v5568_v40 = vpack.c.bf16 %v5456_v49, %v5448_v1 }
 0x32c   :  { %v5569_v33 = vpack.c.bf16 %v5457_v35, %v5449_v32  ;;  %v4917_v11 = vpop.f32.mrb[40].mxu0  ;;  %6742 = vmatpush1.bf16.msra.mxu0 %v10130_v5 }
 0x32d   :  { %v8303_v0 = vadd.f32 %v4917_v11, %v10217_v37  ;;  %v4919_v58 = vpop.f32.mrb[41].mxu0  ;;  %6743 = vmatprep.subr.bf16.mxu0 %v10133_v16 }
 0x32e   :  { %v8304_v25 = vadd.f32 %v4919_v58, %v10222_v30  ;;  %v4921_v8 = vpop.f32.mrb[42].mxu0  ;;  %6668 = vmatprep.mubr.bf16.mxu0 %v5569_v33 }
 0x32f   :  { %v8305_v36 = vadd.f32 %v4921_v8, %v10217_v37  ;;  %v4923_v7 = vpop.f32.mrb[43].mxu0  ;;  %6669 = vmatmul.mubr.bf16.gmra.mrb[68].mxu0 %v5568_v40  ;;  %v5464_v27 = vmax.f32 %v8303_v0, 0.0 }
 0x330   :  { %v8306_v29 = vadd.f32 %v4923_v7, %v10222_v30  ;;  %6744 = vmatpush1.bf16.msra.mxu0 %v10137_v22  ;;  %v5465_v5 = vmax.f32 %v8304_v25, 0.0 }
 0x331   :  { %v5472_v54 = vmax.f32 %v8305_v36, 0.0  ;;  %6745 = vmatprep.subr.bf16.mxu0 %v10139_v34 }
 0x332   :  { %v5473_v47 = vmax.f32 %v8306_v29, 0.0 }
 0x333   :  { %v5576_v26 = vpack.c.bf16 %v5472_v54, %v5464_v27 }
 0x334   :  { %v5577_v16 = vpack.c.bf16 %v5473_v47, %v5465_v5  ;;  %v4927_v59 = vpop.f32.mrb[44].mxu0  ;;  %6746 = vmatpush1.bf16.msra.mxu0 %v10146_v46 }
 0x335   :  { %v8307_v50 = vadd.f32 %v4927_v59, %v10217_v37  ;;  %v4929_v12 = vpop.f32.mrb[45].mxu0  ;;  %6747 = vmatprep.subr.bf16.mxu0 %v10149_v41 }
 0x336   :  { %v8308_v63 = vadd.f32 %v4929_v12, %v10222_v30  ;;  %v4931_v10 = vpop.f32.mrb[46].mxu0  ;;  %6678 = vmatprep.mubr.bf16.mxu0 %v5577_v16 }
 0x337   :  { %v8309_v22 = vadd.f32 %v4931_v10, %v10217_v37  ;;  %v4933_v43 = vpop.f32.mrb[47].mxu0  ;;  %6679 = vmatmul.mubr.bf16.gmra.mrb[72].mxu0 %v5576_v26  ;;  %v5480_v60 = vmax.f32 %v8307_v50, 0.0 }
 0x338   :  { %v8310_v34 = vadd.f32 %v4933_v43, %v10222_v30  ;;  %6748 = vmatpush1.bf16.msra.mxu0 %v10153_v19  ;;  %v5481_v46 = vmax.f32 %v8308_v63, 0.0 }
 0x339   :  { %v5488_v17 = vmax.f32 %v8309_v22, 0.0  ;;  %6749 = vmatprep.subr.bf16.mxu0 %v10155_v42 }
 0x33a   :  { %v5489_v2 = vmax.f32 %v8310_v34, 0.0 }
 0x33b   :  { %v5584_v15 = vpack.c.bf16 %v5488_v17, %v5480_v60 }
 0x33c   :  { %v5585_v41 = vpack.c.bf16 %v5489_v2, %v5481_v46  ;;  %v4937_v55 = vpop.f32.mrb[48].mxu0  ;;  %6750 = vmatpush1.bf16.msra.mxu0 %v10162_v56 }
 0x33d   :  { %v8311_v52 = vadd.f32 %v4937_v55, %v10217_v37  ;;  %v4939_v21 = vpop.f32.mrb[49].mxu0  ;;  %6751 = vmatprep.subr.bf16.mxu0 %v10165_v38 }
 0x33e   :  { %v8312_v23 = vadd.f32 %v4939_v21, %v10222_v30  ;;  %v4941_v1 = vpop.f32.mrb[50].mxu0  ;;  %6688 = vmatprep.mubr.bf16.mxu0 %v5585_v41 }
 0x33f   :  { %v8313_v19 = vadd.f32 %v4941_v1, %v10217_v37  ;;  %v4943_v49 = vpop.f32.mrb[51].mxu0  ;;  %6689 = vmatmul.mubr.bf16.gmra.mrb[76].mxu0 %v5584_v15  ;;  %v5496_v32 = vmax.f32 %v8311_v52, 0.0 }
 0x340   :  { %v8314_v42 = vadd.f32 %v4943_v49, %v10222_v30  ;;  %6752 = vmatpush1.bf16.msra.mxu0 %v10169_v61  ;;  %v5497_v56 = vmax.f32 %v8312_v23, 0.0 }
 0x341   :  { %v5504_v35 = vmax.f32 %v8313_v19, 0.0  ;;  %6753 = vmatprep.subr.bf16.mxu0 %v10171_v44 }
 0x342   :  { %v5505_v40 = vmax.f32 %v8314_v42, 0.0 }
 0x343   :  { %v5592_v33 = vpack.c.bf16 %v5504_v35, %v5496_v32 }
 0x344   :  { %v5593_v38 = vpack.c.bf16 %v5505_v40, %v5497_v56  ;;  %v4947_v11 = vpop.f32.mrb[52].mxu0  ;;  %6754 = vmatpush1.bf16.msra.mxu0 %v10177_v28 }
 0x345   :  { %v8315_v0 = vadd.f32 %v4947_v11, %v10217_v37  ;;  %v4949_v58 = vpop.f32.mrb[53].mxu0  ;;  %6755 = vmatprep.subr.bf16.mxu0 %v10179_v45 }
 0x346   :  { %v8316_v25 = vadd.f32 %v4949_v58, %v10222_v30  ;;  %v4951_v8 = vpop.f32.mrb[54].mxu0  ;;  %6698 = vmatprep.mubr.bf16.mxu0 %v5593_v38 }
 0x347   :  { %v8317_v61 = vadd.f32 %v4951_v8, %v10217_v37  ;;  %v4953_v36 = vpop.f32.mrb[55].mxu0  ;;  %6699 = vmatmul.mubr.bf16.gmra.mrb[80].mxu0 %v5592_v33  ;;  %v5512_v7 = vmax.f32 %v8315_v0, 0.0 }
 0x348   :  { %v8318_v44 = vadd.f32 %v4953_v36, %v10222_v30  ;;  %6756 = vmatpush1.bf16.msra.mxu0 %v10183_v53  ;;  %v5513_v28 = vmax.f32 %v8316_v25, 0.0 }
 0x349   :  { %v5520_v29 = vmax.f32 %v8317_v61, 0.0  ;;  %6757 = vmatprep.subr.bf16.mxu0 %v10185_v6 }
 0x34a   :  { %v5521_v27 = vmax.f32 %v8318_v44, 0.0 }
 0x34b   :  { %v5600_v54 = vpack.c.bf16 %v5520_v29, %v5512_v7 }
 0x34c   :  { %v5601_v45 = vpack.c.bf16 %v5521_v27, %v5513_v28  ;;  %v4957_v5 = vpop.f32.mrb[56].mxu0  ;;  %6758 = vmatpush1.bf16.msra.mxu0 %v10190_v24 }
 0x34d   :  { %v8319_v47 = vadd.f32 %v4957_v5, %v10217_v37  ;;  %v4959_v26 = vpop.f32.mrb[57].mxu0  ;;  %6759 = vmatprep.subr.bf16.mxu0 %v10192_v20 }
 0x34e   :  { %v8320_v16 = vadd.f32 %v4959_v26, %v10222_v30  ;;  %v4961_v59 = vpop.f32.mrb[58].mxu0  ;;  %6708 = vmatprep.mubr.bf16.mxu0 %v5601_v45 }
 0x34f   :  { %v8321_v53 = vadd.f32 %v4961_v59, %v10217_v37  ;;  %v4963_v50 = vpop.f32.mrb[59].mxu0  ;;  %6709 = vmatmul.mubr.bf16.gmra.mrb[84].mxu0 %v5600_v54  ;;  %v5528_v12 = vmax.f32 %v8319_v47, 0.0 }
 0x350   :  { %v8322_v6 = vadd.f32 %v4963_v50, %v10222_v30  ;;  %6760 = vmatpush1.bf16.msra.mxu0 %v10196_v4  ;;  %v5529_v24 = vmax.f32 %v8320_v16, 0.0 }
 0x351   :  { %v5536_v63 = vmax.f32 %v8321_v53, 0.0  ;;  %6761 = vmatprep.subr.bf16.mxu0 %v10198_v57 }
 0x352   :  { %v5537_v10 = vmax.f32 %v8322_v6, 0.0 }
 0x353   :  { %v5608_v22 = vpack.c.bf16 %v5536_v63, %v5528_v12 }
 0x354   :  { %v5609_v20 = vpack.c.bf16 %v5537_v10, %v5529_v24  ;;  %v4967_v43 = vpop.f32.mrb[60].mxu0  ;;  %6762 = vmatpush1.bf16.msra.mxu0 %v10202_v51 }
 0x355   :  { %v8323_v34 = vadd.f32 %v4967_v43, %v10217_v37  ;;  %v4969_v60 = vpop.f32.mrb[61].mxu0  ;;  %6763 = vmatprep.subr.bf16.mxu0 %v10204_v13 }
 0x356   :  { %v8324_v17 = vadd.f32 %v4969_v60, %v10222_v30  ;;  %v4971_v46 = vpop.f32.mrb[62].mxu0  ;;  %6718 = vmatprep.mubr.bf16.mxu0 %v5609_v20 }
 0x357   :  { %v8325_v4 = vadd.f32 %v4971_v46, %v10217_v37  ;;  %v4973_v2 = vpop.f32.mrb[63].mxu0  ;;  %6719 = vmatmul.mubr.bf16.gmra.mrb[88].mxu0 %v5608_v22  ;;  %v5544_v15 = vmax.f32 %v8323_v34, 0.0  ;;  %v9123_v37 = vld [vmem:[#allocation7] sm:$0xff] }
 0x358   :  { %v8326_v57 = vadd.f32 %v4973_v2, %v10222_v30  ;;  %6764 = vmatpush1.bf16.msra.mxu0 %v10209_v39  ;;  %v5545_v51 = vmax.f32 %v8324_v17, 0.0  ;;  %v726_v39 = vsub.s32 6, %v10849_v3 }
 0x359   :  { %v5552_v41 = vmax.f32 %v8325_v4, 0.0  ;;  %6765 = vmatprep.subr.bf16.mxu0 %v10212_v18  ;;  %v730_v18 = vsub.s32 7, %v10849_v3  ;;  %v9042_v4 = vld [vmem:[%s10613_s5 + $0x40] sm:$0xff]  }
 0x35a   :  { %v5553_v55 = vmax.f32 %v8326_v57, 0.0  ;;  %v10302_v30 = vrot.slane %v9123_v37, %v726_v39  ;;  %8103 = vmatprep.subr.bf16.mxu1 %v9042_v4 }
 0x35b   :  { %v5616_v52 = vpack.c.bf16 %v5552_v41, %v5544_v15  ;;  %v10304_v21 = vrot.slane %v9123_v37, %v730_v18 }
 0x35c   :  { %v5617_v13 = vpack.c.bf16 %v5553_v55, %v5545_v51  ;;  %6766 = vmatpush1.bf16.msra.mxu0 %v10219_v62 }
 0x35d   :  { %6767 = vmatprep.subr.bf16.mxu0 %v10226_v48 }
 0x35e   :  { %6728 = vmatprep.mubr.bf16.mxu0 %v5617_v13 }
 0x35f   :  { %6729 = vmatmul.mubr.bf16.gmra.mrb[92].mxu0 %v5616_v52 }
 0x360   :  { %6768 = vmatpush1.bf16.msra.mxu0 %v10229_v31 }
 0x361   :  { %6769 = vmatprep.subr.bf16.mxu0 %v10235_v14 }
 0x364   :  { %6770 = vmatpush1.bf16.msra.mxu0 %v10237_v9 }
 0x39a   :  { %v5349_v62 = vpop.f32.mrb[64].mxu1 }
 0x39b   :  { %v8327_v48 = vadd.f32 %v5349_v62, %v10302_v30  ;;  %v5351_v23 = vpop.f32.mrb[65].mxu1 }
 0x39c   :  { %v8328_v1 = vadd.f32 %v5351_v23, %v10304_v21  ;;  %v5353_v31 = vpop.f32.mrb[66].mxu1 }
 0x39d   :  { %v8329_v14 = vadd.f32 %v5353_v31, %v10302_v30  ;;  %v5355_v19 = vpop.f32.mrb[67].mxu1  ;;  %v5434_v49 = vmax.f32 %v8327_v48, 0.0 }
 0x39e   :  { %v8330_v9 = vadd.f32 %v5355_v19, %v10304_v21  ;;  %v5435_v32 = vmax.f32 %v8328_v1, 0.0 }
 0x39f   :  { %v5442_v42 = vmax.f32 %v8329_v14, 0.0 }
 0x3a0   :  { %v5443_v35 = vmax.f32 %v8330_v9, 0.0 }
 0x3a1   :  { %v5562_v56 = vpack.c.bf16 %v5442_v42, %v5434_v49 }
 0x3a2   :  { %v5563_v40 = vpack.c.bf16 %v5443_v35, %v5435_v32  ;;  %v5359_v33 = vpop.f32.mrb[68].mxu1  ;;  %v9043_v35 = vld [vmem:[%s10613_s5] sm:$0xff]  }
 0x3a3   :  { %v8331_v38 = vadd.f32 %v5359_v33, %v10302_v30  ;;  %v5361_v11 = vpop.f32.mrb[69].mxu1  ;;  %v9044_v33 = vld [vmem:[%s10613_s5 + $0x48] sm:$0xff]  }
 0x3a4   :  { %v8332_v0 = vadd.f32 %v5361_v11, %v10304_v21  ;;  %v5363_v58 = vpop.f32.mrb[70].mxu1  ;;  %6771 = vmatprep.mubr.bf16.mxu0 %v5563_v40 }
 0x3a5   :  { %v8333_v25 = vadd.f32 %v5363_v58, %v10302_v30  ;;  %v5365_v8 = vpop.f32.mrb[71].mxu1  ;;  %6772 = vmatmul.mubr.bf16.vlgmr.msra.gmra.mrb[64].mxu0 %v5562_v56  ;;  %v5450_v36 = vmax.f32 %v8331_v38, 0.0 }
 0x3a6   :  { %v8334_v61 = vadd.f32 %v5365_v8, %v10304_v21  ;;  %v5451_v7 = vmax.f32 %v8332_v0, 0.0  ;;  %v9045_v8 = vld [vmem:[%s10613_s5 + $0x8] sm:$0xff]  }
 0x3a7   :  { %v5458_v44 = vmax.f32 %v8333_v25, 0.0 }
 0x3a8   :  { %v5459_v29 = vmax.f32 %v8334_v61, 0.0 }
 0x3a9   :  { %v5570_v28 = vpack.c.bf16 %v5458_v44, %v5450_v36  ;;  %v9046_v44 = vld [vmem:[%s10613_s5 + $0x50] sm:$0xff]  }
 0x3aa   :  { %v5571_v27 = vpack.c.bf16 %v5459_v29, %v5451_v7  ;;  %v5369_v54 = vpop.f32.mrb[72].mxu1 }
 0x3ab   :  { %v8335_v45 = vadd.f32 %v5369_v54, %v10302_v30  ;;  %v5371_v5 = vpop.f32.mrb[73].mxu1 }
 0x3ac   :  { %v8336_v47 = vadd.f32 %v5371_v5, %v10304_v21  ;;  %v5373_v26 = vpop.f32.mrb[74].mxu1  ;;  %6781 = vmatprep.mubr.bf16.mxu0 %v5571_v27 }
 0x3ad   :  { %v8337_v16 = vadd.f32 %v5373_v26, %v10302_v30  ;;  %v5375_v59 = vpop.f32.mrb[75].mxu1  ;;  %6782 = vmatmul.mubr.bf16.gmra.mrb[68].mxu0 %v5570_v28  ;;  %v5466_v50 = vmax.f32 %v8335_v45, 0.0  ;;  %v9047_v45 = vld [vmem:[%s10613_s5 + $0x10] sm:$0xff]   ;;  %v9048_v26 = vld [vmem:[%s10613_s5 + $0x58] sm:$0xff]  }
 0x3ae   :  { %v8338_v53 = vadd.f32 %v5375_v59, %v10304_v21  ;;  %v5467_v12 = vmax.f32 %v8336_v47, 0.0 }
 0x3af   :  { %v5474_v6 = vmax.f32 %v8337_v16, 0.0 }
 0x3b0   :  { %v5475_v63 = vmax.f32 %v8338_v53, 0.0 }
 0x3b1   :  { %v5578_v24 = vpack.c.bf16 %v5474_v6, %v5466_v50 }
 0x3b2   :  { %v5579_v10 = vpack.c.bf16 %v5475_v63, %v5467_v12  ;;  %v5379_v22 = vpop.f32.mrb[76].mxu1  ;;  %v9049_v12 = vld [vmem:[%s10613_s5 + $0x18] sm:$0xff]  }
 0x3b3   :  { %v8339_v20 = vadd.f32 %v5379_v22, %v10302_v30  ;;  %v5381_v43 = vpop.f32.mrb[77].mxu1 }
 0x3b4   :  { %v8340_v34 = vadd.f32 %v5381_v43, %v10304_v21  ;;  %v5383_v60 = vpop.f32.mrb[78].mxu1  ;;  %6791 = vmatprep.mubr.bf16.mxu0 %v5579_v10  ;;  %v9050_v10 = vld [vmem:[%s10613_s5 + $0x60] sm:$0xff]  }
 0x3b5   :  { %v8341_v17 = vadd.f32 %v5383_v60, %v10302_v30  ;;  %v5385_v46 = vpop.f32.mrb[79].mxu1  ;;  %6792 = vmatmul.mubr.bf16.gmra.mrb[72].mxu0 %v5578_v24  ;;  %v5482_v57 = vmax.f32 %v8339_v20, 0.0 }
 0x3b6   :  { %v8342_v2 = vadd.f32 %v5385_v46, %v10304_v21  ;;  %v5483_v41 = vmax.f32 %v8340_v34, 0.0 }
 0x3b7   :  { %v5490_v15 = vmax.f32 %v8341_v17, 0.0  ;;  %v9051_v17 = vld [vmem:[%s10613_s5 + $0x20] sm:$0xff]  }
 0x3b8   :  { %v5491_v51 = vmax.f32 %v8342_v2, 0.0  ;;  %v9052_v2 = vld [vmem:[%s10613_s5 + $0x68] sm:$0xff]  }
 0x3b9   :  { %v5586_v55 = vpack.c.bf16 %v5490_v15, %v5482_v57 }
 0x3ba   :  { %v5587_v52 = vpack.c.bf16 %v5491_v51, %v5483_v41  ;;  %v5389_v13 = vpop.f32.mrb[80].mxu1 }
 0x3bb   :  { %v8343_v39 = vadd.f32 %v5389_v13, %v10302_v30  ;;  %v5391_v18 = vpop.f32.mrb[81].mxu1 }
 0x3bc   :  { %v8344_v37 = vadd.f32 %v5391_v18, %v10304_v21  ;;  %v5393_v62 = vpop.f32.mrb[82].mxu1  ;;  %6801 = vmatprep.mubr.bf16.mxu0 %v5587_v52 }
 0x3bd   :  { %v8345_v48 = vadd.f32 %v5393_v62, %v10302_v30  ;;  %v5395_v23 = vpop.f32.mrb[83].mxu1  ;;  %6802 = vmatmul.mubr.bf16.gmra.mrb[76].mxu0 %v5586_v55  ;;  %v5498_v31 = vmax.f32 %v8343_v39, 0.0 }
 0x3be   :  { %v8346_v1 = vadd.f32 %v5395_v23, %v10304_v21  ;;  %v5499_v19 = vmax.f32 %v8344_v37, 0.0  ;;  %v9056_v23 = vld [vmem:[%s10613_s5 + $0x78] sm:$0xff]  }
 0x3bf   :  { %v5506_v14 = vmax.f32 %v8345_v48, 0.0  ;;  %v9053_v48 = vld [vmem:[%s10613_s5 + $0x28] sm:$0xff]  }
 0x3c0   :  { %v5507_v9 = vmax.f32 %v8346_v1, 0.0  ;;  %v9057_v1 = vld [vmem:[%s10613_s5 + $0x38] sm:$0xff]  }
 0x3c1   :  { %v5594_v49 = vpack.c.bf16 %v5506_v14, %v5498_v31 }
 0x3c2   :  { %v5595_v42 = vpack.c.bf16 %v5507_v9, %v5499_v19  ;;  %v5399_v32 = vpop.f32.mrb[84].mxu1 }
 0x3c3   :  { %v8347_v56 = vadd.f32 %v5399_v32, %v10302_v30  ;;  %v5401_v40 = vpop.f32.mrb[85].mxu1 }
 0x3c4   :  { %v8348_v38 = vadd.f32 %v5401_v40, %v10304_v21  ;;  %v5403_v11 = vpop.f32.mrb[86].mxu1  ;;  %6811 = vmatprep.mubr.bf16.mxu1 %v5595_v42 }
 0x3c5   :  { %v8349_v0 = vadd.f32 %v5403_v11, %v10302_v30  ;;  %v5405_v58 = vpop.f32.mrb[87].mxu1  ;;  %6812 = vmatmul.mubr.bf16.vlgmr.msra.gmra.mrb[96].mxu1 %v5594_v49  ;;  %v5514_v61 = vmax.f32 %v8347_v56, 0.0 }
 0x3c6   :  { %v8350_v25 = vadd.f32 %v5405_v58, %v10304_v21  ;;  %8104 = vmatpush3.bf16.msra.mxu1 %v9043_v35  ;;  %v5515_v7 = vmax.f32 %v8348_v38, 0.0 }
 0x3c7   :  { %v5522_v36 = vmax.f32 %v8349_v0, 0.0  ;;  %8105 = vmatprep.subr.bf16.mxu1 %v9044_v33 }
 0x3c8   :  { %v5523_v29 = vmax.f32 %v8350_v25, 0.0 }
 0x3c9   :  { %v5602_v28 = vpack.c.bf16 %v5522_v36, %v5514_v61  ;;  %v10861_v61 = vsub.s32 0, %v10849_v3 }
 0x3ca   :  { %v5603_v27 = vpack.c.bf16 %v5523_v29, %v5515_v7  ;;  %v5409_v54 = vpop.f32.mrb[88].mxu1  ;;  %8106 = vmatpush3.bf16.msra.mxu1 %v9045_v8  ;;  %v5748_v8 = vld [vmem:[#allocation10] sm:$0x3] }
 0x3cb   :  { %v8351_v5 = vadd.f32 %v5409_v54, %v10302_v30  ;;  %v5411_v47 = vpop.f32.mrb[89].mxu1  ;;  %8107 = vmatprep.subr.bf16.mxu1 %v9046_v44  ;;  %v10420_v36 = vrot.slane %v5748_v8, %v10861_v61  ;;  %v10862_v44 = vsub.s32 1, %v10849_v3 }
 0x3cc   :  { %v8352_v16 = vadd.f32 %v5411_v47, %v10304_v21  ;;  %v5413_v59 = vpop.f32.mrb[90].mxu1  ;;  %6821 = vmatprep.mubr.bf16.mxu1 %v5603_v27 }
 0x3cd   :  { %v8353_v53 = vadd.f32 %v5413_v59, %v10302_v30  ;;  %v5415_v50 = vpop.f32.mrb[91].mxu1  ;;  %6822 = vmatmul.mubr.bf16.gmra.mrb[100].mxu1 %v5602_v28  ;;  %v5530_v63 = vmax.f32 %v8351_v5, 0.0  ;;  %v10424_v7 = vrot.slane %v5748_v8, %v10862_v44 }
 0x3ce   :  { %v8354_v6 = vadd.f32 %v5415_v50, %v10304_v21  ;;  %8108 = vmatpush3.bf16.msra.mxu1 %v9047_v45  ;;  %v5531_v22 = vmax.f32 %v8352_v16, 0.0 }
 0x3cf   :  { %v5538_v24 = vmax.f32 %v8353_v53, 0.0  ;;  %8109 = vmatprep.subr.bf16.mxu1 %v9048_v26 }
 0x3d0   :  { %v5539_v20 = vmax.f32 %v8354_v6, 0.0 }
 0x3d1   :  { %v5610_v43 = vpack.c.bf16 %v5538_v24, %v5530_v63 }
 0x3d2   :  { %v5611_v34 = vpack.c.bf16 %v5539_v20, %v5531_v22  ;;  %v5419_v60 = vpop.f32.mrb[92].mxu1  ;;  %8110 = vmatpush3.bf16.msra.mxu1 %v9049_v12 }
 0x3d3   :  { %v8355_v46 = vadd.f32 %v5419_v60, %v10302_v30  ;;  %v5421_v4 = vpop.f32.mrb[93].mxu1  ;;  %8111 = vmatprep.subr.bf16.mxu1 %v9050_v10 }
 0x3d4   :  { %v8356_v57 = vadd.f32 %v5421_v4, %v10304_v21  ;;  %v5423_v15 = vpop.f32.mrb[94].mxu1  ;;  %6831 = vmatprep.mubr.bf16.mxu1 %v5611_v34 }
 0x3d5   :  { %v8357_v41 = vadd.f32 %v5423_v15, %v10302_v30  ;;  %v5425_v51 = vpop.f32.mrb[95].mxu1  ;;  %6832 = vmatmul.mubr.bf16.gmra.mrb[104].mxu1 %v5610_v43  ;;  %v5546_v52 = vmax.f32 %v8355_v46, 0.0  ;;  %v9054_v30 = vld [vmem:[%s10613_s5 + $0x70] sm:$0xff]  }
 0x3d6   :  { %v8358_v55 = vadd.f32 %v5425_v51, %v10304_v21  ;;  %8112 = vmatpush3.bf16.msra.mxu1 %v9051_v17  ;;  %v5547_v39 = vmax.f32 %v8356_v57, 0.0  ;;  %v9055_v21 = vld [vmem:[%s10613_s5 + $0x30] sm:$0xff]  }
 0x3d7   :  { %v5554_v13 = vmax.f32 %v8357_v41, 0.0  ;;  %8113 = vmatprep.subr.bf16.mxu1 %v9052_v2 }
 0x3d8   :  { %v5555_v18 = vmax.f32 %v8358_v55, 0.0 }
 0x3d9   :  { %v5618_v37 = vpack.c.bf16 %v5554_v13, %v5546_v52 }
 0x3da   :  { %v5619_v62 = vpack.c.bf16 %v5555_v18, %v5547_v39  ;;  %8114 = vmatpush3.bf16.msra.mxu1 %v9053_v48 }
 0x3db   :  { %8115 = vmatprep.subr.bf16.mxu1 %v9054_v30 }
 0x3dc   :  { %6841 = vmatprep.mubr.bf16.mxu1 %v5619_v62 }
 0x3dd   :  { %6842 = vmatmul.mubr.bf16.gmra.mrb[108].mxu1 %v5618_v37 }
 0x3de   :  { %8116 = vmatpush3.bf16.msra.mxu1 %v9055_v21 }
 0x3df   :  { %8117 = vmatprep.subr.bf16.mxu1 %v9056_v23 }
 0x3e2   :  { %8118 = vmatpush3.bf16.msra.mxu1 %v9057_v1 }
 0x41a   :  { %v10386_v31 = vpop.f32.mrb[80].mxu0 }
 0x41b   :  { %v10388_v14 = vpop.f32.mrb[81].mxu0 }
 0x41c   :  { %v10390_v19 = vpop.f32.mrb[82].mxu0 }
 0x41d   :  { %v10392_v9 = vpop.f32.mrb[83].mxu0 }
 0x422   :  { %v10394_v49 = vpop.f32.mrb[84].mxu0 }
 0x423   :  { %v10396_v42 = vpop.f32.mrb[85].mxu0 }
 0x424   :  { %v10398_v32 = vpop.f32.mrb[86].mxu0 }
 0x425   :  { %v10400_v35 = vpop.f32.mrb[87].mxu0 }
 0x42a   :  { %v10402_v56 = vpop.f32.mrb[88].mxu0 }
 0x42b   :  { %v10404_v40 = vpop.f32.mrb[89].mxu0 }
 0x42c   :  { %v10406_v33 = vpop.f32.mrb[90].mxu0 }
 0x42d   :  { %v10408_v38 = vpop.f32.mrb[91].mxu0 }
 0x432   :  { %v10410_v11 = vpop.f32.mrb[92].mxu0 }
 0x433   :  { %v10412_v0 = vpop.f32.mrb[93].mxu0 }
 0x434   :  { %v10414_v58 = vpop.f32.mrb[94].mxu0 }
 0x435   :  { %v10416_v25 = vpop.f32.mrb[95].mxu0 }
 0x478   :  { %v6773_v29 = vpop.f32.mrb[64].mxu0 }
 0x479   :  { %v8359_v28 = vadd.f32 %v6773_v29, %v10420_v36  ;;  %v6775_v27 = vpop.f32.mrb[65].mxu0 }
 0x47a   :  { %v8360_v54 = vadd.f32 %v6775_v27, %v10424_v7  ;;  %v6777_v45 = vpop.f32.mrb[66].mxu0 }
 0x47b   :  { %v8361_v5 = vadd.f32 %v6777_v45, %v10420_v36  ;;  %v6779_v47 = vpop.f32.mrb[67].mxu0  ;;  %v6852_v16 = vmax.f32 %v8359_v28, 0.0 }
 0x47c   :  { %v8362_v26 = vadd.f32 %v6779_v47, %v10424_v7  ;;  %v6853_v53 = vmax.f32 %v8360_v54, 0.0 }
 0x47d   :  { %v6854_v59 = vmax.f32 %v8361_v5, 0.0 }
 0x47e   :  { %v6855_v50 = vmax.f32 %v8362_v26, 0.0 }
 0x47f   :  { %v6884_v6 = vpack.c.bf16 %v6854_v59, %v6852_v16  ;;  %v8375_v16 = vadd.f32 %v10386_v31, %v10420_v36 }
 0x480   :  { %v6885_v3 = vpack.c.bf16 %v6855_v50, %v6853_v53  ;;  %v6783_v12 = vpop.f32.mrb[68].mxu0  ;;  %v8377_v53 = vadd.f32 %v10388_v14, %v10424_v7 }
 0x481   :  { %v8363_v63 = vadd.f32 %v6783_v12, %v10420_v36  ;;  %v6785_v24 = vpop.f32.mrb[69].mxu0 }
 0x482   :  { %v8364_v10 = vadd.f32 %v6785_v24, %v10424_v7  ;;  %v6787_v22 = vpop.f32.mrb[70].mxu0  ;;  %7067 = vmatprep.mubr.bf16.mxu1 %v6885_v3  ;;  %v8379_v3 = vadd.f32 %v10390_v19, %v10420_v36  ;;  %v8381_v24 = vadd.f32 %v10392_v9, %v10424_v7 }
 0x483   :  { %v8365_v20 = vadd.f32 %v6787_v22, %v10420_v36  ;;  %v6789_v43 = vpop.f32.mrb[71].mxu0  ;;  %7068 = vmatmul.mubr.bf16.vlgmr.msra.gmra.mrb[112].mxu1 %v6884_v6  ;;  %v6856_v60 = vmax.f32 %v8363_v63, 0.0 }
 0x484   :  { %v8366_v34 = vadd.f32 %v6789_v43, %v10424_v7  ;;  %v6857_v46 = vmax.f32 %v8364_v10, 0.0 }
 0x485   :  { %v6858_v17 = vmax.f32 %v8365_v20, 0.0 }
 0x486   :  { %v6859_v4 = vmax.f32 %v8366_v34, 0.0 }
 0x487   :  { %v6886_v2 = vpack.c.bf16 %v6858_v17, %v6856_v60 }
 0x488   :  { %v6887_v57 = vpack.c.bf16 %v6859_v4, %v6857_v46  ;;  %v6793_v15 = vpop.f32.mrb[72].mxu0  ;;  %v8383_v46 = vadd.f32 %v10394_v49, %v10420_v36  ;;  %v8385_v4 = vadd.f32 %v10396_v42, %v10424_v7 }
 0x489   :  { %v8367_v41 = vadd.f32 %v6793_v15, %v10420_v36  ;;  %v6795_v51 = vpop.f32.mrb[73].mxu0 }
 0x48a   :  { %v8368_v55 = vadd.f32 %v6795_v51, %v10424_v7  ;;  %v6797_v52 = vpop.f32.mrb[74].mxu0  ;;  %7075 = vmatprep.mubr.bf16.mxu1 %v6887_v57  ;;  %v8387_v57 = vadd.f32 %v10398_v32, %v10420_v36  ;;  %v8389_v51 = vadd.f32 %v10400_v35, %v10424_v7 }
 0x48b   :  { %v8369_v13 = vadd.f32 %v6797_v52, %v10420_v36  ;;  %v6799_v39 = vpop.f32.mrb[75].mxu0  ;;  %7076 = vmatmul.mubr.bf16.gmra.mrb[116].mxu1 %v6886_v2  ;;  %v6860_v37 = vmax.f32 %v8367_v41, 0.0 }
 0x48c   :  { %v8370_v18 = vadd.f32 %v6799_v39, %v10424_v7  ;;  %v6861_v48 = vmax.f32 %v8368_v55, 0.0 }
 0x48d   :  { %v6862_v62 = vmax.f32 %v8369_v13, 0.0 }
 0x48e   :  { %v6863_v30 = vmax.f32 %v8370_v18, 0.0 }
 0x48f   :  { %v6888_v21 = vpack.c.bf16 %v6862_v62, %v6860_v37 }
 0x490   :  { %v6889_v23 = vpack.c.bf16 %v6863_v30, %v6861_v48  ;;  %v6803_v1 = vpop.f32.mrb[76].mxu0  ;;  %v8391_v48 = vadd.f32 %v10402_v56, %v10420_v36  ;;  %v8393_v30 = vadd.f32 %v10404_v40, %v10424_v7 }
 0x491   :  { %v8371_v8 = vadd.f32 %v6803_v1, %v10420_v36  ;;  %v6805_v61 = vpop.f32.mrb[77].mxu0 }
 0x492   :  { %v8372_v44 = vadd.f32 %v6805_v61, %v10424_v7  ;;  %v6807_v29 = vpop.f32.mrb[78].mxu0  ;;  %7083 = vmatprep.mubr.bf16.mxu1 %v6889_v23  ;;  %v8395_v23 = vadd.f32 %v10406_v33, %v10420_v36  ;;  %v8397_v61 = vadd.f32 %v10408_v38, %v10424_v7 }
 0x493   :  { %v8373_v28 = vadd.f32 %v6807_v29, %v10420_v36  ;;  %v6809_v27 = vpop.f32.mrb[79].mxu0  ;;  %7084 = vmatmul.mubr.bf16.gmra.mrb[120].mxu1 %v6888_v21  ;;  %v6864_v45 = vmax.f32 %v8371_v8, 0.0 }
 0x494   :  { %v8374_v54 = vadd.f32 %v6809_v27, %v10424_v7  ;;  %v6865_v47 = vmax.f32 %v8372_v44, 0.0 }
 0x495   :  { %v6866_v5 = vmax.f32 %v8373_v28, 0.0 }
 0x496   :  { %v6867_v26 = vmax.f32 %v8374_v54, 0.0 }
 0x497   :  { %v6890_v59 = vpack.c.bf16 %v6866_v5, %v6864_v45 }
 0x498   :  { %v6891_v50 = vpack.c.bf16 %v6867_v26, %v6865_v47  ;;  %v6813_v6 = vpop.f32.mrb[96].mxu1  ;;  %v8399_v47 = vadd.f32 %v10410_v11, %v10420_v36  ;;  %v8401_v26 = vadd.f32 %v10412_v0, %v10424_v7 }
 0x499   :  { %v8376_v12 = vadd.f32 %v8375_v16, %v6813_v6  ;;  %v6815_v63 = vpop.f32.mrb[97].mxu1  ;;  %v8405_v6 = vadd.f32 %v10416_v25, %v10424_v7 }
 0x49a   :  { %v8378_v10 = vadd.f32 %v8377_v53, %v6815_v63  ;;  %v6817_v22 = vpop.f32.mrb[98].mxu1  ;;  %7091 = vmatprep.mubr.bf16.mxu1 %v6891_v50 }
 0x49b   :  { %v8380_v20 = vadd.f32 %v8379_v3, %v6817_v22  ;;  %v6819_v43 = vpop.f32.mrb[99].mxu1  ;;  %7092 = vmatmul.mubr.bf16.gmra.mrb[124].mxu1 %v6890_v59  ;;  %v6868_v34 = vmax.f32 %v8376_v12, 0.0  ;;  %v8403_v59 = vadd.f32 %v10414_v58, %v10420_v36  ;;  %v10474_v36 = vld [vmem:[#allocation11] ss:$0 sm:$0xff] }
 0x49c   :  { %v8382_v31 = vadd.f32 %v8381_v24, %v6819_v43  ;;  %v6869_v14 = vmax.f32 %v8378_v10, 0.0 }
 0x49d   :  { %v6870_v60 = vmax.f32 %v8380_v20, 0.0 }
 0x49e   :  { %v6871_v17 = vmax.f32 %v8382_v31, 0.0 }
 0x49f   :  { %v6892_v19 = vpack.c.bf16 %v6870_v60, %v6868_v34 }
 0x4a0   :  { %v6893_v2 = vpack.c.bf16 %v6871_v17, %v6869_v14  ;;  %v6823_v9 = vpop.f32.mrb[100].mxu1 }
 0x4a1   :  { %v8384_v15 = vadd.f32 %v8383_v46, %v6823_v9  ;;  %v6825_v41 = vpop.f32.mrb[101].mxu1  ;;  %v10477_v46 = vld [vmem:[#allocation13] ss:$0 sm:$0xff] }
 0x4a2   :  { %v8386_v55 = vadd.f32 %v8385_v4, %v6825_v41  ;;  %v6827_v52 = vpop.f32.mrb[102].mxu1  ;;  %7099 = vmatprep.mubr.bf16.mxu1 %v6893_v2 }
 0x4a3   :  { %v8388_v13 = vadd.f32 %v8387_v57, %v6827_v52  ;;  %v6829_v39 = vpop.f32.mrb[103].mxu1  ;;  %7100 = vmatmul.mubr.bf16.gmra.mrb[128].mxu1 %v6892_v19  ;;  %v6872_v18 = vmax.f32 %v8384_v15, 0.0 }
 0x4a4   :  { %v8390_v49 = vadd.f32 %v8389_v51, %v6829_v39  ;;  %v6873_v42 = vmax.f32 %v8386_v55, 0.0 }
 0x4a5   :  { %v6874_v37 = vmax.f32 %v8388_v13, 0.0 }
 0x4a6   :  { %v6875_v62 = vmax.f32 %v8390_v49, 0.0 }
 0x4a7   :  { %v6894_v32 = vpack.c.bf16 %v6874_v37, %v6872_v18 }
 0x4a8   :  { %v6895_v21 = vpack.c.bf16 %v6875_v62, %v6873_v42  ;;  %v6833_v35 = vpop.f32.mrb[104].mxu1 }
 0x4a9   :  { %v8392_v1 = vadd.f32 %v8391_v48, %v6833_v35  ;;  %v6835_v8 = vpop.f32.mrb[105].mxu1 }
 0x4aa   :  { %v8394_v44 = vadd.f32 %v8393_v30, %v6835_v8  ;;  %v6837_v29 = vpop.f32.mrb[106].mxu1  ;;  %7107 = vmatprep.mubr.bf16.mxu1 %v6895_v21 }
 0x4ab   :  { %v8396_v28 = vadd.f32 %v8395_v23, %v6837_v29  ;;  %v6839_v27 = vpop.f32.mrb[107].mxu1  ;;  %7108 = vmatmul.mubr.bf16.gmra.mrb[132].mxu1 %v6894_v32  ;;  %v6876_v54 = vmax.f32 %v8392_v1, 0.0 }
 0x4ac   :  { %v8398_v56 = vadd.f32 %v8397_v61, %v6839_v27  ;;  %v6877_v40 = vmax.f32 %v8394_v44, 0.0 }
 0x4ad   :  { %v6878_v45 = vmax.f32 %v8396_v28, 0.0 }
 0x4ae   :  { %v6879_v5 = vmax.f32 %v8398_v56, 0.0 }
 0x4af   :  { %v6896_v33 = vpack.c.bf16 %v6878_v45, %v6876_v54 }
 0x4b0   :  { %v6897_v16 = vpack.c.bf16 %v6879_v5, %v6877_v40  ;;  %v6843_v38 = vpop.f32.mrb[108].mxu1 }
 0x4b1   :  { %v8400_v53 = vadd.f32 %v8399_v47, %v6843_v38  ;;  %v6845_v50 = vpop.f32.mrb[109].mxu1 }
 0x4b2   :  { %v8402_v3 = vadd.f32 %v8401_v26, %v6845_v50  ;;  %v6847_v12 = vpop.f32.mrb[110].mxu1  ;;  %7115 = vmatprep.mubr.bf16.mxu1 %v6897_v16 }
 0x4b3   :  { %v8404_v63 = vadd.f32 %v8403_v59, %v6847_v12  ;;  %v6849_v24 = vpop.f32.mrb[111].mxu1  ;;  %7116 = vmatmul.mubr.bf16.gmra.mrb[136].mxu1 %v6896_v33  ;;  %v6880_v10 = vmax.f32 %v8400_v53, 0.0 }
 0x4b4   :  { %v8406_v11 = vadd.f32 %v8405_v6, %v6849_v24  ;;  %v6881_v0 = vmax.f32 %v8402_v3, 0.0 }
 0x4b5   :  { %v6882_v22 = vmax.f32 %v8404_v63, 0.0 }
 0x4b6   :  { %v6883_v20 = vmax.f32 %v8406_v11, 0.0 }
 0x4b7   :  { %v6898_v43 = vpack.c.bf16 %v6882_v22, %v6880_v10 }
 0x4b8   :  { %v6899_v31 = vpack.c.bf16 %v6883_v20, %v6881_v0 }
 0x4ba   :  { %7123 = vmatprep.mubr.bf16.mxu1 %v6899_v31 }
 0x4bb   :  { %7124 = vmatmul.mubr.bf16.gmra.mrb[140].mxu1 %v6898_v43 }
 0x556   :  { %v8119_v58 = vpop.f32.mrb[112].mxu1 }
 0x557   :  { %v8120_v34 = vpop.f32.mrb[113].mxu1 }
 0x558   :  { %v8121_v25 = vadd.f32 %v8120_v34, %v8119_v58  ;;  %v8122_v7 = vpop.f32.mrb[114].mxu1 }
 0x559   :  { %v8123_v60 = vpop.f32.mrb[115].mxu1 }
 0x55a   :  { %v7070_v14 = vadd.f32 %v8121_v25, %v10474_v36  ;;  %v8124_v17 = vadd.f32 %v8123_v60, %v8122_v7 }
 0x55c   :  { %v7132_v19 = vmax.f32 %v7070_v14, 0.0  ;;  %v7073_v4 = vadd.f32 %v8124_v17, %v10474_v36 }
 0x55e   :  { %v7133_v2 = vmax.f32 %v7073_v4, 0.0  ;;  %v8125_v9 = vpop.f32.mrb[116].mxu1  ;;  %v7155_v57 = vmul.f32 %v10477_v46, %v7132_v19 }
 0x55f   :  { %v8126_v15 = vpop.f32.mrb[117].mxu1 }
 0x560   :  { %v8127_v41 = vadd.f32 %v8126_v15, %v8125_v9  ;;  %v8128_v51 = vpop.f32.mrb[118].mxu1  ;;  %v7172_v55 = vsel %vm7171_vm0, %v7155_v57, 0.0  ;;  %v7156_v52 = vmul.f32 %v10477_v46, %v7133_v2 }
 0x561   :  { %v8129_v13 = vpop.f32.mrb[119].mxu1  ;;  %7173 = vadd.xlane.f32.xlu0 %v7172_v55 }
 0x562   :  { %v7078_v39 = vadd.f32 %v8127_v41, %v10474_v36  ;;  %v8130_v49 = vadd.f32 %v8129_v13, %v8128_v51  ;;  %v7175_v42 = vsel %vm7171_vm0, %v7156_v52, 0.0 }
 0x564   :  { %v7134_v18 = vmax.f32 %v7078_v39, 0.0  ;;  %v7081_v37 = vadd.f32 %v8130_v49, %v10474_v36 }
 0x565   :  { %7176 = vadd.xlane.f32.xlu0 %v7175_v42 }
 0x566   :  { %v7135_v62 = vmax.f32 %v7081_v37, 0.0  ;;  %v8131_v48 = vpop.f32.mrb[120].mxu1  ;;  %v7157_v32 = vmul.f32 %v10477_v46, %v7134_v18 }
 0x567   :  { %v8132_v30 = vpop.f32.mrb[121].mxu1 }
 0x568   :  { %v8133_v21 = vadd.f32 %v8132_v30, %v8131_v48  ;;  %v8134_v35 = vpop.f32.mrb[122].mxu1  ;;  %v7178_v23 = vsel %vm7171_vm0, %v7157_v32, 0.0  ;;  %v7158_v1 = vmul.f32 %v10477_v46, %v7135_v62 }
 0x569   :  { %v8135_v8 = vpop.f32.mrb[123].mxu1  ;;  %7179 = vadd.xlane.f32.xlu1 %v7178_v23 }
 0x56a   :  { %v7086_v61 = vadd.f32 %v8133_v21, %v10474_v36  ;;  %v8136_v44 = vadd.f32 %v8135_v8, %v8134_v35  ;;  %v7181_v27 = vsel %vm7171_vm0, %v7158_v1, 0.0 }
 0x56c   :  { %v7136_v29 = vmax.f32 %v7086_v61, 0.0  ;;  %v7089_v28 = vadd.f32 %v8136_v44, %v10474_v36 }
 0x56d   :  { %7182 = vadd.xlane.f32.xlu1 %v7181_v27 }
 0x56e   :  { %v7137_v56 = vmax.f32 %v7089_v28, 0.0  ;;  %v8137_v54 = vpop.f32.mrb[124].mxu1  ;;  %v7159_v45 = vmul.f32 %v10477_v46, %v7136_v29 }
 0x56f   :  { %v8138_v40 = vpop.f32.mrb[125].mxu1 }
 0x570   :  { %v8139_v5 = vadd.f32 %v8138_v40, %v8137_v54  ;;  %v8140_v47 = vpop.f32.mrb[126].mxu1  ;;  %v7184_v33 = vsel %vm7171_vm0, %v7159_v45, 0.0  ;;  %v7160_v26 = vmul.f32 %v10477_v46, %v7137_v56 }
 0x571   :  { %v8141_v16 = vpop.f32.mrb[127].mxu1  ;;  %7185 = vadd.xlane.f32.xlu0 %v7184_v33 }
 0x572   :  { %v7094_v38 = vadd.f32 %v8139_v5, %v10474_v36  ;;  %v8142_v59 = vadd.f32 %v8141_v16, %v8140_v47  ;;  %v7187_v53 = vsel %vm7171_vm0, %v7160_v26, 0.0 }
 0x573   :  { %7188 = vadd.xlane.f32.xlu1 %v7187_v53 }
 0x574   :  { %v7138_v50 = vmax.f32 %v7094_v38, 0.0  ;;  %v7097_v6 = vadd.f32 %v8142_v59, %v10474_v36 }
 0x576   :  { %v7139_v3 = vmax.f32 %v7097_v6, 0.0  ;;  %v8143_v12 = vpop.f32.mrb[128].mxu1  ;;  %v7161_v63 = vmul.f32 %v10477_v46, %v7138_v50  ;;  %v10526_v6 = vld [vmem:[#allocation2] ss:$0 sm:$0xff] }
 0x577   :  { %v8144_v24 = vpop.f32.mrb[129].mxu1 }
 0x578   :  { %v8145_v11 = vadd.f32 %v8144_v24, %v8143_v12  ;;  %v8146_v10 = vpop.f32.mrb[130].mxu1  ;;  %v7190_v22 = vsel %vm7171_vm0, %v7161_v63, 0.0  ;;  %v7162_v0 = vmul.f32 %v10477_v46, %v7139_v3 }
 0x579   :  { %v8147_v20 = vpop.f32.mrb[131].mxu1  ;;  %7191 = vadd.xlane.f32.xlu0 %v7190_v22 }
 0x57a   :  { %v7102_v43 = vadd.f32 %v8145_v11, %v10474_v36  ;;  %v8148_v31 = vadd.f32 %v8147_v20, %v8146_v10  ;;  %v7193_v58 = vsel %vm7171_vm0, %v7162_v0, 0.0 }
 0x57b   :  { %7194 = vadd.xlane.f32.xlu1 %v7193_v58 }
 0x57c   :  { %v7140_v34 = vmax.f32 %v7102_v43, 0.0  ;;  %v7105_v25 = vadd.f32 %v8148_v31, %v10474_v36 }
 0x57e   :  { %v7141_v7 = vmax.f32 %v7105_v25, 0.0  ;;  %v8149_v60 = vpop.f32.mrb[132].mxu1  ;;  %v7163_v14 = vmul.f32 %v10477_v46, %v7140_v34 }
 0x57f   :  { %v8150_v17 = vpop.f32.mrb[133].mxu1 }
 0x580   :  { %v8151_v19 = vadd.f32 %v8150_v17, %v8149_v60  ;;  %v8152_v4 = vpop.f32.mrb[134].mxu1  ;;  %v7196_v2 = vsel %vm7171_vm0, %v7163_v14, 0.0  ;;  %v7164_v9 = vmul.f32 %v10477_v46, %v7141_v7 }
 0x581   :  { %v8153_v57 = vpop.f32.mrb[135].mxu1  ;;  %7197 = vadd.xlane.f32.xlu0 %v7196_v2 }
 0x582   :  { %v7110_v15 = vadd.f32 %v8151_v19, %v10474_v36  ;;  %v8154_v41 = vadd.f32 %v8153_v57, %v8152_v4  ;;  %v7199_v51 = vsel %vm7171_vm0, %v7164_v9, 0.0 }
 0x583   :  { %7200 = vadd.xlane.f32.xlu1 %v7199_v51 }
 0x584   :  { %v7142_v55 = vmax.f32 %v7110_v15, 0.0  ;;  %v7113_v52 = vadd.f32 %v8154_v41, %v10474_v36 }
 0x586   :  { %v7143_v13 = vmax.f32 %v7113_v52, 0.0  ;;  %v8155_v39 = vpop.f32.mrb[136].mxu1  ;;  %v7165_v49 = vmul.f32 %v10477_v46, %v7142_v55 }
 0x587   :  { %v8156_v18 = vpop.f32.mrb[137].mxu1 }
 0x588   :  { %v8157_v37 = vadd.f32 %v8156_v18, %v8155_v39  ;;  %v8158_v42 = vpop.f32.mrb[138].mxu1  ;;  %v7202_v62 = vsel %vm7171_vm0, %v7165_v49, 0.0  ;;  %v7166_v48 = vmul.f32 %v10477_v46, %v7143_v13 }
 0x589   :  { %v8159_v32 = vpop.f32.mrb[139].mxu1  ;;  %7203 = vadd.xlane.f32.xlu0 %v7202_v62 }
 0x58a   :  { %v7118_v30 = vadd.f32 %v8157_v37, %v10474_v36  ;;  %v8160_v21 = vadd.f32 %v8159_v32, %v8158_v42  ;;  %v7205_v35 = vsel %vm7171_vm0, %v7166_v48, 0.0 }
 0x58b   :  { %7206 = vadd.xlane.f32.xlu1 %v7205_v35 }
 0x58c   :  { %v7144_v23 = vmax.f32 %v7118_v30, 0.0  ;;  %v7121_v1 = vadd.f32 %v8160_v21, %v10474_v36 }
 0x58e   :  { %v7145_v8 = vmax.f32 %v7121_v1, 0.0  ;;  %v8161_v61 = vpop.f32.mrb[140].mxu1  ;;  %v7167_v44 = vmul.f32 %v10477_v46, %v7144_v23 }
 0x58f   :  { %v8162_v29 = vpop.f32.mrb[141].mxu1 }
 0x590   :  { %v8163_v28 = vadd.f32 %v8162_v29, %v8161_v61  ;;  %v8164_v27 = vpop.f32.mrb[142].mxu1  ;;  %v7208_v56 = vsel %vm7171_vm0, %v7167_v44, 0.0  ;;  %v7168_v54 = vmul.f32 %v10477_v46, %v7145_v8 }
 0x591   :  { %v8165_v45 = vpop.f32.mrb[143].mxu1  ;;  %7209 = vadd.xlane.f32.xlu0 %v7208_v56 }
 0x592   :  { %v7126_v40 = vadd.f32 %v8163_v28, %v10474_v36  ;;  %v8166_v5 = vadd.f32 %v8165_v45, %v8164_v27  ;;  %v7211_v47 = vsel %vm7171_vm0, %v7168_v54, 0.0 }
 0x593   :  { %7212 = vadd.xlane.f32.xlu1 %v7211_v47 }
 0x594   :  { %v7146_v33 = vmax.f32 %v7126_v40, 0.0  ;;  %v7129_v26 = vadd.f32 %v8166_v5, %v10474_v36 }
 0x596   :  { %v7147_v16 = vmax.f32 %v7129_v26, 0.0  ;;  %v7169_v38 = vmul.f32 %v10477_v46, %v7146_v33 }
 0x598   :  { %v7214_v59 = vsel %vm7171_vm0, %v7169_v38, 0.0  ;;  %v7170_v53 = vmul.f32 %v10477_v46, %v7147_v16 }
 0x599   :  { %7215 = vadd.xlane.f32.xlu0 %v7214_v59 }
 0x59a   :  { %v7217_v50 = vsel %vm7171_vm0, %v7170_v53, 0.0 }
 0x59b   :  { %7218 = vadd.xlane.f32.xlu1 %v7217_v50 }
 0x5ee   :  { %v7174_v3 = vpop.xlane.xlu0 %7173 }
 0x5ef   :  { %v7227_v12 = vadd.f32 %v10526_v6, %v7174_v3 }
 0x5f1   :  { %v8087_v63 = vmul.f32 -1.442695, %v7227_v12 }
 0x5f2   :  { %v7177_v24 = vpop.xlane.xlu0 %7176 }
 0x5f3   :  { %9058 = vpow2.f32 %v8087_v63  ;;  %v7228_v36 = vadd.f32 %v10526_v6, %v7177_v24 }
 0x5f5   :  { %v8088_v11 = vmul.f32 -1.442695, %v7228_v36 }
 0x5f6   :  { %v7180_v10 = vpop.xlane.xlu1 %7179 }
 0x5f7   :  { %9060 = vpow2.f32 %v8088_v11  ;;  %v7229_v22 = vadd.f32 %v10526_v6, %v7180_v10 }
 0x5f9   :  { %v8089_v46 = vmul.f32 -1.442695, %v7229_v22 }
 0x5fa   :  { %v7183_v0 = vpop.xlane.xlu1 %7182 }
 0x5fb   :  { %9062 = vpow2.f32 %v8089_v46  ;;  %v7230_v20 = vadd.f32 %v10526_v6, %v7183_v0 }
 0x5fd   :  { %v9059_v43 = vpop.eup %9058  ;;  %v8090_v31 = vmul.f32 -1.442695, %v7230_v20 }
 0x5fe   :  { %v7291_v58 = vadd.f32 1.0, %v9059_v43  ;;  %v7186_v34 = vpop.xlane.xlu0 %7185 }
 0x5ff   :  { %9064 = vpow2.f32 %v8090_v31  ;;  %v7231_v25 = vadd.f32 %v10526_v6, %v7186_v34 }
 0x600   :  { %9066 = vrcp.f32 %v7291_v58  ;;  %v7189_v7 = vpop.xlane.xlu1 %7188 }
 0x601   :  { %v9061_v60 = vpop.eup %9060  ;;  %v8091_v14 = vmul.f32 -1.442695, %v7231_v25  ;;  %v7232_v17 = vadd.f32 %v10526_v6, %v7189_v7 }
 0x602   :  { %v7292_v19 = vadd.f32 1.0, %v9061_v60 }
 0x603   :  { %9068 = vpow2.f32 %v8091_v14  ;;  %v8092_v4 = vmul.f32 -1.442695, %v7232_v17 }
 0x604   :  { %9070 = vrcp.f32 %v7292_v19 }
 0x605   :  { %v9063_v2 = vpop.eup %9062  ;;  %9072 = vpow2.f32 %v8092_v4 }
 0x606   :  { %v7293_v9 = vadd.f32 1.0, %v9063_v2  ;;  %v7192_v57 = vpop.xlane.xlu0 %7191 }
 0x607   :  { %v7233_v15 = vadd.f32 %v10526_v6, %v7192_v57 }
 0x608   :  { %9074 = vrcp.f32 %v7293_v9  ;;  %v7195_v41 = vpop.xlane.xlu1 %7194 }
 0x609   :  { %v9065_v51 = vpop.eup %9064  ;;  %v8093_v55 = vmul.f32 -1.442695, %v7233_v15  ;;  %v7234_v52 = vadd.f32 %v10526_v6, %v7195_v41 }
 0x60a   :  { %v9067_v13 = vpop.eup %9066  ;;  %v7294_v39 = vadd.f32 1.0, %v9065_v51 }
 0x60b   :  { %7340 = vst.msk [vmem:[%s10617_s9] sm:$0xff] %vm7339_vm1, %v9067_v13  ;;  %9076 = vpow2.f32 %v8093_v55  ;;  %v8094_v49 = vmul.f32 -1.442695, %v7234_v52 }
 0x60c   :  { %9078 = vrcp.f32 %v7294_v39 }
 0x60d   :  { %v9069_v18 = vpop.eup %9068  ;;  %9080 = vpow2.f32 %v8094_v49 }
 0x60e   :  { %v9071_v37 = vpop.eup %9070  ;;  %v7295_v42 = vadd.f32 1.0, %v9069_v18  ;;  %v7198_v62 = vpop.xlane.xlu0 %7197 }
 0x60f   :  { %v9073_v48 = vpop.eup %9072  ;;  %7341 = vst.msk [vmem:[%s10617_s9 + $0x8] sm:$0xff] %vm7339_vm1, %v9071_v37  ;;  %v7235_v32 = vadd.f32 %v10526_v6, %v7198_v62 }
 0x610   :  { %9082 = vrcp.f32 %v7295_v42  ;;  %v7296_v30 = vadd.f32 1.0, %v9073_v48  ;;  %v7201_v21 = vpop.xlane.xlu1 %7200 }
 0x611   :  { %v8095_v35 = vmul.f32 -1.442695, %v7235_v32  ;;  %v7236_v23 = vadd.f32 %v10526_v6, %v7201_v21 }
 0x612   :  { %v9075_v1 = vpop.eup %9074  ;;  %9084 = vrcp.f32 %v7296_v30 }
 0x613   :  { %7342 = vst.msk [vmem:[%s10617_s9 + $0x10] sm:$0xff] %vm7339_vm1, %v9075_v1  ;;  %9086 = vpow2.f32 %v8095_v35  ;;  %v8096_v8 = vmul.f32 -1.442695, %v7236_v23 }
 0x615   :  { %v9077_v61 = vpop.eup %9076  ;;  %9088 = vpow2.f32 %v8096_v8 }
 0x616   :  { %v9079_v44 = vpop.eup %9078  ;;  %v7297_v29 = vadd.f32 1.0, %v9077_v61  ;;  %v7204_v28 = vpop.xlane.xlu0 %7203 }
 0x617   :  { %v9081_v27 = vpop.eup %9080  ;;  %7343 = vst.msk [vmem:[%s10617_s9 + $0x18] sm:$0xff] %vm7339_vm1, %v9079_v44  ;;  %v7237_v56 = vadd.f32 %v10526_v6, %v7204_v28 }
 0x618   :  { %9090 = vrcp.f32 %v7297_v29  ;;  %v7298_v54 = vadd.f32 1.0, %v9081_v27  ;;  %v7207_v45 = vpop.xlane.xlu1 %7206 }
 0x619   :  { %v8097_v40 = vmul.f32 -1.442695, %v7237_v56  ;;  %v7238_v5 = vadd.f32 %v10526_v6, %v7207_v45 }
 0x61a   :  { %v9083_v47 = vpop.eup %9082  ;;  %9092 = vrcp.f32 %v7298_v54 }
 0x61b   :  { %7344 = vst.msk [vmem:[%s10617_s9 + $0x20] sm:$0xff] %vm7339_vm1, %v9083_v47  ;;  %9094 = vpow2.f32 %v8097_v40  ;;  %v8098_v33 = vmul.f32 -1.442695, %v7238_v5 }
 0x61c   :  { %v9085_v26 = vpop.eup %9084 }
 0x61d   :  { %v9087_v16 = vpop.eup %9086  ;;  %7345 = vst.msk [vmem:[%s10617_s9 + $0x28] sm:$0xff] %vm7339_vm1, %v9085_v26  ;;  %9096 = vpow2.f32 %v8098_v33 }
 0x61e   :  { %v7299_v38 = vadd.f32 1.0, %v9087_v16  ;;  %v7210_v59 = vpop.xlane.xlu0 %7209 }
 0x61f   :  { %v9089_v53 = vpop.eup %9088  ;;  %v7239_v50 = vadd.f32 %v10526_v6, %v7210_v59 }
 0x620   :  { %9098 = vrcp.f32 %v7299_v38  ;;  %v7300_v3 = vadd.f32 1.0, %v9089_v53  ;;  %v7213_v12 = vpop.xlane.xlu1 %7212 }
 0x621   :  { %v8099_v63 = vmul.f32 -1.442695, %v7239_v50  ;;  %v7240_v24 = vadd.f32 %v10526_v6, %v7213_v12 }
 0x622   :  { %v9091_v36 = vpop.eup %9090  ;;  %9100 = vrcp.f32 %v7300_v3 }
 0x623   :  { %7346 = vst.msk [vmem:[%s10617_s9 + $0x30] sm:$0xff] %vm7339_vm1, %v9091_v36  ;;  %9102 = vpow2.f32 %v8099_v63  ;;  %v8100_v11 = vmul.f32 -1.442695, %v7240_v24 }
 0x624   :  { %v9093_v10 = vpop.eup %9092 }
 0x625   :  { %v9095_v22 = vpop.eup %9094  ;;  %7347 = vst.msk [vmem:[%s10617_s9 + $0x38] sm:$0xff] %vm7339_vm1, %v9093_v10  ;;  %9104 = vpow2.f32 %v8100_v11 }
 0x626   :  { %v7301_v46 = vadd.f32 1.0, %v9095_v22  ;;  %v7216_v0 = vpop.xlane.xlu0 %7215 }
 0x627   :  { %v9097_v20 = vpop.eup %9096  ;;  %v7241_v43 = vadd.f32 %v10526_v6, %v7216_v0 }
 0x628   :  { %9106 = vrcp.f32 %v7301_v46  ;;  %v7302_v31 = vadd.f32 1.0, %v9097_v20  ;;  %v7219_v58 = vpop.xlane.xlu1 %7218 }
 0x629   :  { %v8101_v34 = vmul.f32 -1.442695, %v7241_v43  ;;  %v7242_v25 = vadd.f32 %v10526_v6, %v7219_v58 }
 0x62a   :  { %v9099_v7 = vpop.eup %9098  ;;  %9108 = vrcp.f32 %v7302_v31 }
 0x62b   :  { %7348 = vst.msk [vmem:[%s10617_s9 + $0x40] sm:$0xff] %vm7339_vm1, %v9099_v7  ;;  %9110 = vpow2.f32 %v8101_v34  ;;  %v8102_v60 = vmul.f32 -1.442695, %v7242_v25 }
 0x62c   :  { %v9101_v14 = vpop.eup %9100 }
 0x62d   :  { %v9103_v17 = vpop.eup %9102  ;;  %7349 = vst.msk [vmem:[%s10617_s9 + $0x48] sm:$0xff] %vm7339_vm1, %v9101_v14  ;;  %9112 = vpow2.f32 %v8102_v60 }
 0x62e   :  { %v7303_v19 = vadd.f32 1.0, %v9103_v17 }
 0x62f   :  { %v9105_v4 = vpop.eup %9104 }
 0x630   :  { %9114 = vrcp.f32 %v7303_v19  ;;  %v7304_v6 = vadd.f32 1.0, %v9105_v4 }
 0x632   :  { %v9107_v2 = vpop.eup %9106  ;;  %9116 = vrcp.f32 %v7304_v6 }
 0x633   :  { %7350 = vst.msk [vmem:[%s10617_s9 + $0x50] sm:$0xff] %vm7339_vm1, %v9107_v2 }
 0x634   :  { %v9109_v9 = vpop.eup %9108 }
 0x635   :  { %v9111_v57 = vpop.eup %9110  ;;  %7351 = vst.msk [vmem:[%s10617_s9 + $0x58] sm:$0xff] %vm7339_vm1, %v9109_v9 }
 0x636   :  { %v7305_v15 = vadd.f32 1.0, %v9111_v57 }
 0x637   :  { %v9113_v41 = vpop.eup %9112 }
 0x638   :  { %9118 = vrcp.f32 %v7305_v15  ;;  %v7306_v51 = vadd.f32 1.0, %v9113_v41 }
 0x63a   :  { %v9115_v55 = vpop.eup %9114  ;;  %9120 = vrcp.f32 %v7306_v51 }
 0x63b   :  { %7352 = vst.msk [vmem:[%s10617_s9 + $0x60] sm:$0xff] %vm7339_vm1, %v9115_v55 }
 0x63c   :  { %v9117_v52 = vpop.eup %9116 }
 0x63d   :  { %7353 = vst.msk [vmem:[%s10617_s9 + $0x68] sm:$0xff] %vm7339_vm1, %v9117_v52 }
 0x642   :  { %v9119_v13 = vpop.eup %9118 }
 0x643   :  { %7354 = vst.msk [vmem:[%s10617_s9 + $0x70] sm:$0xff] %vm7339_vm1, %v9119_v13 }
 0x644   :  { %v9121_v39 = vpop.eup %9120 }
 0x645   :  { %7355 = vst.msk [vmem:[%s10617_s9 + $0x78] sm:$0xff] %vm7339_vm1, %v9121_v39 }
 0x646   :  { %7360 = vsyncpa [#allocation4], 1 }
 0x647   :  { %7361 = vsyncpa [#allocation6], 1 }
 0x648   :  { %7362 = vsyncpa [#allocation9], 1 }
 0x649   :  { %7363 = vsyncpa [#allocation12], 1 }

</bundles_post_ra>
